<compile_context>
chip_gen: v5e
topology: v5e:2x2
jax: 0.10.0
libtpu: 0.0.40
codegen_flags: <defaults>
</compile_context>

<pallas_src>
import functools
import math

import numpy as np
import jax
import jax.numpy as jnp
from jax import lax
from jax.experimental import pallas as pl
from jax.experimental.pallas import tpu as pltpu


# ----------------------------- Pallas kernel ------------------------------- #

def fused_attention_kernel(x_ref, wqkv_ref, bqkv_ref, wo_ref, bo_ref,
                           cos_ref, sin_ref, rot_ref, o_ref, aw_ref,
                           *, nb, num_heads, head_dim, seq_valid, seq_q, seq_kv,
                           scale):
    """NB batch elements per grid step: QKV proj + 2D RoPE + attention + out proj.

    Relayout-heavy work (rotate_half, head concat) is expressed as small MXU
    matmuls / sublane-aligned slices instead of lane-granularity shuffles.
    """
    D = num_heads * head_dim
    SP = seq_kv    # padded key/value length (multiple of 128) -> lane-dense scores
    SQ = seq_q     # padded query rows (multiple of 8)

    # ---- fused QKV projection over all NB*SP rows (one MXU matmul) ----
    x = x_ref[...].reshape(nb * SP, D)
    qkv = (jnp.dot(x, wqkv_ref[...], preferred_element_type=jnp.float32)
           + bqkv_ref[...])                                        # (NB*SP, 3D)

    # ---- 2D RoPE on the whole slab in one shot ----
    # rotate_half == signed permutation => one tiny MXU matmul; the v block of the
    # tables has cos==1 / sin==0 so v passes through unchanged.
    rot = jnp.dot(qkv, rot_ref[...], preferred_element_type=jnp.float32)
    qkv = qkv * cos_ref[...] + rot * sin_ref[...]                  # (NB*SP, 3D)

    # additive mask for padded key columns (cols >= seq_valid)
    col = lax.broadcasted_iota(jnp.int32, (1, SP), 1)
    kbias = jnp.where(col < seq_valid, 0.0, -1e30).astype(jnp.float32)   # (1, SP)

    for b in range(nb):                                            # static unroll
        r0 = b * SP
        acc = None
        for h in range(num_heads):                                 # static unroll
            c0 = h * head_dim
            qh = qkv[r0:r0 + SQ, c0:c0 + head_dim]                         # (SQ, Dh)
            kh = qkv[r0:r0 + SP, D + c0:D + c0 + head_dim]                 # (SP, Dh)
            vh = qkv[r0:r0 + SP, 2 * D + c0:2 * D + c0 + head_dim]         # (SP, Dh)

            # scores = qh @ kh^T (contract last dims; no in-kernel transpose)
            scores = lax.dot_general(qh, kh, (((1,), (1,)), ((), ())),
                                     preferred_element_type=jnp.float32)
            scores = scores * scale + kbias                                # (SQ, SP)
            m = jnp.max(scores, axis=-1, keepdims=True)
            e = jnp.exp(scores - m)                    # padded cols underflow to 0
            denom = jnp.sum(e, axis=-1, keepdims=True)
            w = e * pl.reciprocal(denom, approx=True)  # EUP vrcp (free slot)

            aw_ref[b, h] = w                           # lane-dense (SQ, 128) store

            head_out = jnp.dot(w, vh, preferred_element_type=jnp.float32)  # (SQ, Dh)
            # fold the head concat into the output projection (row slice of Wo^T)
            contrib = jnp.dot(head_out, wo_ref[c0:c0 + head_dim, :],
                              preferred_element_type=jnp.float32)          # (SQ, D)
            acc = contrib if acc is None else acc + contrib

        o_ref[b] = (acc + bo_ref[...]).astype(o_ref.dtype)


# ------------------------------- JAX glue ---------------------------------- #

def _tensorcores_per_chip():
    """Best-effort detection of multi-TensorCore chips (v7x / megacore v4/v5p)."""
    try:
        kind = jax.devices()[0].device_kind.lower()
    except Exception:
        return 1
    return 2 if any(t in kind for t in ("v7", "tpu7", "v4", "v5p")) else 1


def make_rope_tables_full(rows, num_heads, head_dim, grid_shape, base):
    """Full-width (rows, 3*D) cos/sin tables for the fused q‖k‖v slab.

    q and k blocks carry the 2D-axial RoPE angles (tiled per head); the v block
    is cos=1 / sin=0 so it passes through the in-kernel RoPE untouched.
    """
    D = num_heads * head_dim
    gh, gw = grid_shape
    half = head_dim // 2
    idx = jnp.arange(rows)
    row = (idx // gw).astype(jnp.float32)
    col = (idx % gw).astype(jnp.float32)
    freqs = base ** (-jnp.arange(0, half, 2, dtype=jnp.float32) / half)   # [Dh//4]
    ang_r = row[:, None] * freqs[None, :]
    ang_c = col[:, None] * freqs[None, :]
    cos_h = jnp.concatenate([jnp.cos(ang_r), jnp.cos(ang_r),
                             jnp.cos(ang_c), jnp.cos(ang_c)], axis=-1)    # (rows, Dh)
    sin_h = jnp.concatenate([jnp.sin(ang_r), jnp.sin(ang_r),
                             jnp.sin(ang_c), jnp.sin(ang_c)], axis=-1)
    cos_qk = jnp.tile(cos_h, (1, num_heads))                              # (rows, D)
    sin_qk = jnp.tile(sin_h, (1, num_heads))
    cos_full = jnp.concatenate(
        [cos_qk, cos_qk, jnp.ones((rows, D), jnp.float32)], axis=-1)      # (rows, 3D)
    sin_full = jnp.concatenate(
        [sin_qk, sin_qk, jnp.zeros((rows, D), jnp.float32)], axis=-1)
    return cos_full, sin_full


def make_rotate_half_matrix(num_heads, head_dim):
    """(3D, 3D) block-diagonal signed permutation implementing rotate_half on the
    q and k blocks of the fused slab; the v block is zero (killed by sin=0 anyway)."""
    D = num_heads * head_dim
    q = head_dim // 4
    blk = np.zeros((head_dim, head_dim), np.float32)
    for j in range(q):
        blk[q + j, j] = -1.0             # out[:, 0:q)    = -b_row
        blk[j, q + j] = 1.0              # out[:, q:2q)   =  a_row
        blk[3 * q + j, 2 * q + j] = -1.0  # out[:, 2q:3q)  = -b_col
        blk[2 * q + j, 3 * q + j] = 1.0   # out[:, 3q:4q)  =  a_col
    R = np.zeros((3 * D, 3 * D), np.float32)
    for head in range(2 * num_heads):    # q heads then k heads
        o = head * head_dim
        R[o:o + head_dim, o:o + head_dim] = blk
    return jnp.asarray(R)


def attention_forward(params, x, num_heads, grid_shape=(7, 7), geometric_base=100.0):
    """Equivalent of Attention.forward: returns (attention_value, attention_weight)."""
    B, S, D = x.shape
    H = num_heads
    Dh = D // H
    scale = 1.0 / math.sqrt(Dh)

    SP = 128                         # padded key/value length (lane-dense weights)
    SQ = ((S + 7) // 8) * 8          # padded query rows (sublane granularity)

    # One batch per grid step only when the chip has >1 TensorCore; otherwise the
    # grid is a serial loop, so fold the whole batch into a single step.
    NB = 1 if (_tensorcores_per_chip() > 1 and B > 1) else B
    if B % NB:
        NB = B
    nsteps = B // NB

    # Trace-time weight fusion: one pre-transposed [D, 3D] QKV weight + [1, 3D] bias.
    wqkv = jnp.concatenate([params["wq"], params["wk"], params["wv"]], axis=0).T
    bqkv = jnp.concatenate([params["bq"], params["bk"], params["bv"]],
                           axis=0).reshape(1, 3 * D)
    wo_t = params["wo"].T                                                 # (D, D)
    bo = params["bo"].reshape(1, D)

    cos_full, sin_full = make_rope_tables_full(SP, H, Dh, grid_shape,
                                               float(geometric_base))
    if NB > 1:
        cos_full = jnp.tile(cos_full, (NB, 1))
        sin_full = jnp.tile(sin_full, (NB, 1))
    rot_mat = make_rotate_half_matrix(H, Dh)

    x_pad = jnp.pad(x, ((0, 0), (0, SP - S), (0, 0)))                     # (B, SP, D)

    kernel = functools.partial(fused_attention_kernel, nb=NB, num_heads=H,
                               head_dim=Dh, seq_valid=S, seq_q=SQ, seq_kv=SP,
                               scale=scale)

    value_p, weight_p = pl.pallas_call(
        kernel,
        out_shape=(
            jax.ShapeDtypeStruct((B, SQ, D), jnp.float32),
            jax.ShapeDtypeStruct((B, H, SQ, SP), jnp.float32),
        ),
        grid=(nsteps,),
        in_specs=[
            pl.BlockSpec((NB, SP, D), lambda b: (b, 0, 0)),          # x (padded)
            pl.BlockSpec((D, 3 * D), lambda b: (0, 0)),              # Wqkv^T
            pl.BlockSpec((1, 3 * D), lambda b: (0, 0)),              # bqkv
            pl.BlockSpec((D, D), lambda b: (0, 0)),                  # Wo^T
            pl.BlockSpec((1, D), lambda b: (0, 0)),                  # bo
            pl.BlockSpec((NB * SP, 3 * D), lambda b: (0, 0)),        # cos (full width)
            pl.BlockSpec((NB * SP, 3 * D), lambda b: (0, 0)),        # sin (full width)
            pl.BlockSpec((3 * D, 3 * D), lambda b: (0, 0)),          # rotate_half mat
        ],
        out_specs=(
            pl.BlockSpec((NB, SQ, D), lambda b: (b, 0, 0)),          # attention_value
            pl.BlockSpec((NB, H, SQ, SP), lambda b: (b, 0, 0, 0)),   # attention_weight
        ),
        compiler_params=pltpu.CompilerParams(
            dimension_semantics=("parallel",),
        ),
    )(x_pad, wqkv, bqkv, wo_t, bo, cos_full, sin_full, rot_mat)

    # Drop padded query rows / key columns (trace-time slicing in the wrapper).
    return value_p[:, :S, :], weight_p[:, :, :S, :S]


# --------------------------- pure-JAX reference ----------------------------- #

def rope_2d_ref(x, grid_shape, base):
    """Reference 2D axial rotary embedding. x: [B, H, S, Dh], S == gh*gw."""
    B, H, S, Dh = x.shape
    gh, gw = grid_shape
    half = Dh // 2
    quarter = half // 2
    idx = jnp.arange(S)
    row = (idx // gw).astype(jnp.float32)
    col = (idx % gw).astype(jnp.float32)
    freqs = base ** (-jnp.arange(0, half, 2, dtype=jnp.float32) / half)
    ang_r = row[:, None] * freqs[None, :]
    ang_c = col[:, None] * freqs[None, :]

    def rot(block, ang):
        a, b = block[..., :quarter], block[..., quarter:]
        c = jnp.cos(ang)[None, None, :, :]
        s = jnp.sin(ang)[None, None, :, :]
        return jnp.concatenate([a * c - b * s, a * s + b * c], axis=-1)

    x_row, x_col = x[..., :half], x[..., half:]
    return jnp.concatenate([rot(x_row, ang_r), rot(x_col, ang_c)], axis=-1)


def attention_reference(params, x, num_heads, grid_shape, base):
    B, S, D = x.shape
    H = num_heads
    Dh = D // H
    hp = lax.Precision.HIGHEST

    def lin(v, w, b):
        return jnp.dot(v, w.T, precision=hp) + b

    q = lin(x, params["wq"], params["bq"]).reshape(B, S, H, Dh).transpose(0, 2, 1, 3)
    k = lin(x, params["wk"], params["bk"]).reshape(B, S, H, Dh).transpose(0, 2, 1, 3)
    v = lin(x, params["wv"], params["bv"]).reshape(B, S, H, Dh).transpose(0, 2, 1, 3)
    q = rope_2d_ref(q, grid_shape, base)
    k = rope_2d_ref(k, grid_shape, base)
    scores = jnp.einsum("bhqd,bhkd->bhqk", q, k, precision=hp) / math.sqrt(Dh)
    w = jax.nn.softmax(scores, axis=-1)
    o = jnp.einsum("bhqk,bhkd->bhqd", w, v, precision=hp)
    o = o.transpose(0, 2, 1, 3).reshape(B, S, D)
    out = lin(o, params["wo"], params["bo"])
    return out, w


# --------------------------------- params ----------------------------------- #

def init_attention_params(key, embed_dim):
    ks = jax.random.split(key, 4)
    scale = 0.125

    def lin(k):
        return (scale * jax.random.normal(k, (embed_dim, embed_dim), jnp.float32),
                jnp.zeros((embed_dim,), jnp.float32))

    wq, bq = lin(ks[0])
    wk, bk = lin(ks[1])
    wv, bv = lin(ks[2])
    wo, bo = lin(ks[3])
    return dict(wq=wq, bq=bq, wk=wk, bk=bk, wv=wv, bv=bv, wo=wo, bo=bo)


# ---------------------------------- main ------------------------------------ #

if __name__ == "__main__":
    embed_dim = 32
    num_heads = 4
    grid_shape = (7, 7)
    B = 2
    S = grid_shape[0] * grid_shape[1]  # 49

    key = jax.random.PRNGKey(0)
    kx, kp = jax.random.split(key)
    x = jax.random.normal(kx, (B, S, embed_dim), jnp.float32)
    params = init_attention_params(kp, embed_dim)

    attn_value, attn_weight = attention_forward(params, x, num_heads, grid_shape, 100.0)
    jax.block_until_ready((attn_value, attn_weight))

    assert attn_value.shape == (B, S, embed_dim)
    assert attn_weight.shape == (B, num_heads, S, S)
    # softmax rows sum to ~1 (approx reciprocal on the EUP)
    assert jnp.allclose(attn_weight.sum(-1), 1.0, atol=1e-2)

    # pure-JAX reference of the same math (tol covers MXU passes + approx recip)
    ref_value, ref_weight = attention_reference(params, x, num_heads, grid_shape, 100.0)
    assert bool(jnp.allclose(attn_value, ref_value, atol=1e-2, rtol=2e-2))
    assert bool(jnp.allclose(attn_weight, ref_weight, atol=5e-3, rtol=2e-2))

    print("KERNEL_OK")
</pallas_src>

<mosaic_0001>
module attributes {stable_mosaic.version = 11 : i64} {
  func.func @fused_attention_kernel(%arg0: i32, %arg1: memref<2x128x32xf32, #tpu.memory_space<vmem>>, %arg2: memref<32x96xf32, #tpu.memory_space<vmem>>, %arg3: memref<1x96xf32, #tpu.memory_space<vmem>>, %arg4: memref<32x32xf32, #tpu.memory_space<vmem>>, %arg5: memref<1x32xf32, #tpu.memory_space<vmem>>, %arg6: memref<256x96xf32, #tpu.memory_space<vmem>>, %arg7: memref<256x96xf32, #tpu.memory_space<vmem>>, %arg8: memref<96x96xf32, #tpu.memory_space<vmem>>, %arg9: memref<2x56x32xf32, #tpu.memory_space<vmem>>, %arg10: memref<2x4x56x128xf32, #tpu.memory_space<vmem>>) attributes {dimension_semantics = [#tpu.dimension_semantics<parallel>], iteration_bounds = array<i64: 1>, scalar_prefetch = 0 : i64, scratch_operands = 0 : i64, tpu.core_type = #tpu.core_type<tc>, window_params = [{transform_indices = @transform_0, window_bounds = array<i64: 2, 128, 32>}, {pipeline_mode = #tpu.pipeline_mode<synchronous>, transform_indices = @transform_1, window_bounds = array<i64: 32, 96>}, {pipeline_mode = #tpu.pipeline_mode<synchronous>, transform_indices = @transform_2, window_bounds = array<i64: 1, 96>}, {pipeline_mode = #tpu.pipeline_mode<synchronous>, transform_indices = @transform_3, window_bounds = array<i64: 32, 32>}, {pipeline_mode = #tpu.pipeline_mode<synchronous>, transform_indices = @transform_4, window_bounds = array<i64: 1, 32>}, {pipeline_mode = #tpu.pipeline_mode<synchronous>, transform_indices = @transform_5, window_bounds = array<i64: 256, 96>}, {pipeline_mode = #tpu.pipeline_mode<synchronous>, transform_indices = @transform_6, window_bounds = array<i64: 256, 96>}, {pipeline_mode = #tpu.pipeline_mode<synchronous>, transform_indices = @transform_7, window_bounds = array<i64: 96, 96>}, {transform_indices = @transform_8, window_bounds = array<i64: 2, 56, 32>}, {transform_indices = @transform_9, window_bounds = array<i64: 2, 4, 56, 128>}]} {
    %c0 = arith.constant 0 : index
    %c0_0 = arith.constant 0 : index
    %c0_1 = arith.constant 0 : index
    %0 = vector.load %arg1[%c0, %c0_0, %c0_1] : memref<2x128x32xf32, #tpu.memory_space<vmem>>, vector<2x128x32xf32>
    %1 = vector.shape_cast %0 : vector<2x128x32xf32> to vector<256x32xf32>
    %c0_2 = arith.constant 0 : index
    %c0_3 = arith.constant 0 : index
    %2 = vector.load %arg2[%c0_2, %c0_3] : memref<32x96xf32, #tpu.memory_space<vmem>>, vector<32x96xf32>
    %cst = arith.constant dense<0.000000e+00> : vector<256x96xf32>
    %3 = tpu.matmul %1, %2, %cst {dimension_numbers = #tpu.dot_dimension_numbers<[1], [0], [0], [1], [0, 0, 1, 1], [], []>} : vector<256x32xf32>, vector<32x96xf32>, vector<256x96xf32> -> vector<256x96xf32>
    %c0_4 = arith.constant 0 : index
    %c0_5 = arith.constant 0 : index
    %4 = vector.load %arg3[%c0_4, %c0_5] : memref<1x96xf32, #tpu.memory_space<vmem>>, vector<1x96xf32>
    %5 = vector.broadcast %4 : vector<1x96xf32> to vector<256x96xf32>
    %6 = arith.addf %3, %5 : vector<256x96xf32>
    %c0_6 = arith.constant 0 : index
    %c0_7 = arith.constant 0 : index
    %7 = vector.load %arg8[%c0_6, %c0_7] : memref<96x96xf32, #tpu.memory_space<vmem>>, vector<96x96xf32>
    %cst_8 = arith.constant dense<0.000000e+00> : vector<256x96xf32>
    %8 = tpu.matmul %6, %7, %cst_8 {dimension_numbers = #tpu.dot_dimension_numbers<[1], [0], [0], [1], [0, 0, 1, 1], [], []>} : vector<256x96xf32>, vector<96x96xf32>, vector<256x96xf32> -> vector<256x96xf32>
    %c0_9 = arith.constant 0 : index
    %c0_10 = arith.constant 0 : index
    %9 = vector.load %arg6[%c0_9, %c0_10] : memref<256x96xf32, #tpu.memory_space<vmem>>, vector<256x96xf32>
    %10 = arith.mulf %6, %9 : vector<256x96xf32>
    %c0_11 = arith.constant 0 : index
    %c0_12 = arith.constant 0 : index
    %11 = vector.load %arg7[%c0_11, %c0_12] : memref<256x96xf32, #tpu.memory_space<vmem>>, vector<256x96xf32>
    %12 = arith.mulf %8, %11 : vector<256x96xf32>
    %13 = arith.addf %10, %12 : vector<256x96xf32>
    %14 = tpu.iota {dimensions = array<i32: 1>} : vector<1x128xi32>
    %c49_i32 = arith.constant 49 : i32
    %15 = vector.broadcast %c49_i32 : i32 to vector<1x128xi32>
    %16 = arith.cmpi slt, %14, %15 : vector<1x128xi32>
    %cst_13 = arith.constant 0.000000e+00 : f32
    %cst_14 = arith.constant -1.000000e+30 : f32
    %17 = vector.broadcast %cst_13 : f32 to vector<1x128xf32>
    %18 = vector.broadcast %cst_14 : f32 to vector<1x128xf32>
    %19 = arith.select %16, %17, %18 : vector<1x128xi1>, vector<1x128xf32>
    %20 = vector.extract_strided_slice %13 {offsets = [0, 0], sizes = [56, 8], strides = [1, 1]} : vector<256x96xf32> to vector<56x8xf32>
    %21 = vector.extract_strided_slice %13 {offsets = [0, 32], sizes = [128, 8], strides = [1, 1]} : vector<256x96xf32> to vector<128x8xf32>
    %22 = vector.extract_strided_slice %13 {offsets = [0, 64], sizes = [128, 8], strides = [1, 1]} : vector<256x96xf32> to vector<128x8xf32>
    %cst_15 = arith.constant dense<0.000000e+00> : vector<56x128xf32>
    %23 = tpu.matmul %20, %21, %cst_15 {dimension_numbers = #tpu.dot_dimension_numbers<[1], [1], [0], [0], [0, 0, 1, 0], [], []>} : vector<56x8xf32>, vector<128x8xf32>, vector<56x128xf32> -> vector<56x128xf32>
    %cst_16 = arith.constant 0.353553385 : f32
    %24 = vector.broadcast %cst_16 : f32 to vector<56x128xf32>
    %25 = arith.mulf %23, %24 : vector<56x128xf32>
    %26 = vector.broadcast %19 : vector<1x128xf32> to vector<56x128xf32>
    %27 = arith.addf %25, %26 : vector<56x128xf32>
    %cst_17 = arith.constant dense<0xFF800000> : vector<56xf32>
    %28 = vector.multi_reduction <maximumf>, %27, %cst_17 [1] : vector<56x128xf32> to vector<56xf32>
    %29 = vector.shape_cast %28 : vector<56xf32> to vector<56x1xf32>
    %30 = vector.broadcast %29 : vector<56x1xf32> to vector<56x128xf32>
    %31 = arith.subf %27, %30 : vector<56x128xf32>
    %32 = math.exp %31 : vector<56x128xf32>
    %cst_18 = arith.constant dense<0.000000e+00> : vector<56xf32>
    %33 = vector.multi_reduction <add>, %32, %cst_18 [1] : vector<56x128xf32> to vector<56xf32>
    %34 = vector.shape_cast %33 : vector<56xf32> to vector<56x1xf32>
    %35 = tpu.reciprocal %34 {approx = true} : vector<56x1xf32> -> vector<56x1xf32>
    %36 = vector.broadcast %35 : vector<56x1xf32> to vector<56x128xf32>
    %37 = arith.mulf %32, %36 : vector<56x128xf32>
    %c0_19 = arith.constant 0 : index
    %c0_20 = arith.constant 0 : index
    %c0_21 = arith.constant 0 : index
    %c0_22 = arith.constant 0 : index
    %38 = vector.load %arg10[%c0_19, %c0_20, %c0_21, %c0_22] : memref<2x4x56x128xf32, #tpu.memory_space<vmem>>, vector<1x1x56x128xf32>
    %39 = vector.shape_cast %38 : vector<1x1x56x128xf32> to vector<56x128xf32>
    %40 = vector.shape_cast %37 : vector<56x128xf32> to vector<1x1x56x128xf32>
    tpu.vector_store %arg10[%c0_19, %c0_20, %c0_21, %c0_22], %40 {strides = array<i32>} : memref<2x4x56x128xf32, #tpu.memory_space<vmem>>, vector<1x1x56x128xf32>,
    %cst_23 = arith.constant dense<0.000000e+00> : vector<56x8xf32>
    %41 = tpu.matmul %37, %22, %cst_23 {dimension_numbers = #tpu.dot_dimension_numbers<[1], [0], [0], [1], [0, 0, 1, 1], [], []>} : vector<56x128xf32>, vector<128x8xf32>, vector<56x8xf32> -> vector<56x8xf32>
    %c0_24 = arith.constant 0 : index
    %c0_25 = arith.constant 0 : index
    %42 = vector.load %arg4[%c0_24, %c0_25] : memref<32x32xf32, #tpu.memory_space<vmem>>, vector<8x32xf32>
    %cst_26 = arith.constant dense<0.000000e+00> : vector<56x32xf32>
    %43 = tpu.matmul %41, %42, %cst_26 {dimension_numbers = #tpu.dot_dimension_numbers<[1], [0], [0], [1], [0, 0, 1, 1], [], []>} : vector<56x8xf32>, vector<8x32xf32>, vector<56x32xf32> -> vector<56x32xf32>
    %44 = vector.extract_strided_slice %13 {offsets = [0, 8], sizes = [56, 8], strides = [1, 1]} : vector<256x96xf32> to vector<56x8xf32>
    %45 = vector.extract_strided_slice %13 {offsets = [0, 40], sizes = [128, 8], strides = [1, 1]} : vector<256x96xf32> to vector<128x8xf32>
    %46 = vector.extract_strided_slice %13 {offsets = [0, 72], sizes = [128, 8], strides = [1, 1]} : vector<256x96xf32> to vector<128x8xf32>
    %cst_27 = arith.constant dense<0.000000e+00> : vector<56x128xf32>
    %47 = tpu.matmul %44, %45, %cst_27 {dimension_numbers = #tpu.dot_dimension_numbers<[1], [1], [0], [0], [0, 0, 1, 0], [], []>} : vector<56x8xf32>, vector<128x8xf32>, vector<56x128xf32> -> vector<56x128xf32>
    %cst_28 = arith.constant 0.353553385 : f32
    %48 = vector.broadcast %cst_28 : f32 to vector<56x128xf32>
    %49 = arith.mulf %47, %48 : vector<56x128xf32>
    %50 = vector.broadcast %19 : vector<1x128xf32> to vector<56x128xf32>
    %51 = arith.addf %49, %50 : vector<56x128xf32>
    %cst_29 = arith.constant dense<0xFF800000> : vector<56xf32>
    %52 = vector.multi_reduction <maximumf>, %51, %cst_29 [1] : vector<56x128xf32> to vector<56xf32>
    %53 = vector.shape_cast %52 : vector<56xf32> to vector<56x1xf32>
    %54 = vector.broadcast %53 : vector<56x1xf32> to vector<56x128xf32>
    %55 = arith.subf %51, %54 : vector<56x128xf32>
    %56 = math.exp %55 : vector<56x128xf32>
    %cst_30 = arith.constant dense<0.000000e+00> : vector<56xf32>
    %57 = vector.multi_reduction <add>, %56, %cst_30 [1] : vector<56x128xf32> to vector<56xf32>
    %58 = vector.shape_cast %57 : vector<56xf32> to vector<56x1xf32>
    %59 = tpu.reciprocal %58 {approx = true} : vector<56x1xf32> -> vector<56x1xf32>
    %60 = vector.broadcast %59 : vector<56x1xf32> to vector<56x128xf32>
    %61 = arith.mulf %56, %60 : vector<56x128xf32>
    %c0_31 = arith.constant 0 : index
    %c1 = arith.constant 1 : index
    %c0_32 = arith.constant 0 : index
    %c0_33 = arith.constant 0 : index
    %62 = vector.load %arg10[%c0_31, %c1, %c0_32, %c0_33] : memref<2x4x56x128xf32, #tpu.memory_space<vmem>>, vector<1x1x56x128xf32>
    %63 = vector.shape_cast %62 : vector<1x1x56x128xf32> to vector<56x128xf32>
    %64 = vector.shape_cast %61 : vector<56x128xf32> to vector<1x1x56x128xf32>
    tpu.vector_store %arg10[%c0_31, %c1, %c0_32, %c0_33], %64 {strides = array<i32>} : memref<2x4x56x128xf32, #tpu.memory_space<vmem>>, vector<1x1x56x128xf32>,
    %cst_34 = arith.constant dense<0.000000e+00> : vector<56x8xf32>
    %65 = tpu.matmul %61, %46, %cst_34 {dimension_numbers = #tpu.dot_dimension_numbers<[1], [0], [0], [1], [0, 0, 1, 1], [], []>} : vector<56x128xf32>, vector<128x8xf32>, vector<56x8xf32> -> vector<56x8xf32>
    %c8 = arith.constant 8 : index
    %c0_35 = arith.constant 0 : index
    %66 = vector.load %arg4[%c8, %c0_35] : memref<32x32xf32, #tpu.memory_space<vmem>>, vector<8x32xf32>
    %cst_36 = arith.constant dense<0.000000e+00> : vector<56x32xf32>
    %67 = tpu.matmul %65, %66, %cst_36 {dimension_numbers = #tpu.dot_dimension_numbers<[1], [0], [0], [1], [0, 0, 1, 1], [], []>} : vector<56x8xf32>, vector<8x32xf32>, vector<56x32xf32> -> vector<56x32xf32>
    %68 = arith.addf %43, %67 : vector<56x32xf32>
    %69 = vector.extract_strided_slice %13 {offsets = [0, 16], sizes = [56, 8], strides = [1, 1]} : vector<256x96xf32> to vector<56x8xf32>
    %70 = vector.extract_strided_slice %13 {offsets = [0, 48], sizes = [128, 8], strides = [1, 1]} : vector<256x96xf32> to vector<128x8xf32>
    %71 = vector.extract_strided_slice %13 {offsets = [0, 80], sizes = [128, 8], strides = [1, 1]} : vector<256x96xf32> to vector<128x8xf32>
    %cst_37 = arith.constant dense<0.000000e+00> : vector<56x128xf32>
    %72 = tpu.matmul %69, %70, %cst_37 {dimension_numbers = #tpu.dot_dimension_numbers<[1], [1], [0], [0], [0, 0, 1, 0], [], []>} : vector<56x8xf32>, vector<128x8xf32>, vector<56x128xf32> -> vector<56x128xf32>
    %cst_38 = arith.constant 0.353553385 : f32
    %73 = vector.broadcast %cst_38 : f32 to vector<56x128xf32>
    %74 = arith.mulf %72, %73 : vector<56x128xf32>
    %75 = vector.broadcast %19 : vector<1x128xf32> to vector<56x128xf32>
    %76 = arith.addf %74, %75 : vector<56x128xf32>
    %cst_39 = arith.constant dense<0xFF800000> : vector<56xf32>
    %77 = vector.multi_reduction <maximumf>, %76, %cst_39 [1] : vector<56x128xf32> to vector<56xf32>
    %78 = vector.shape_cast %77 : vector<56xf32> to vector<56x1xf32>
    %79 = vector.broadcast %78 : vector<56x1xf32> to vector<56x128xf32>
    %80 = arith.subf %76, %79 : vector<56x128xf32>
    %81 = math.exp %80 : vector<56x128xf32>
    %cst_40 = arith.constant dense<0.000000e+00> : vector<56xf32>
    %82 = vector.multi_reduction <add>, %81, %cst_40 [1] : vector<56x128xf32> to vector<56xf32>
    %83 = vector.shape_cast %82 : vector<56xf32> to vector<56x1xf32>
    %84 = tpu.reciprocal %83 {approx = true} : vector<56x1xf32> -> vector<56x1xf32>
    %85 = vector.broadcast %84 : vector<56x1xf32> to vector<56x128xf32>
    %86 = arith.mulf %81, %85 : vector<56x128xf32>
    %c0_41 = arith.constant 0 : index
    %c2 = arith.constant 2 : index
    %c0_42 = arith.constant 0 : index
    %c0_43 = arith.constant 0 : index
    %87 = vector.load %arg10[%c0_41, %c2, %c0_42, %c0_43] : memref<2x4x56x128xf32, #tpu.memory_space<vmem>>, vector<1x1x56x128xf32>
    %88 = vector.shape_cast %87 : vector<1x1x56x128xf32> to vector<56x128xf32>
    %89 = vector.shape_cast %86 : vector<56x128xf32> to vector<1x1x56x128xf32>
    tpu.vector_store %arg10[%c0_41, %c2, %c0_42, %c0_43], %89 {strides = array<i32>} : memref<2x4x56x128xf32, #tpu.memory_space<vmem>>, vector<1x1x56x128xf32>,
    %cst_44 = arith.constant dense<0.000000e+00> : vector<56x8xf32>
    %90 = tpu.matmul %86, %71, %cst_44 {dimension_numbers = #tpu.dot_dimension_numbers<[1], [0], [0], [1], [0, 0, 1, 1], [], []>} : vector<56x128xf32>, vector<128x8xf32>, vector<56x8xf32> -> vector<56x8xf32>
    %c16 = arith.constant 16 : index
    %c0_45 = arith.constant 0 : index
    %91 = vector.load %arg4[%c16, %c0_45] : memref<32x32xf32, #tpu.memory_space<vmem>>, vector<8x32xf32>
    %cst_46 = arith.constant dense<0.000000e+00> : vector<56x32xf32>
    %92 = tpu.matmul %90, %91, %cst_46 {dimension_numbers = #tpu.dot_dimension_numbers<[1], [0], [0], [1], [0, 0, 1, 1], [], []>} : vector<56x8xf32>, vector<8x32xf32>, vector<56x32xf32> -> vector<56x32xf32>
    %93 = arith.addf %68, %92 : vector<56x32xf32>
    %94 = vector.extract_strided_slice %13 {offsets = [0, 24], sizes = [56, 8], strides = [1, 1]} : vector<256x96xf32> to vector<56x8xf32>
    %95 = vector.extract_strided_slice %13 {offsets = [0, 56], sizes = [128, 8], strides = [1, 1]} : vector<256x96xf32> to vector<128x8xf32>
    %96 = vector.extract_strided_slice %13 {offsets = [0, 88], sizes = [128, 8], strides = [1, 1]} : vector<256x96xf32> to vector<128x8xf32>
    %cst_47 = arith.constant dense<0.000000e+00> : vector<56x128xf32>
    %97 = tpu.matmul %94, %95, %cst_47 {dimension_numbers = #tpu.dot_dimension_numbers<[1], [1], [0], [0], [0, 0, 1, 0], [], []>} : vector<56x8xf32>, vector<128x8xf32>, vector<56x128xf32> -> vector<56x128xf32>
    %cst_48 = arith.constant 0.353553385 : f32
    %98 = vector.broadcast %cst_48 : f32 to vector<56x128xf32>
    %99 = arith.mulf %97, %98 : vector<56x128xf32>
    %100 = vector.broadcast %19 : vector<1x128xf32> to vector<56x128xf32>
    %101 = arith.addf %99, %100 : vector<56x128xf32>
    %cst_49 = arith.constant dense<0xFF800000> : vector<56xf32>
    %102 = vector.multi_reduction <maximumf>, %101, %cst_49 [1] : vector<56x128xf32> to vector<56xf32>
    %103 = vector.shape_cast %102 : vector<56xf32> to vector<56x1xf32>
    %104 = vector.broadcast %103 : vector<56x1xf32> to vector<56x128xf32>
    %105 = arith.subf %101, %104 : vector<56x128xf32>
    %106 = math.exp %105 : vector<56x128xf32>
    %cst_50 = arith.constant dense<0.000000e+00> : vector<56xf32>
    %107 = vector.multi_reduction <add>, %106, %cst_50 [1] : vector<56x128xf32> to vector<56xf32>
    %108 = vector.shape_cast %107 : vector<56xf32> to vector<56x1xf32>
    %109 = tpu.reciprocal %108 {approx = true} : vector<56x1xf32> -> vector<56x1xf32>
    %110 = vector.broadcast %109 : vector<56x1xf32> to vector<56x128xf32>
    %111 = arith.mulf %106, %110 : vector<56x128xf32>
    %c0_51 = arith.constant 0 : index
    %c3 = arith.constant 3 : index
    %c0_52 = arith.constant 0 : index
    %c0_53 = arith.constant 0 : index
    %112 = vector.load %arg10[%c0_51, %c3, %c0_52, %c0_53] : memref<2x4x56x128xf32, #tpu.memory_space<vmem>>, vector<1x1x56x128xf32>
    %113 = vector.shape_cast %112 : vector<1x1x56x128xf32> to vector<56x128xf32>
    %114 = vector.shape_cast %111 : vector<56x128xf32> to vector<1x1x56x128xf32>
    tpu.vector_store %arg10[%c0_51, %c3, %c0_52, %c0_53], %114 {strides = array<i32>} : memref<2x4x56x128xf32, #tpu.memory_space<vmem>>, vector<1x1x56x128xf32>,
    %cst_54 = arith.constant dense<0.000000e+00> : vector<56x8xf32>
    %115 = tpu.matmul %111, %96, %cst_54 {dimension_numbers = #tpu.dot_dimension_numbers<[1], [0], [0], [1], [0, 0, 1, 1], [], []>} : vector<56x128xf32>, vector<128x8xf32>, vector<56x8xf32> -> vector<56x8xf32>
    %c24 = arith.constant 24 : index
    %c0_55 = arith.constant 0 : index
    %116 = vector.load %arg4[%c24, %c0_55] : memref<32x32xf32, #tpu.memory_space<vmem>>, vector<8x32xf32>
    %cst_56 = arith.constant dense<0.000000e+00> : vector<56x32xf32>
    %117 = tpu.matmul %115, %116, %cst_56 {dimension_numbers = #tpu.dot_dimension_numbers<[1], [0], [0], [1], [0, 0, 1, 1], [], []>} : vector<56x8xf32>, vector<8x32xf32>, vector<56x32xf32> -> vector<56x32xf32>
    %118 = arith.addf %93, %117 : vector<56x32xf32>
    %c0_57 = arith.constant 0 : index
    %c0_58 = arith.constant 0 : index
    %119 = vector.load %arg5[%c0_57, %c0_58] : memref<1x32xf32, #tpu.memory_space<vmem>>, vector<1x32xf32>
    %120 = vector.broadcast %119 : vector<1x32xf32> to vector<56x32xf32>
    %121 = arith.addf %118, %120 : vector<56x32xf32>
    %c0_59 = arith.constant 0 : index
    %c0_60 = arith.constant 0 : index
    %c0_61 = arith.constant 0 : index
    %122 = vector.load %arg9[%c0_59, %c0_60, %c0_61] : memref<2x56x32xf32, #tpu.memory_space<vmem>>, vector<1x56x32xf32>
    %123 = vector.shape_cast %122 : vector<1x56x32xf32> to vector<56x32xf32>
    %124 = vector.shape_cast %121 : vector<56x32xf32> to vector<1x56x32xf32>
    tpu.vector_store %arg9[%c0_59, %c0_60, %c0_61], %124 {strides = array<i32>} : memref<2x56x32xf32, #tpu.memory_space<vmem>>, vector<1x56x32xf32>,
    %125 = vector.extract_strided_slice %13 {offsets = [128, 0], sizes = [56, 8], strides = [1, 1]} : vector<256x96xf32> to vector<56x8xf32>
    %126 = vector.extract_strided_slice %13 {offsets = [128, 32], sizes = [128, 8], strides = [1, 1]} : vector<256x96xf32> to vector<128x8xf32>
    %127 = vector.extract_strided_slice %13 {offsets = [128, 64], sizes = [128, 8], strides = [1, 1]} : vector<256x96xf32> to vector<128x8xf32>
    %cst_62 = arith.constant dense<0.000000e+00> : vector<56x128xf32>
    %128 = tpu.matmul %125, %126, %cst_62 {dimension_numbers = #tpu.dot_dimension_numbers<[1], [1], [0], [0], [0, 0, 1, 0], [], []>} : vector<56x8xf32>, vector<128x8xf32>, vector<56x128xf32> -> vector<56x128xf32>
    %cst_63 = arith.constant 0.353553385 : f32
    %129 = vector.broadcast %cst_63 : f32 to vector<56x128xf32>
    %130 = arith.mulf %128, %129 : vector<56x128xf32>
    %131 = vector.broadcast %19 : vector<1x128xf32> to vector<56x128xf32>
    %132 = arith.addf %130, %131 : vector<56x128xf32>
    %cst_64 = arith.constant dense<0xFF800000> : vector<56xf32>
    %133 = vector.multi_reduction <maximumf>, %132, %cst_64 [1] : vector<56x128xf32> to vector<56xf32>
    %134 = vector.shape_cast %133 : vector<56xf32> to vector<56x1xf32>
    %135 = vector.broadcast %134 : vector<56x1xf32> to vector<56x128xf32>
    %136 = arith.subf %132, %135 : vector<56x128xf32>
    %137 = math.exp %136 : vector<56x128xf32>
    %cst_65 = arith.constant dense<0.000000e+00> : vector<56xf32>
    %138 = vector.multi_reduction <add>, %137, %cst_65 [1] : vector<56x128xf32> to vector<56xf32>
    %139 = vector.shape_cast %138 : vector<56xf32> to vector<56x1xf32>
    %140 = tpu.reciprocal %139 {approx = true} : vector<56x1xf32> -> vector<56x1xf32>
    %141 = vector.broadcast %140 : vector<56x1xf32> to vector<56x128xf32>
    %142 = arith.mulf %137, %141 : vector<56x128xf32>
    %c1_66 = arith.constant 1 : index
    %c0_67 = arith.constant 0 : index
    %c0_68 = arith.constant 0 : index
    %c0_69 = arith.constant 0 : index
    %143 = vector.load %arg10[%c1_66, %c0_67, %c0_68, %c0_69] : memref<2x4x56x128xf32, #tpu.memory_space<vmem>>, vector<1x1x56x128xf32>
    %144 = vector.shape_cast %143 : vector<1x1x56x128xf32> to vector<56x128xf32>
    %145 = vector.shape_cast %142 : vector<56x128xf32> to vector<1x1x56x128xf32>
    tpu.vector_store %arg10[%c1_66, %c0_67, %c0_68, %c0_69], %145 {strides = array<i32>} : memref<2x4x56x128xf32, #tpu.memory_space<vmem>>, vector<1x1x56x128xf32>,
    %cst_70 = arith.constant dense<0.000000e+00> : vector<56x8xf32>
    %146 = tpu.matmul %142, %127, %cst_70 {dimension_numbers = #tpu.dot_dimension_numbers<[1], [0], [0], [1], [0, 0, 1, 1], [], []>} : vector<56x128xf32>, vector<128x8xf32>, vector<56x8xf32> -> vector<56x8xf32>
    %c0_71 = arith.constant 0 : index
    %c0_72 = arith.constant 0 : index
    %147 = vector.load %arg4[%c0_71, %c0_72] : memref<32x32xf32, #tpu.memory_space<vmem>>, vector<8x32xf32>
    %cst_73 = arith.constant dense<0.000000e+00> : vector<56x32xf32>
    %148 = tpu.matmul %146, %147, %cst_73 {dimension_numbers = #tpu.dot_dimension_numbers<[1], [0], [0], [1], [0, 0, 1, 1], [], []>} : vector<56x8xf32>, vector<8x32xf32>, vector<56x32xf32> -> vector<56x32xf32>
    %149 = vector.extract_strided_slice %13 {offsets = [128, 8], sizes = [56, 8], strides = [1, 1]} : vector<256x96xf32> to vector<56x8xf32>
    %150 = vector.extract_strided_slice %13 {offsets = [128, 40], sizes = [128, 8], strides = [1, 1]} : vector<256x96xf32> to vector<128x8xf32>
    %151 = vector.extract_strided_slice %13 {offsets = [128, 72], sizes = [128, 8], strides = [1, 1]} : vector<256x96xf32> to vector<128x8xf32>
    %cst_74 = arith.constant dense<0.000000e+00> : vector<56x128xf32>
    %152 = tpu.matmul %149, %150, %cst_74 {dimension_numbers = #tpu.dot_dimension_numbers<[1], [1], [0], [0], [0, 0, 1, 0], [], []>} : vector<56x8xf32>, vector<128x8xf32>, vector<56x128xf32> -> vector<56x128xf32>
    %cst_75 = arith.constant 0.353553385 : f32
    %153 = vector.broadcast %cst_75 : f32 to vector<56x128xf32>
    %154 = arith.mulf %152, %153 : vector<56x128xf32>
    %155 = vector.broadcast %19 : vector<1x128xf32> to vector<56x128xf32>
    %156 = arith.addf %154, %155 : vector<56x128xf32>
    %cst_76 = arith.constant dense<0xFF800000> : vector<56xf32>
    %157 = vector.multi_reduction <maximumf>, %156, %cst_76 [1] : vector<56x128xf32> to vector<56xf32>
    %158 = vector.shape_cast %157 : vector<56xf32> to vector<56x1xf32>
    %159 = vector.broadcast %158 : vector<56x1xf32> to vector<56x128xf32>
    %160 = arith.subf %156, %159 : vector<56x128xf32>
    %161 = math.exp %160 : vector<56x128xf32>
    %cst_77 = arith.constant dense<0.000000e+00> : vector<56xf32>
    %162 = vector.multi_reduction <add>, %161, %cst_77 [1] : vector<56x128xf32> to vector<56xf32>
    %163 = vector.shape_cast %162 : vector<56xf32> to vector<56x1xf32>
    %164 = tpu.reciprocal %163 {approx = true} : vector<56x1xf32> -> vector<56x1xf32>
    %165 = vector.broadcast %164 : vector<56x1xf32> to vector<56x128xf32>
    %166 = arith.mulf %161, %165 : vector<56x128xf32>
    %c1_78 = arith.constant 1 : index
    %c1_79 = arith.constant 1 : index
    %c0_80 = arith.constant 0 : index
    %c0_81 = arith.constant 0 : index
    %167 = vector.load %arg10[%c1_78, %c1_79, %c0_80, %c0_81] : memref<2x4x56x128xf32, #tpu.memory_space<vmem>>, vector<1x1x56x128xf32>
    %168 = vector.shape_cast %167 : vector<1x1x56x128xf32> to vector<56x128xf32>
    %169 = vector.shape_cast %166 : vector<56x128xf32> to vector<1x1x56x128xf32>
    tpu.vector_store %arg10[%c1_78, %c1_79, %c0_80, %c0_81], %169 {strides = array<i32>} : memref<2x4x56x128xf32, #tpu.memory_space<vmem>>, vector<1x1x56x128xf32>,
    %cst_82 = arith.constant dense<0.000000e+00> : vector<56x8xf32>
    %170 = tpu.matmul %166, %151, %cst_82 {dimension_numbers = #tpu.dot_dimension_numbers<[1], [0], [0], [1], [0, 0, 1, 1], [], []>} : vector<56x128xf32>, vector<128x8xf32>, vector<56x8xf32> -> vector<56x8xf32>
    %c8_83 = arith.constant 8 : index
    %c0_84 = arith.constant 0 : index
    %171 = vector.load %arg4[%c8_83, %c0_84] : memref<32x32xf32, #tpu.memory_space<vmem>>, vector<8x32xf32>
    %cst_85 = arith.constant dense<0.000000e+00> : vector<56x32xf32>
    %172 = tpu.matmul %170, %171, %cst_85 {dimension_numbers = #tpu.dot_dimension_numbers<[1], [0], [0], [1], [0, 0, 1, 1], [], []>} : vector<56x8xf32>, vector<8x32xf32>, vector<56x32xf32> -> vector<56x32xf32>
    %173 = arith.addf %148, %172 : vector<56x32xf32>
    %174 = vector.extract_strided_slice %13 {offsets = [128, 16], sizes = [56, 8], strides = [1, 1]} : vector<256x96xf32> to vector<56x8xf32>
    %175 = vector.extract_strided_slice %13 {offsets = [128, 48], sizes = [128, 8], strides = [1, 1]} : vector<256x96xf32> to vector<128x8xf32>
    %176 = vector.extract_strided_slice %13 {offsets = [128, 80], sizes = [128, 8], strides = [1, 1]} : vector<256x96xf32> to vector<128x8xf32>
    %cst_86 = arith.constant dense<0.000000e+00> : vector<56x128xf32>
    %177 = tpu.matmul %174, %175, %cst_86 {dimension_numbers = #tpu.dot_dimension_numbers<[1], [1], [0], [0], [0, 0, 1, 0], [], []>} : vector<56x8xf32>, vector<128x8xf32>, vector<56x128xf32> -> vector<56x128xf32>
    %cst_87 = arith.constant 0.353553385 : f32
    %178 = vector.broadcast %cst_87 : f32 to vector<56x128xf32>
    %179 = arith.mulf %177, %178 : vector<56x128xf32>
    %180 = vector.broadcast %19 : vector<1x128xf32> to vector<56x128xf32>
    %181 = arith.addf %179, %180 : vector<56x128xf32>
    %cst_88 = arith.constant dense<0xFF800000> : vector<56xf32>
    %182 = vector.multi_reduction <maximumf>, %181, %cst_88 [1] : vector<56x128xf32> to vector<56xf32>
    %183 = vector.shape_cast %182 : vector<56xf32> to vector<56x1xf32>
    %184 = vector.broadcast %183 : vector<56x1xf32> to vector<56x128xf32>
    %185 = arith.subf %181, %184 : vector<56x128xf32>
    %186 = math.exp %185 : vector<56x128xf32>
    %cst_89 = arith.constant dense<0.000000e+00> : vector<56xf32>
    %187 = vector.multi_reduction <add>, %186, %cst_89 [1] : vector<56x128xf32> to vector<56xf32>
    %188 = vector.shape_cast %187 : vector<56xf32> to vector<56x1xf32>
    %189 = tpu.reciprocal %188 {approx = true} : vector<56x1xf32> -> vector<56x1xf32>
    %190 = vector.broadcast %189 : vector<56x1xf32> to vector<56x128xf32>
    %191 = arith.mulf %186, %190 : vector<56x128xf32>
    %c1_90 = arith.constant 1 : index
    %c2_91 = arith.constant 2 : index
    %c0_92 = arith.constant 0 : index
    %c0_93 = arith.constant 0 : index
    %192 = vector.load %arg10[%c1_90, %c2_91, %c0_92, %c0_93] : memref<2x4x56x128xf32, #tpu.memory_space<vmem>>, vector<1x1x56x128xf32>
    %193 = vector.shape_cast %192 : vector<1x1x56x128xf32> to vector<56x128xf32>
    %194 = vector.shape_cast %191 : vector<56x128xf32> to vector<1x1x56x128xf32>
    tpu.vector_store %arg10[%c1_90, %c2_91, %c0_92, %c0_93], %194 {strides = array<i32>} : memref<2x4x56x128xf32, #tpu.memory_space<vmem>>, vector<1x1x56x128xf32>,
    %cst_94 = arith.constant dense<0.000000e+00> : vector<56x8xf32>
    %195 = tpu.matmul %191, %176, %cst_94 {dimension_numbers = #tpu.dot_dimension_numbers<[1], [0], [0], [1], [0, 0, 1, 1], [], []>} : vector<56x128xf32>, vector<128x8xf32>, vector<56x8xf32> -> vector<56x8xf32>
    %c16_95 = arith.constant 16 : index
    %c0_96 = arith.constant 0 : index
    %196 = vector.load %arg4[%c16_95, %c0_96] : memref<32x32xf32, #tpu.memory_space<vmem>>, vector<8x32xf32>
    %cst_97 = arith.constant dense<0.000000e+00> : vector<56x32xf32>
    %197 = tpu.matmul %195, %196, %cst_97 {dimension_numbers = #tpu.dot_dimension_numbers<[1], [0], [0], [1], [0, 0, 1, 1], [], []>} : vector<56x8xf32>, vector<8x32xf32>, vector<56x32xf32> -> vector<56x32xf32>
    %198 = arith.addf %173, %197 : vector<56x32xf32>
    %199 = vector.extract_strided_slice %13 {offsets = [128, 24], sizes = [56, 8], strides = [1, 1]} : vector<256x96xf32> to vector<56x8xf32>
    %200 = vector.extract_strided_slice %13 {offsets = [128, 56], sizes = [128, 8], strides = [1, 1]} : vector<256x96xf32> to vector<128x8xf32>
    %201 = vector.extract_strided_slice %13 {offsets = [128, 88], sizes = [128, 8], strides = [1, 1]} : vector<256x96xf32> to vector<128x8xf32>
    %cst_98 = arith.constant dense<0.000000e+00> : vector<56x128xf32>
    %202 = tpu.matmul %199, %200, %cst_98 {dimension_numbers = #tpu.dot_dimension_numbers<[1], [1], [0], [0], [0, 0, 1, 0], [], []>} : vector<56x8xf32>, vector<128x8xf32>, vector<56x128xf32> -> vector<56x128xf32>
    %cst_99 = arith.constant 0.353553385 : f32
    %203 = vector.broadcast %cst_99 : f32 to vector<56x128xf32>
    %204 = arith.mulf %202, %203 : vector<56x128xf32>
    %205 = vector.broadcast %19 : vector<1x128xf32> to vector<56x128xf32>
    %206 = arith.addf %204, %205 : vector<56x128xf32>
    %cst_100 = arith.constant dense<0xFF800000> : vector<56xf32>
    %207 = vector.multi_reduction <maximumf>, %206, %cst_100 [1] : vector<56x128xf32> to vector<56xf32>
    %208 = vector.shape_cast %207 : vector<56xf32> to vector<56x1xf32>
    %209 = vector.broadcast %208 : vector<56x1xf32> to vector<56x128xf32>
    %210 = arith.subf %206, %209 : vector<56x128xf32>
    %211 = math.exp %210 : vector<56x128xf32>
    %cst_101 = arith.constant dense<0.000000e+00> : vector<56xf32>
    %212 = vector.multi_reduction <add>, %211, %cst_101 [1] : vector<56x128xf32> to vector<56xf32>
    %213 = vector.shape_cast %212 : vector<56xf32> to vector<56x1xf32>
    %214 = tpu.reciprocal %213 {approx = true} : vector<56x1xf32> -> vector<56x1xf32>
    %215 = vector.broadcast %214 : vector<56x1xf32> to vector<56x128xf32>
    %216 = arith.mulf %211, %215 : vector<56x128xf32>
    %c1_102 = arith.constant 1 : index
    %c3_103 = arith.constant 3 : index
    %c0_104 = arith.constant 0 : index
    %c0_105 = arith.constant 0 : index
    %217 = vector.load %arg10[%c1_102, %c3_103, %c0_104, %c0_105] : memref<2x4x56x128xf32, #tpu.memory_space<vmem>>, vector<1x1x56x128xf32>
    %218 = vector.shape_cast %217 : vector<1x1x56x128xf32> to vector<56x128xf32>
    %219 = vector.shape_cast %216 : vector<56x128xf32> to vector<1x1x56x128xf32>
    tpu.vector_store %arg10[%c1_102, %c3_103, %c0_104, %c0_105], %219 {strides = array<i32>} : memref<2x4x56x128xf32, #tpu.memory_space<vmem>>, vector<1x1x56x128xf32>,
    %cst_106 = arith.constant dense<0.000000e+00> : vector<56x8xf32>
    %220 = tpu.matmul %216, %201, %cst_106 {dimension_numbers = #tpu.dot_dimension_numbers<[1], [0], [0], [1], [0, 0, 1, 1], [], []>} : vector<56x128xf32>, vector<128x8xf32>, vector<56x8xf32> -> vector<56x8xf32>
    %c24_107 = arith.constant 24 : index
    %c0_108 = arith.constant 0 : index
    %221 = vector.load %arg4[%c24_107, %c0_108] : memref<32x32xf32, #tpu.memory_space<vmem>>, vector<8x32xf32>
    %cst_109 = arith.constant dense<0.000000e+00> : vector<56x32xf32>
    %222 = tpu.matmul %220, %221, %cst_109 {dimension_numbers = #tpu.dot_dimension_numbers<[1], [0], [0], [1], [0, 0, 1, 1], [], []>} : vector<56x8xf32>, vector<8x32xf32>, vector<56x32xf32> -> vector<56x32xf32>
    %223 = arith.addf %198, %222 : vector<56x32xf32>
    %c0_110 = arith.constant 0 : index
    %c0_111 = arith.constant 0 : index
    %224 = vector.load %arg5[%c0_110, %c0_111] : memref<1x32xf32, #tpu.memory_space<vmem>>, vector<1x32xf32>
    %225 = vector.broadcast %224 : vector<1x32xf32> to vector<56x32xf32>
    %226 = arith.addf %223, %225 : vector<56x32xf32>
    %c1_112 = arith.constant 1 : index
    %c0_113 = arith.constant 0 : index
    %c0_114 = arith.constant 0 : index
    %227 = vector.load %arg9[%c1_112, %c0_113, %c0_114] : memref<2x56x32xf32, #tpu.memory_space<vmem>>, vector<1x56x32xf32>
    %228 = vector.shape_cast %227 : vector<1x56x32xf32> to vector<56x32xf32>
    %229 = vector.shape_cast %226 : vector<56x32xf32> to vector<1x56x32xf32>
    tpu.vector_store %arg9[%c1_112, %c0_113, %c0_114], %229 {strides = array<i32>} : memref<2x56x32xf32, #tpu.memory_space<vmem>>, vector<1x56x32xf32>,
    return
  }
  func.func @transform_0(%arg0: i32) -> (i32, i32, i32) {
    %c0_i32 = arith.constant 0 : i32
    %c0_i32_0 = arith.constant 0 : i32
    %c0_i32_1 = arith.constant 0 : i32
    return %arg0, %c0_i32, %c0_i32_0 : i32, i32, i32
  }
  func.func @transform_1(%arg0: i32) -> (i32, i32) {
    %c0_i32 = arith.constant 0 : i32
    %c0_i32_0 = arith.constant 0 : i32
    %c0_i32_1 = arith.constant 0 : i32
    return %c0_i32, %c0_i32_0 : i32, i32
  }
  func.func @transform_2(%arg0: i32) -> (i32, i32) {
    %c0_i32 = arith.constant 0 : i32
    %c0_i32_0 = arith.constant 0 : i32
    %c0_i32_1 = arith.constant 0 : i32
    return %c0_i32, %c0_i32_0 : i32, i32
  }
  func.func @transform_3(%arg0: i32) -> (i32, i32) {
    %c0_i32 = arith.constant 0 : i32
    %c0_i32_0 = arith.constant 0 : i32
    %c0_i32_1 = arith.constant 0 : i32
    return %c0_i32, %c0_i32_0 : i32, i32
  }
  func.func @transform_4(%arg0: i32) -> (i32, i32) {
    %c0_i32 = arith.constant 0 : i32
    %c0_i32_0 = arith.constant 0 : i32
    %c0_i32_1 = arith.constant 0 : i32
    return %c0_i32, %c0_i32_0 : i32, i32
  }
  func.func @transform_5(%arg0: i32) -> (i32, i32) {
    %c0_i32 = arith.constant 0 : i32
    %c0_i32_0 = arith.constant 0 : i32
    %c0_i32_1 = arith.constant 0 : i32
    return %c0_i32, %c0_i32_0 : i32, i32
  }
  func.func @transform_6(%arg0: i32) -> (i32, i32) {
    %c0_i32 = arith.constant 0 : i32
    %c0_i32_0 = arith.constant 0 : i32
    %c0_i32_1 = arith.constant 0 : i32
    return %c0_i32, %c0_i32_0 : i32, i32
  }
  func.func @transform_7(%arg0: i32) -> (i32, i32) {
    %c0_i32 = arith.constant 0 : i32
    %c0_i32_0 = arith.constant 0 : i32
    %c0_i32_1 = arith.constant 0 : i32
    return %c0_i32, %c0_i32_0 : i32, i32
  }
  func.func @transform_8(%arg0: i32) -> (i32, i32, i32) {
    %c0_i32 = arith.constant 0 : i32
    %c0_i32_0 = arith.constant 0 : i32
    %c0_i32_1 = arith.constant 0 : i32
    return %arg0, %c0_i32, %c0_i32_0 : i32, i32, i32
  }
  func.func @transform_9(%arg0: i32) -> (i32, i32, i32, i32) {
    %c0_i32 = arith.constant 0 : i32
    %c0_i32_0 = arith.constant 0 : i32
    %c0_i32_1 = arith.constant 0 : i32
    %c0_i32_2 = arith.constant 0 : i32
    return %arg0, %c0_i32, %c0_i32_0, %c0_i32_1 : i32, i32, i32, i32
  }
}

</mosaic_0001>

<bundles_post_ra>
// kernel: tpu_custom_call.1
= control target key start
LH: loop header
LB: loop body
LE: loop exit
PB: predicated region body
PF: predicated region fallthrough
CT: control target
= control target key end

     0   :  { %s6873_s0 = inlined_call_operand.vmem [shape: f32[2,128,32], index: 0, kind: input, shape index: {}]   ;;  %s6874_s1 = inlined_call_operand.vmem [shape: f32[32,96], index: 1, kind: input, shape index: {}]   ;;  %s6875_s2 = inlined_call_operand.vmem [shape: f32[1,96], index: 2, kind: input, shape index: {}]   ;;  %s6876_s3 = inlined_call_operand.vmem [shape: f32[32,32], index: 3, kind: input, shape index: {}]   ;;  %s6877_s4 = inlined_call_operand.vmem [shape: f32[1,32], index: 4, kind: input, shape index: {}]   ;;  %s6878_s5 = inlined_call_operand.vmem [shape: f32[256,96], index: 5, kind: input, shape index: {}]   ;;  %s6879_s6 = inlined_call_operand.vmem [shape: f32[256,96], index: 6, kind: input, shape index: {}]   ;;  %s6880_s7 = inlined_call_operand.vmem [shape: f32[96,96], index: 7, kind: input, shape index: {}]   ;;  %s6881_s8 = inlined_call_operand.vmem [shape: f32[2,56,32], index: 8, kind: output, shape index: {0}]   ;;  %s6882_s9 = inlined_call_operand.hbm [shape: f32[2,4,56,128], index: 9, kind: output, shape index: {1}]  }
   0x1   :  { %v67_v0 = vld [vmem:[%s6874_s1 + $0x18] sm:$0xff]  ;;  %v66_v1 = vld [vmem:[%s6874_s1 + $0x10] sm:$0xff]  ;;  %v65_v2 = vld [vmem:[%s6874_s1 + $0x8] sm:$0xff] }
   0x2   :  { %181 = vmatpush.msra.mxu0 %v67_v0  ;;  %v64_v3 = vld [vmem:[%s6874_s1] sm:$0xff] }
   0x4   :  { %182 = vmatpush.msra.mxu0 %v66_v1 }
   0x5   :  { %15 = vsyncpa [#allocation3], 0  ;;  %v32_v4 = vld [vmem:[%s6873_s0] sm:$0xff]  ;;  %vm72_vm0 = vcmask 261120   ;;  %v33_v5 = vld [vmem:[%s6873_s0 + $0x8] sm:$0xff]  ;;  %vm294_vm1 = vcmask 785408  }
   0x6   :  { %183 = vmatpush.msra.mxu0 %v65_v2  ;;  %v34_v6 = vld [vmem:[%s6873_s0 + $0x10] sm:$0xff]  ;;  %v35_v7 = vld [vmem:[%s6873_s0 + $0x18] sm:$0xff]  ;;  %v36_v8 = vld [vmem:[%s6873_s0 + $0x20] sm:$0xff]  ;;  %s4558_s20 = smov 96   ;;  %s4560_s22 = smov 88   ;;  %vm716_vm2 = vcmask 64512  }
   0x7   :  { %v37_v9 = vld [vmem:[%s6873_s0 + $0x28] sm:$0xff]  ;;  %v38_v10 = vld [vmem:[%s6873_s0 + $0x30] sm:$0xff]  ;;  %v39_v11 = vld [vmem:[%s6873_s0 + $0x38] sm:$0xff]  ;;  %s4562_s10 = smov 120   ;;  %s4563_s11 = smov 56  }
   0x8   :  { %184 = vmatpush.msra.mxu0 %v64_v3  ;;  %v40_v12 = vld [vmem:[%s6873_s0 + $0x40] sm:$0xff]  ;;  %v41_v13 = vld [vmem:[%s6873_s0 + $0x48] sm:$0xff]  ;;  %v42_v14 = vld [vmem:[%s6873_s0 + $0x50] sm:$0xff]  ;;  %s4564_s12 = smov 80   ;;  %s4565_s13 = smov 112  }
   0x9   :  { %3647 = vmatmul.msk.f32.vlgmr.msra.gmra.mxu0 %vm72_vm0, %v32_v4  ;;  %v293_v15 = vld [vmem:[%s6880_s7 + $0x58] sm:$0xff]  ;;  %v292_v16 = vld [vmem:[%s6880_s7 + $0x50] sm:$0xff]  ;;  %v291_v17 = vld [vmem:[%s6880_s7 + $0x48] sm:$0xff]  ;;  %s4567_s14 = smov 72   ;;  %s4568_s29 = smov 104  }
   0xa   :  { %3958 = vmatpush.msra.mxu1 %v293_v15  ;;  %395 = vmatpush.msrb.mxu0 %v293_v15  ;;  %v290_v18 = vld [vmem:[%s6880_s7 + $0x40] sm:$0xff]  ;;  %v43_v19 = vld [vmem:[%s6873_s0 + $0x58] sm:$0xff]  ;;  %v288_v21 = vld [vmem:[%s6880_s7 + $0x30] sm:$0xff] }
   0xb   :  { %v289_v20 = vld [vmem:[%s6880_s7 + $0x38] sm:$0xff]  ;;  %v287_v22 = vld [vmem:[%s6880_s7 + $0x28] sm:$0xff]  ;;  %v44_v23 = vld [vmem:[%s6873_s0 + $0x60] sm:$0xff] }
   0xc   :  { %3959 = vmatpush.msra.mxu1 %v292_v16  ;;  %396 = vmatpush.msrb.mxu0 %v292_v16  ;;  %v286_v24 = vld [vmem:[%s6880_s7 + $0x20] sm:$0xff]  ;;  %v285_v25 = vld [vmem:[%s6880_s7 + $0x18] sm:$0xff]  ;;  %v284_v26 = vld [vmem:[%s6880_s7 + $0x10] sm:$0xff] }
   0xd   :  { %v283_v27 = vld [vmem:[%s6880_s7 + $0x8] sm:$0xff]  ;;  %v282_v29 = vld [vmem:[%s6880_s7] sm:$0xff]  ;;  %v46_v30 = vld [vmem:[%s6873_s0 + $0x70] sm:$0xff] }
   0xe   :  { %3960 = vmatpush.msra.mxu1 %v291_v17  ;;  %397 = vmatpush.msrb.mxu0 %v291_v17  ;;  %v45_v28 = vld [vmem:[%s6873_s0 + $0x68] sm:$0xff]  ;;  %v47_v31 = vld [vmem:[%s6873_s0 + $0x78] sm:$0xff]  ;;  %v48_v33 = vld [vmem:[%s6873_s0 + $0x80] sm:$0xff] }
   0xf   :  { %v4744_v34 = vld [vmem:[%s6875_s2] ss:$0 sm:$0xff]  ;;  %v49_v36 = vld [vmem:[%s6873_s0 + $0x88] sm:$0xff]  ;;  %v50_v39 = vld [vmem:[%s6873_s0 + $0x90] sm:$0xff]  ;;  %s4566_s2 = smov 48  }
  0x10   :  { %3961 = vmatpush.msra.mxu1 %v290_v18  ;;  %398 = vmatpush.msrb.mxu0 %v290_v18  ;;  %v51_v42 = vld [vmem:[%s6873_s0 + $0x98] sm:$0xff]  ;;  %v52_v45 = vld [vmem:[%s6873_s0 + $0xa0] sm:$0xff]  ;;  %v53_v48 = vld [vmem:[%s6873_s0 + $0xa8] sm:$0xff] }
  0x11   :  { %3648 = vmatmul.msk.f32.gmra.mxu0 %vm72_vm0, %v33_v5  ;;  %v54_v51 = vld [vmem:[%s6873_s0 + $0xb0] sm:$0xff]  ;;  %v55_v54 = vld [vmem:[%s6873_s0 + $0xb8] sm:$0xff]  ;;  %v56_v57 = vld [vmem:[%s6873_s0 + $0xc0] sm:$0xff] }
  0x12   :  { %3962 = vmatpush.msra.mxu1 %v289_v20  ;;  %399 = vmatpush.msrb.mxu0 %v289_v20  ;;  %v57_v60 = vld [vmem:[%s6873_s0 + $0xc8] sm:$0xff]  ;;  %v58_v63 = vld [vmem:[%s6873_s0 + $0xd0] sm:$0xff]  ;;  %v59_v2 = vld [vmem:[%s6873_s0 + $0xd8] sm:$0xff] }
  0x13   :  { %v60_v5 = vld [vmem:[%s6873_s0 + $0xe0] sm:$0xff] }
  0x14   :  { %3963 = vmatpush.msra.mxu1 %v288_v21  ;;  %400 = vmatpush.msrb.mxu0 %v288_v21 }
  0x16   :  { %3964 = vmatpush.msra.mxu1 %v287_v22  ;;  %401 = vmatpush.msrb.mxu0 %v287_v22 }
  0x18   :  { %3965 = vmatpush.msra.mxu1 %v286_v24  ;;  %402 = vmatpush.msrb.mxu0 %v286_v24 }
  0x19   :  { %3649 = vmatmul.msk.f32.gmra.mxu0 %vm72_vm0, %v34_v6 }
  0x1a   :  { %3966 = vmatpush.msra.mxu1 %v285_v25  ;;  %403 = vmatpush.msrb.mxu0 %v285_v25 }
  0x1c   :  { %3967 = vmatpush.msra.mxu1 %v284_v26  ;;  %404 = vmatpush.msrb.mxu0 %v284_v26 }
  0x1e   :  { %3968 = vmatpush.msra.mxu1 %v283_v27  ;;  %405 = vmatpush.msrb.mxu0 %v283_v27 }
  0x20   :  { %3969 = vmatpush.msra.mxu1 %v282_v29  ;;  %406 = vmatpush.msrb.mxu0 %v282_v29 }
  0x21   :  { %3650 = vmatmul.msk.f32.gmra.mxu0 %vm72_vm0, %v35_v7 }
  0x29   :  { %3651 = vmatmul.msk.f32.gmra.mxu0 %vm72_vm0, %v36_v8  ;;  %v61_v8 = vld [vmem:[%s6873_s0 + $0xe8] sm:$0xff] }
  0x31   :  { %3652 = vmatmul.msk.f32.gmra.mxu0 %vm72_vm0, %v37_v9 }
  0x39   :  { %3653 = vmatmul.msk.f32.gmra.mxu0 %vm72_vm0, %v38_v10 }
  0x41   :  { %3654 = vmatmul.msk.f32.gmra.mxu0 %vm72_vm0, %v39_v11  ;;  %v62_v11 = vld [vmem:[%s6873_s0 + $0xf0] sm:$0xff] }
  0x49   :  { %3655 = vmatmul.msk.f32.gmra.mxu0 %vm72_vm0, %v40_v12 }
  0x51   :  { %3656 = vmatmul.msk.f32.gmra.mxu0 %vm72_vm0, %v41_v13 }
  0x59   :  { %3657 = vmatmul.msk.f32.gmra.mxu0 %vm72_vm0, %v42_v14  ;;  %v63_v14 = vld [vmem:[%s6873_s0 + $0xf8] sm:$0xff]  ;;  %s4559_s0 = smov 64  }
  0x61   :  { %3658 = vmatmul.msk.f32.gmra.mxu0 %vm72_vm0, %v43_v19 }
  0x69   :  { %3659 = vmatmul.msk.f32.gmra.mxu0 %vm72_vm0, %v44_v23 }
  0x71   :  { %3660 = vmatmul.msk.f32.gmra.mxu0 %vm72_vm0, %v45_v28 }
  0x79   :  { %3661 = vmatmul.msk.f32.gmra.mxu0 %vm72_vm0, %v46_v30 }
  0x81   :  { %3662 = vmatmul.msk.f32.gmra.mxu0 %vm72_vm0, %v47_v31 }
  0x86   :  { %v4735_v32 = vpop.f32.mrf.mxu0 }
  0x87   :  { %v4883_v17 = vadd.f32 %v4744_v34, %v4735_v32 }
  0x89   :  { %3663 = vmatmul.msk.f32.gmra.mxu0 %vm72_vm0, %v48_v33 }
  0x8e   :  { %v189_v35 = vpop.f32.mrf.mxu0 }
  0x8f   :  { %v4750_v37 = vadd.f32 %v4744_v34, %v189_v35 }
  0x91   :  { %3664 = vmatmul.msk.f32.gmra.mxu0 %vm72_vm0, %v49_v36  ;;  %3680 = vmatmul.msk.f32.vlgmr.msra.gmra.mxu1 %vm294_vm1, %v4750_v37 }
  0x96   :  { %v192_v38 = vpop.f32.mrf.mxu0 }
  0x97   :  { %v4759_v40 = vadd.f32 %v4744_v34, %v192_v38 }
  0x99   :  { %3665 = vmatmul.msk.f32.gmra.mxu0 %vm72_vm0, %v50_v39  ;;  %3681 = vmatmul.msk.f32.gmra.mxu1 %vm294_vm1, %v4759_v40 }
  0x9e   :  { %v195_v41 = vpop.f32.mrf.mxu0 }
  0x9f   :  { %v4768_v43 = vadd.f32 %v4744_v34, %v195_v41 }
  0xa1   :  { %3666 = vmatmul.msk.f32.gmra.mxu0 %vm72_vm0, %v51_v42  ;;  %3682 = vmatmul.msk.f32.gmra.mxu1 %vm294_vm1, %v4768_v43 }
  0xa6   :  { %v198_v44 = vpop.f32.mrf.mxu0 }
  0xa7   :  { %v4777_v46 = vadd.f32 %v4744_v34, %v198_v44 }
  0xa9   :  { %3667 = vmatmul.msk.f32.gmra.mxu0 %vm72_vm0, %v52_v45  ;;  %3683 = vmatmul.msk.f32.gmra.mxu1 %vm294_vm1, %v4777_v46 }
  0xae   :  { %v201_v47 = vpop.f32.mrf.mxu0 }
  0xaf   :  { %v4786_v49 = vadd.f32 %v4744_v34, %v201_v47 }
  0xb1   :  { %3668 = vmatmul.msk.f32.gmra.mxu0 %vm72_vm0, %v53_v48  ;;  %3684 = vmatmul.msk.f32.gmra.mxu1 %vm294_vm1, %v4786_v49 }
  0xb6   :  { %v204_v50 = vpop.f32.mrf.mxu0 }
  0xb7   :  { %v4795_v52 = vadd.f32 %v4744_v34, %v204_v50 }
  0xb9   :  { %3669 = vmatmul.msk.f32.gmra.mxu0 %vm72_vm0, %v54_v51  ;;  %3685 = vmatmul.msk.f32.gmra.mxu1 %vm294_vm1, %v4795_v52 }
  0xbe   :  { %v207_v53 = vpop.f32.mrf.mxu0 }
  0xbf   :  { %v4804_v55 = vadd.f32 %v4744_v34, %v207_v53 }
  0xc1   :  { %3670 = vmatmul.msk.f32.gmra.mxu0 %vm72_vm0, %v55_v54  ;;  %3686 = vmatmul.msk.f32.gmra.mxu1 %vm294_vm1, %v4804_v55 }
  0xc6   :  { %v210_v56 = vpop.f32.mrf.mxu0 }
  0xc7   :  { %v4813_v58 = vadd.f32 %v4744_v34, %v210_v56 }
  0xc9   :  { %3671 = vmatmul.msk.f32.gmra.mxu0 %vm72_vm0, %v56_v57  ;;  %3687 = vmatmul.msk.f32.gmra.mxu1 %vm294_vm1, %v4813_v58  ;;  %v515_v57 = vld [vmem:[%s6878_s5 + $0x58] sm:$0xff] }
  0xce   :  { %v213_v59 = vpop.f32.mrf.mxu0 }
  0xcf   :  { %v4822_v61 = vadd.f32 %v4744_v34, %v213_v59  ;;  %v579_v59 = vld [vmem:[%s6879_s6 + $0x58] sm:$0xff] }
  0xd1   :  { %3672 = vmatmul.msk.f32.gmra.mxu0 %vm72_vm0, %v57_v60  ;;  %3688 = vmatmul.msk.f32.gmra.mxu1 %vm294_vm1, %v4822_v61 }
  0xd6   :  { %v216_v62 = vpop.f32.mrf.mxu0 }
  0xd7   :  { %v4831_v0 = vadd.f32 %v4744_v34, %v216_v62 }
  0xd9   :  { %3673 = vmatmul.msk.f32.gmra.mxu0 %vm72_vm0, %v58_v63  ;;  %3689 = vmatmul.msk.f32.gmra.mxu1 %vm294_vm1, %v4831_v0 }
  0xde   :  { %v219_v1 = vpop.f32.mrf.mxu0 }
  0xdf   :  { %v4840_v3 = vadd.f32 %v4744_v34, %v219_v1 }
  0xe1   :  { %3674 = vmatmul.msk.f32.gmra.mxu0 %vm72_vm0, %v59_v2  ;;  %3690 = vmatmul.msk.f32.gmra.mxu1 %vm294_vm1, %v4840_v3  ;;  %v547_v63 = vmul.f32 %v515_v57, %v4840_v3  ;;  %v514_v3 = vld [vmem:[%s6878_s5 + $0x50] sm:$0xff]  ;;  %v516_v57 = vld [vmem:[%s6878_s5 + $0x60] sm:$0xff] }
  0xe6   :  { %v222_v4 = vpop.f32.mrf.mxu0 }
  0xe7   :  { %v4849_v6 = vadd.f32 %v4744_v34, %v222_v4 }
  0xe9   :  { %3675 = vmatmul.msk.f32.gmra.mxu0 %vm72_vm0, %v60_v5  ;;  %3691 = vmatmul.msk.f32.gmra.mxu1 %vm294_vm1, %v4849_v6  ;;  %v578_v5 = vld [vmem:[%s6879_s6 + $0x50] sm:$0xff] }
  0xee   :  { %v225_v7 = vpop.f32.mrf.mxu0 }
  0xef   :  { %v4858_v9 = vadd.f32 %v4744_v34, %v225_v7 }
  0xf1   :  { %3676 = vmatmul.msk.f32.gmra.mxu0 %vm72_vm0, %v61_v8  ;;  %3692 = vmatmul.msk.f32.gmra.mxu1 %vm294_vm1, %v4858_v9 }
  0xf6   :  { %v228_v10 = vpop.f32.mrf.mxu0 }
  0xf7   :  { %v4867_v12 = vadd.f32 %v4744_v34, %v228_v10 }
  0xf9   :  { %3677 = vmatmul.msk.f32.gmra.mxu0 %vm72_vm0, %v62_v11  ;;  %3693 = vmatmul.msk.f32.gmra.mxu1 %vm294_vm1, %v4867_v12  ;;  %v546_v11 = vmul.f32 %v514_v3, %v4831_v0  ;;  %v517_v0 = vld [vmem:[%s6878_s5 + $0x68] sm:$0xff] }
  0xfe   :  { %v231_v13 = vpop.f32.mrf.mxu0 }
  0xff   :  { %v4876_v15 = vadd.f32 %v4744_v34, %v231_v13 }
 0x101   :  { %3678 = vmatmul.msk.f32.gmra.mxu0 %vm72_vm0, %v63_v14  ;;  %3694 = vmatmul.msk.f32.gmra.mxu1 %vm294_vm1, %v4876_v15 }
 0x106   :  { %v234_v16 = vpop.f32.mrf.mxu0 }
 0x107   :  { %v4886_v18 = vadd.f32 %v4744_v34, %v234_v16  ;;  %v575_v16 = vld [vmem:[%s6879_s6 + $0x38] sm:$0xff] }
 0x109   :  { %6893 = vst [vmem:[#allocation5_spill] sm:$0xff] %v4886_v18  ;;  %3679 = vmatmul.msk.f32.vlgmr.msrb.gmra.mxu0 %vm294_vm1, %v4883_v17  ;;  %3695 = vmatmul.msk.f32.gmra.mxu1 %vm294_vm1, %v4886_v18 }
 0x10e   :  { %v237_v19 = vpop.f32.mrf.mxu0  ;;  %v4892_v20 = vpop.f32.mrf.mxu1 }
 0x10f   :  { %v4895_v21 = vadd.f32 %v4744_v34, %v237_v19  ;;  %v511_v19 = vld [vmem:[%s6878_s5 + $0x38] sm:$0xff] }
 0x111   :  { %6894 = vst [vmem:[#allocation6_spill] sm:$0xff] %v4895_v21  ;;  %3696 = vmatmul.msk.f32.gmra.mxu1 %vm294_vm1, %v4895_v21 }
 0x116   :  { %v240_v22 = vpop.f32.mrf.mxu0  ;;  %v4899_v23 = vpop.f32.mrf.mxu1 }
 0x117   :  { %v4902_v24 = vadd.f32 %v4744_v34, %v240_v22  ;;  %v581_v22 = vld [vmem:[%s6879_s6 + $0x68] sm:$0xff] }
 0x119   :  { %6895 = vst [vmem:[#allocation7_spill] sm:$0xff] %v4902_v24  ;;  %3697 = vmatmul.msk.f32.gmra.mxu1 %vm294_vm1, %v4902_v24 }
 0x11e   :  { %v243_v25 = vpop.f32.mrf.mxu0  ;;  %v4906_v26 = vpop.f32.mrf.mxu1 }
 0x11f   :  { %v4909_v27 = vadd.f32 %v4744_v34, %v243_v25 }
 0x121   :  { %3698 = vmatmul.msk.f32.gmra.mxu1 %vm294_vm1, %v4909_v27 }
 0x126   :  { %v246_v28 = vpop.f32.mrf.mxu0  ;;  %v4913_v29 = vpop.f32.mrf.mxu1 }
 0x127   :  { %v4916_v30 = vadd.f32 %v4744_v34, %v246_v28 }
 0x129   :  { %3699 = vmatmul.msk.f32.gmra.mxu1 %vm294_vm1, %v4916_v30 }
 0x12e   :  { %v249_v31 = vpop.f32.mrf.mxu0  ;;  %v4920_v32 = vpop.f32.mrf.mxu1 }
 0x12f   :  { %v4923_v33 = vadd.f32 %v4744_v34, %v249_v31 }
 0x131   :  { %3700 = vmatmul.msk.f32.gmra.mxu1 %vm294_vm1, %v4923_v33 }
 0x136   :  { %v252_v35 = vpop.f32.mrf.mxu0  ;;  %v4927_v36 = vpop.f32.mrf.mxu1 }
 0x137   :  { %v4930_v38 = vadd.f32 %v4744_v34, %v252_v35  ;;  %v543_v35 = vmul.f32 %v511_v19, %v4804_v55  ;;  %v580_v55 = vld [vmem:[%s6879_s6 + $0x60] sm:$0xff] }
 0x139   :  { %3701 = vmatmul.msk.f32.gmra.mxu1 %vm294_vm1, %v4930_v38 }
 0x13e   :  { %v255_v39 = vpop.f32.mrf.mxu0  ;;  %v429_v41 = vpop.f32.mrf.mxu1 }
 0x13f   :  { %v4935_v42 = vadd.f32 %v4744_v34, %v255_v39  ;;  %v607_v25 = vmul.f32 %v575_v16, %v429_v41  ;;  %v549_v39 = vmul.f32 %v517_v0, %v4858_v9  ;;  %v572_v41 = vld [vmem:[%s6879_s6 + $0x20] sm:$0xff]  ;;  %v583_v16 = vld [vmem:[%s6879_s6 + $0x78] sm:$0xff] }
 0x140   :  { %v508_v9 = vld [vmem:[%s6878_s5 + $0x20] sm:$0xff] }
 0x141   :  { %3702 = vmatmul.msk.f32.gmra.mxu1 %vm294_vm1, %v4935_v42 }
 0x146   :  { %v258_v44 = vpop.f32.mrf.mxu0  ;;  %v4939_v45 = vpop.f32.mrf.mxu1 }
 0x147   :  { %v4942_v47 = vadd.f32 %v4744_v34, %v258_v44 }
 0x149   :  { %3703 = vmatmul.msk.f32.gmra.mxu1 %vm294_vm1, %v4942_v47 }
 0x14e   :  { %v261_v48 = vpop.f32.mrf.mxu0  ;;  %v4946_v50 = vpop.f32.mrf.mxu1 }
 0x14f   :  { %v4949_v51 = vadd.f32 %v4744_v34, %v261_v48 }
 0x151   :  { %3704 = vmatmul.msk.f32.gmra.mxu1 %vm294_vm1, %v4949_v51 }
 0x156   :  { %v264_v53 = vpop.f32.mrf.mxu0  ;;  %v438_v54 = vpop.f32.mrf.mxu1 }
 0x157   :  { %v4954_v56 = vadd.f32 %v4744_v34, %v264_v53  ;;  %v610_v7 = vmul.f32 %v578_v5, %v438_v54  ;;  %v5007_v53 = vadd.f32 %v607_v25, %v543_v35  ;;  %v548_v5 = vmul.f32 %v516_v57, %v4849_v6  ;;  %v505_v6 = vld [vmem:[%s6878_s5 + $0x8] sm:$0xff] }
 0x159   :  { %3705 = vmatmul.msk.f32.gmra.mxu1 %vm294_vm1, %v4954_v56  ;;  %v4984_v14 = vadd.f32 %v610_v7, %v546_v11  ;;  %v519_v11 = vld [vmem:[%s6878_s5 + $0x78] sm:$0xff] }
 0x15a   :  { %v551_v35 = vmul.f32 %v519_v11, %v4876_v15  ;;  %v518_v15 = vld [vmem:[%s6878_s5 + $0x70] sm:$0xff] }
 0x15e   :  { %v267_v60 = vpop.f32.mrf.mxu0  ;;  %v441_v62 = vpop.f32.mrf.mxu1 }
 0x15f   :  { %v4966_v1 = vadd.f32 %v4744_v34, %v267_v60  ;;  %v611_v2 = vmul.f32 %v579_v59, %v441_v62  ;;  %v604_v59 = vmul.f32 %v572_v41, %v4913_v29  ;;  %v569_v29 = vld [vmem:[%s6879_s6 + $0x8] sm:$0xff] }
 0x160   :  { %v601_v19 = vmul.f32 %v569_v29, %v4892_v20 }
 0x161   :  { %v4968_v4 = vadd.f32 %v611_v2, %v547_v63  ;;  %3706 = vmatmul.msk.f32.gmra.mxu1 %vm294_vm1, %v4966_v1  ;;  %v540_v2 = vmul.f32 %v508_v9, %v4777_v46  ;;  %v576_v46 = vld [vmem:[%s6879_s6 + $0x40] sm:$0xff] }
 0x162   :  { %v608_v0 = vmul.f32 %v576_v46, %v4939_v45 }
 0x163   :  { %706 = vrot.lane.b32.xlu2 %v4968_v4, %s4558_s20  ;;  %v5035_v7 = vadd.f32 %v604_v59, %v540_v2  ;;  %v550_v59 = vmul.f32 %v518_v15, %v4867_v12  ;;  %v570_v2 = vld [vmem:[%s6879_s6 + $0x10] sm:$0xff]  ;;  %v513_v12 = vld [vmem:[%s6878_s5 + $0x48] sm:$0xff] }
 0x166   :  { %v270_v8 = vpop.f32.mrf.mxu0  ;;  %v444_v10 = vpop.f32.mrf.mxu1 }
 0x167   :  { %v4982_v13 = vadd.f32 %v4744_v34, %v270_v8  ;;  %v612_v60 = vmul.f32 %v580_v55, %v444_v10  ;;  %v512_v10 = vld [vmem:[%s6878_s5 + $0x40] sm:$0xff] }
 0x169   :  { %3707 = vmatmul.msk.f32.gmra.mxu1 %vm294_vm1, %v4982_v13  ;;  %v5037_v8 = vadd.f32 %v612_v60, %v548_v5 }
 0x16b   :  { %704 = vrot.lane.b32.xlu2 %v4984_v14, %s4558_s20 }
 0x16e   :  { %v273_v28 = vpop.f32.mrf.mxu0  ;;  %v447_v31 = vpop.f32.mrf.mxu1 }
 0x16f   :  { %v5005_v44 = vadd.f32 %v4744_v34, %v273_v28  ;;  %v613_v48 = vmul.f32 %v581_v22, %v447_v31  ;;  %v537_v22 = vmul.f32 %v505_v6, %v4750_v37  ;;  %v544_v31 = vmul.f32 %v512_v10, %v4813_v58  ;;  %v573_v37 = vld [vmem:[%s6879_s6 + $0x28] sm:$0xff]  ;;  %v582_v58 = vld [vmem:[%s6879_s6 + $0x70] sm:$0xff] }
 0x170   :  { %v605_v20 = vmul.f32 %v573_v37, %v4920_v32  ;;  %v577_v32 = vld [vmem:[%s6879_s6 + $0x48] sm:$0xff]  ;;  %v545_v6 = vmul.f32 %v513_v12, %v4822_v61  ;;  %v571_v61 = vld [vmem:[%s6879_s6 + $0x18] sm:$0xff] }
 0x171   :  { %v5009_v54 = vadd.f32 %v613_v48, %v549_v39  ;;  %3708 = vmatmul.msk.f32.gmra.mxu1 %vm294_vm1, %v5005_v44  ;;  %v5071_v41 = vadd.f32 %v601_v19, %v537_v22  ;;  %v5073_v55 = vadd.f32 %v608_v0, %v544_v31  ;;  %v609_v29 = vmul.f32 %v577_v32, %v4946_v50  ;;  %v507_v50 = vld [vmem:[%s6878_s5 + $0x18] sm:$0xff]  ;;  %v504_v31 = vld [vmem:[%s6878_s5] sm:$0xff] }
 0x172   :  { %v603_v0 = vmul.f32 %v571_v61, %v4906_v26 }
 0x173   :  { %698 = vrot.lane.b32.xlu2 %v5007_v53, %s4558_s20  ;;  %710 = vrot.lane.b32.xlu1 %v5009_v54, %s4558_s20  ;;  %v5132_v11 = vadd.f32 %v609_v29, %v545_v6 }
 0x176   :  { %v276_v62 = vpop.f32.mrf.mxu0  ;;  %v450_v63 = vpop.f32.mrf.mxu1 }
 0x177   :  { %v5033_v3 = vadd.f32 %v4744_v34, %v276_v62  ;;  %v614_v45 = vmul.f32 %v582_v58, %v450_v63  ;;  %v5104_v62 = vpack.i.bf16 %v4984_v14, %v4968_v4  ;;  %v602_v63 = vmul.f32 %v570_v2, %v4899_v23 }
 0x179   :  { %3709 = vmatmul.msk.f32.gmra.mxu1 %vm294_vm1, %v5033_v3  ;;  %v5109_v5 = vadd.f32 %v614_v45, %v550_v59 }
 0x17b   :  { %692 = vrot.lane.b32.xlu2 %v5035_v7, %s4558_s20  ;;  %708 = vrot.lane.b32.xlu1 %v5037_v8, %s4558_s20 }
 0x17e   :  { %v279_v25 = vpop.f32.mrf.mxu0  ;;  %v453_v28 = vpop.f32.mrf.mxu1 }
 0x17f   :  { %v5069_v39 = vadd.f32 %v4744_v34, %v279_v25  ;;  %v615_v48 = vmul.f32 %v583_v16, %v453_v28  ;;  %v509_v34 = vld [vmem:[%s6878_s5 + $0x28] sm:$0xff]  ;;  %v574_v16 = vld [vmem:[%s6879_s6 + $0x30] sm:$0xff]  ;;  %v539_v28 = vmul.f32 %v507_v50, %v4768_v43  ;;  %v568_v43 = vld [vmem:[%s6879_s6] sm:$0xff] }
 0x180   :  { %v541_v57 = vmul.f32 %v509_v34, %v4786_v49  ;;  %v506_v49 = vld [vmem:[%s6878_s5 + $0x10] sm:$0xff]  ;;  %v606_v23 = vmul.f32 %v574_v16, %v4927_v36  ;;  %v5201_v34 = vpack.i.bf16 %v5037_v8, %v5009_v54 }
 0x181   :  { %v5075_v9 = vadd.f32 %v615_v48, %v551_v35  ;;  %3710 = vmatmul.msk.f32.gmra.mxu1 %vm294_vm1, %v5069_v39  ;;  %v538_v46 = vmul.f32 %v506_v49, %v4759_v40  ;;  %v510_v40 = vld [vmem:[%s6878_s5 + $0x30] sm:$0xff]  ;;  %v536_v48 = vmul.f32 %v504_v31, %v4883_v17  ;;  %v5211_v17 = vpack.i.bf16 %v5073_v55, %v5132_v11 }
 0x182   :  { %v5100_v60 = vadd.f32 %v605_v20, %v541_v57  ;;  %v542_v19 = vmul.f32 %v510_v40, %v4795_v52  ;;  %v5168_v52 = vadd.f32 %v603_v0, %v539_v28  ;;  %6899 = vst [vmem:[#allocation11_spill] sm:$0xff] %v5201_v34 }
 0x183   :  { %686 = vrot.lane.b32.xlu2 %v5071_v41, %s4558_s20  ;;  %700 = vrot.lane.b32.xlu1 %v5073_v55, %s4558_s20  ;;  %v5130_v10 = vadd.f32 %v602_v63, %v538_v46  ;;  %v5157_v22 = vpack.i.bf16 %v5109_v5, %v5075_v9  ;;  %6900 = vst [vmem:[#allocation12_spill] sm:$0xff] %v5211_v17 }
 0x184   :  { %714 = vrot.lane.b32.xlu0 %v5075_v9, %s4558_s20  ;;  %v5159_v25 = vadd.f32 %v606_v23, %v542_v19  ;;  %v5225_v20 = vpack.i.bf16 %v5035_v7, %v5100_v60 }
 0x185   :  { %6896 = vst [vmem:[#allocation8_spill] sm:$0xff] %v5157_v22  ;;  %v5172_v26 = vpack.i.bf16 %v5130_v10, %v5168_v52 }
 0x186   :  { %v408_v36 = vpop.f32.mrf.mxu0  ;;  %v5219_v15 = vpack.i.bf16 %v5159_v25, %v5007_v53 }
 0x187   :  { %6897 = vst [vmem:[#allocation9_spill] sm:$0xff] %v5172_v26  ;;  %v600_v35 = vmul.f32 %v568_v43, %v408_v36 }
 0x189   :  { %v5187_v37 = vadd.f32 %v600_v35, %v536_v48 }
 0x18b   :  { %3996 = vrot.lane.b32.xlu2 %v5104_v62, %s4559_s0  ;;  %694 = vrot.lane.b32.xlu1 %v5100_v60, %s4558_s20  ;;  %v5197_v58 = vpack.i.bf16 %v5187_v37, %v5071_v41 }
 0x18c   :  { %712 = vrot.lane.b32.xlu0 %v5109_v5, %s4558_s20 }
 0x18d   :  { %6898 = vst [vmem:[#allocation10_spill] sm:$0xff] %v5197_v58 }
 0x193   :  { %688 = vrot.lane.b32.xlu1 %v5130_v10, %s4558_s20  ;;  %1016 = vrot.lane.b32.xlu2 %v5075_v9, %s4560_s22 }
 0x194   :  { %702 = vrot.lane.b32.xlu0 %v5132_v11, %s4558_s20 }
 0x19b   :  { %1012 = vrot.lane.b32.xlu2 %v5009_v54, %s4560_s22  ;;  %3986 = vrot.lane.b32.xlu1 %v5157_v22, %s4559_s0 }
 0x19c   :  { %696 = vrot.lane.b32.xlu0 %v5159_v25, %s4558_s20 }
 0x1a3   :  { %1010 = vrot.lane.b32.xlu2 %v5037_v8, %s4560_s22  ;;  %4016 = vrot.lane.b32.xlu1 %v5172_v26, %s4559_s0 }
 0x1a4   :  { %690 = vrot.lane.b32.xlu0 %v5168_v52, %s4558_s20 }
 0x1ab   :  { %1008 = vrot.lane.b32.xlu2 %v4968_v4, %s4560_s22  ;;  %1004 = vrot.lane.b32.xlu1 %v5132_v11, %s4560_s22 }
 0x1ac   :  { %684 = vrot.lane.b32.xlu0 %v5187_v37, %s4558_s20 }
 0x1b3   :  { %1006 = vrot.lane.b32.xlu2 %v4984_v14, %s4560_s22  ;;  %4021 = vrot.lane.b32.xlu1 %v5197_v58, %s4559_s0 }
 0x1b4   :  { %3991 = vrot.lane.b32.xlu0 %v5201_v34, %s4559_s0 }
 0x1bb   :  { %998 = vrot.lane.b32.xlu2 %v5159_v25, %s4560_s22 }
 0x1bc   :  { %4001 = vrot.lane.b32.xlu0 %v5211_v17, %s4559_s0 }
 0x1bd   :  { %v707_v2 = vpop.permute.xlu2 %706 }
 0x1c4   :  { %4006 = vrot.lane.b32.xlu0 %v5219_v15, %s4559_s0 }
 0x1c5   :  { %v705_v63 = vpop.permute.xlu2 %704 }
 0x1cc   :  { %4011 = vrot.lane.b32.xlu0 %v5225_v20, %s4559_s0 }
 0x1cd   :  { %v699_v6 = vpop.permute.xlu2 %698 }
 0x1d4   :  { %1014 = vrot.lane.b32.xlu0 %v5109_v5, %s4560_s22 }
 0x1d5   :  { %v693_v50 = vpop.permute.xlu2 %692 }
 0x1dc   :  { %1002 = vrot.lane.b32.xlu0 %v5073_v55, %s4560_s22 }
 0x1dd   :  { %v687_v0 = vpop.permute.xlu2 %686 }
 0x1e4   :  { %1000 = vrot.lane.b32.xlu0 %v5007_v53, %s4560_s22 }
 0x1e5   :  { %v711_v45 = vpop.permute.xlu1 %710  ;;  %v3997_v31 = vpop.permute.xlu2 %3996 }
 0x1e6   :  { %v3998_v48 = vunpack.i.l.bf16 %v3997_v31 }
 0x1ed   :  { %v709_v57 = vpop.permute.xlu1 %708 }
 0x1f5   :  { %v701_v59 = vpop.permute.xlu1 %700 }
 0x1f6   :  { %v715_v32 = vpop.permute.xlu0 %714 }
 0x1f7   :  { %3711 = vmatpush.xpose.msk.msra.mxu2 %vm716_vm2, %v715_v32 }
 0x1fd   :  { %v695_v49 = vpop.permute.xlu1 %694 }
 0x1fe   :  { %v713_v12 = vpop.permute.xlu0 %712 }
 0x1ff   :  { %3712 = vmatpush.xpose.msk.msra.mxu2 %vm716_vm2, %v713_v12  ;;  %v1017_v12 = vpop.permute.xlu2 %1016 }
 0x203   :  { %3713 = vmatpush.xpose.msk.msra.mxu2 %vm716_vm2, %v711_v45  ;;  %v3999_v45 = vunpack.i.h.bf16 %v3997_v31 }
 0x205   :  { %v689_v29 = vpop.permute.xlu1 %688 }
 0x206   :  { %v703_v46 = vpop.permute.xlu0 %702 }
 0x207   :  { %3714 = vmatpush.xpose.msk.msra.mxu2 %vm716_vm2, %v709_v57 }
 0x20b   :  { %3715 = vmatpush.xpose.msk.msra.mxu2 %vm716_vm2, %v707_v2 }
 0x20d   :  { %v3987_v16 = vpop.permute.xlu1 %3986 }
 0x20e   :  { %v697_v40 = vpop.permute.xlu0 %696  ;;  %v3988_v61 = vunpack.i.l.bf16 %v3987_v16  ;;  %v3989_v23 = vunpack.i.h.bf16 %v3987_v16 }
 0x20f   :  { %3716 = vmatpush.xpose.msk.msra.mxu2 %vm716_vm2, %v705_v63 }
 0x210   :  { %933 = vmatpush.msra.mxu3 %v3988_v61 }
 0x212   :  { %934 = vmatpush.msra.mxu3 %v3989_v23 }
 0x213   :  { %3717 = vmatpush.xpose.msk.msra.mxu2 %vm716_vm2, %v703_v46 }
 0x215   :  { %v4017_v2 = vpop.permute.xlu1 %4016 }
 0x216   :  { %v691_v19 = vpop.permute.xlu0 %690  ;;  %v4018_v23 = vunpack.i.l.bf16 %v4017_v2 }
 0x217   :  { %3718 = vmatpush.xpose.msk.msra.mxu2 %vm716_vm2, %v701_v59 }
 0x21b   :  { %3719 = vmatpush.xpose.msk.msra.mxu2 %vm716_vm2, %v699_v6 }
 0x21d   :  { %v1005_v6 = vpop.permute.xlu1 %1004 }
 0x21e   :  { %v685_v28 = vpop.permute.xlu0 %684 }
 0x21f   :  { %3720 = vmatpush.xpose.msk.msra.mxu2 %vm716_vm2, %v697_v40  ;;  %v1013_v40 = vpop.permute.xlu2 %1012 }
 0x223   :  { %3721 = vmatpush.xpose.msk.msra.mxu2 %vm716_vm2, %v695_v49 }
 0x226   :  { %v3992_v36 = vpop.permute.xlu0 %3991 }
 0x227   :  { %3722 = vmatpush.xpose.msk.msra.mxu2 %vm716_vm2, %v693_v50  ;;  %v3993_v43 = vunpack.i.l.bf16 %v3992_v36  ;;  %v3994_v35 = vunpack.i.h.bf16 %v3992_v36  ;;  %v4022_v50 = vpop.permute.xlu1 %4021  ;;  %v1011_v36 = vpop.permute.xlu2 %1010 }
 0x229   :  { %935 = vmatpush.msra.mxu3 %v3993_v43 }
 0x22b   :  { %3723 = vmatpush.xpose.msk.msra.mxu2 %vm716_vm2, %v691_v19  ;;  %936 = vmatpush.msra.mxu3 %v3994_v35  ;;  %v4019_v19 = vunpack.i.h.bf16 %v4017_v2 }
 0x22d   :  { %937 = vmatpush.msra.mxu3 %v3998_v48 }
 0x22e   :  { %v4002_v57 = vpop.permute.xlu0 %4001 }
 0x22f   :  { %3724 = vmatpush.xpose.msk.msra.mxu2 %vm716_vm2, %v689_v29  ;;  %938 = vmatpush.msra.mxu3 %v3999_v45  ;;  %v4003_v59 = vunpack.i.l.bf16 %v4002_v57  ;;  %v4004_v32 = vunpack.i.h.bf16 %v4002_v57  ;;  %v1009_v31 = vpop.permute.xlu2 %1008 }
 0x231   :  { %939 = vmatpush.msra.mxu3 %v4003_v59  ;;  %v664_v59 = vlaneseq }
 0x233   :  { %3725 = vmatpush.xpose.msk.msra.mxu2 %vm716_vm2, %v687_v0  ;;  %940 = vmatpush.msra.mxu3 %v4004_v32  ;;  %v4023_v0 = vunpack.i.l.bf16 %v4022_v50  ;;  %v665_v2 = vand.u32 127, %v664_v59 }
 0x235   :  { %vm666_vm3 = vcmp.lt.s32.totalorder %v665_v2, 49 }
 0x236   :  { %v4007_v49 = vpop.permute.xlu0 %4006 }
 0x237   :  { %3726 = vmatpush.xpose.msk.msra.mxu2 %vm716_vm2, %v685_v28  ;;  %v4008_v63 = vunpack.i.l.bf16 %v4007_v49  ;;  %v4009_v46 = vunpack.i.h.bf16 %v4007_v49  ;;  %v4024_v28 = vunpack.i.h.bf16 %v4022_v50  ;;  %v1007_v35 = vpop.permute.xlu2 %1006  ;;  %v4561_v49 = vmov -1e+30  }
 0x239   :  { %941 = vmatpush.msra.mxu3 %v4008_v63 }
 0x23a   :  { %3727 = vmatmul.msk.f32.vlgmr.msra.gmra.mxu2 %vm716_vm2, %v5187_v37 }
 0x23b   :  { %942 = vmatpush.msra.mxu3 %v4009_v46 }
 0x23e   :  { %v4012_v29 = vpop.permute.xlu0 %4011 }
 0x23f   :  { %v4013_v16 = vunpack.i.l.bf16 %v4012_v29  ;;  %v4014_v61 = vunpack.i.h.bf16 %v4012_v29  ;;  %v999_v57 = vpop.permute.xlu2 %998 }
 0x241   :  { %943 = vmatpush.msra.mxu3 %v4013_v16 }
 0x242   :  { %3728 = vmatmul.msk.f32.gmra.mxu2 %vm716_vm2, %v5071_v41 }
 0x243   :  { %944 = vmatpush.msra.mxu3 %v4014_v61 }
 0x245   :  { %945 = vmatpush.msra.mxu3 %v4018_v23 }
 0x246   :  { %v1015_v43 = vpop.permute.xlu0 %1014 }
 0x247   :  { %946 = vmatpush.msra.mxu3 %v4019_v19 }
 0x249   :  { %947 = vmatpush.msra.mxu3 %v4023_v0 }
 0x24a   :  { %3729 = vmatmul.msk.f32.gmra.mxu2 %vm716_vm2, %v5130_v10 }
 0x24b   :  { %948 = vmatpush.msra.mxu3 %v4024_v28 }
 0x24d   :  { %3734 = vmatpush.xpose.msk.msrb.mxu3 %vm716_vm2, %v1017_v12  ;;  %v5275_v12 = vsel %vm666_vm3, 0.0, %v4561_v49 }
 0x24e   :  { %v1003_v48 = vpop.permute.xlu0 %1002  ;;  %6901 = vst [vmem:[#allocation13_spill] sm:$0xff] %v5275_v12 }
 0x251   :  { %3735 = vmatpush.xpose.msk.msrb.mxu3 %vm716_vm2, %v1015_v43 }
 0x252   :  { %3730 = vmatmul.msk.f32.gmra.mxu2 %vm716_vm2, %v5168_v52 }
 0x255   :  { %3736 = vmatpush.xpose.msk.msrb.mxu3 %vm716_vm2, %v1013_v40 }
 0x256   :  { %v1001_v45 = vpop.permute.xlu0 %1000 }
 0x259   :  { %3737 = vmatpush.xpose.msk.msrb.mxu3 %vm716_vm2, %v1011_v36 }
 0x25a   :  { %3731 = vmatmul.msk.f32.gmra.mxu2 %vm716_vm2, %v5035_v7 }
 0x25d   :  { %3738 = vmatpush.xpose.msk.msrb.mxu3 %vm716_vm2, %v1009_v31 }
 0x261   :  { %3739 = vmatpush.xpose.msk.msrb.mxu3 %vm716_vm2, %v1007_v35 }
 0x262   :  { %3732 = vmatmul.msk.f32.gmra.mxu2 %vm716_vm2, %v5100_v60 }
 0x265   :  { %3740 = vmatpush.xpose.msk.msrb.mxu3 %vm716_vm2, %v1005_v6 }
 0x269   :  { %3741 = vmatpush.xpose.msk.msrb.mxu3 %vm716_vm2, %v1003_v48 }
 0x26a   :  { %3733 = vmatmul.msk.f32.gmra.mxu2 %vm716_vm2, %v5159_v25 }
 0x26d   :  { %3742 = vmatpush.xpose.msk.msrb.mxu3 %vm716_vm2, %v1001_v45 }
 0x271   :  { %3743 = vmatpush.xpose.msk.msrb.mxu3 %vm716_vm2, %v999_v57 }
 0x2bd   :  { %v780_v32 = vpop.f32.mrf.mxu2 }
 0x2be   :  { %v801_v63 = vmul.f32 0.35355338, %v780_v32 }
 0x2c0   :  { %v808_v46 = vadd.f32 %v801_v63, %v5275_v12 }
 0x2c2   :  { %815 = vmax.xlane.f32.xlu1 %v808_v46 }
 0x2c5   :  { %v783_v6 = vpop.f32.mrf.mxu2 }
 0x2c6   :  { %v802_v29 = vmul.f32 0.35355338, %v783_v6 }
 0x2c8   :  { %v809_v16 = vadd.f32 %v802_v29, %v5275_v12 }
 0x2ca   :  { %817 = vmax.xlane.f32.xlu2 %v809_v16 }
 0x2cd   :  { %v786_v40 = vpop.f32.mrf.mxu2 }
 0x2ce   :  { %v803_v61 = vmul.f32 0.35355338, %v786_v40 }
 0x2d0   :  { %v810_v23 = vadd.f32 %v803_v61, %v5275_v12 }
 0x2d2   :  { %819 = vmax.xlane.f32.xlu0 %v810_v23 }
 0x2d5   :  { %v789_v50 = vpop.f32.mrf.mxu2 }
 0x2d6   :  { %v804_v19 = vmul.f32 0.35355338, %v789_v50 }
 0x2d8   :  { %v811_v0 = vadd.f32 %v804_v19, %v5275_v12 }
 0x2da   :  { %821 = vmax.xlane.f32.xlu2 %v811_v0 }
 0x2dd   :  { %v792_v28 = vpop.f32.mrf.mxu2 }
 0x2de   :  { %v805_v36 = vmul.f32 0.35355338, %v792_v28 }
 0x2e0   :  { %v812_v43 = vadd.f32 %v805_v36, %v5275_v12 }
 0x2e2   :  { %823 = vmax.xlane.f32.xlu2 %v812_v43 }
 0x2e5   :  { %v795_v31 = vpop.f32.mrf.mxu2 }
 0x2e6   :  { %v806_v35 = vmul.f32 0.35355338, %v795_v31 }
 0x2e8   :  { %v813_v48 = vadd.f32 %v806_v35, %v5275_v12 }
 0x2ea   :  { %825 = vmax.xlane.f32.xlu1 %v813_v48 }
 0x2ed   :  { %v798_v45 = vpop.f32.mrf.mxu2 }
 0x2ee   :  { %v807_v57 = vmul.f32 0.35355338, %v798_v45 }
 0x2f0   :  { %v814_v59 = vadd.f32 %v807_v57, %v5275_v12 }
 0x2f2   :  { %827 = vmax.xlane.f32.xlu2 %v814_v59 }
 0x335   :  { %v816_v2 = vpop.xlane.xlu1 %815 }
 0x336   :  { %v829_v32 = vsub.f32 %v808_v46, %v816_v2 }
 0x338   :  { %v836_v49 = vmul.f32 1.442695, %v829_v32 }
 0x33a   :  { %4308 = vpow2.f32 %v836_v49 }
 0x33d   :  { %v818_v63 = vpop.xlane.xlu2 %817 }
 0x33e   :  { %v830_v6 = vsub.f32 %v809_v16, %v818_v63 }
 0x340   :  { %v4309_v29 = vpop.eup %4308  ;;  %v838_v40 = vmul.f32 1.442695, %v830_v6 }
 0x341   :  { %850 = vadd.xlane.f32.xlu0 %v4309_v29 }
 0x342   :  { %4310 = vpow2.f32 %v838_v40 }
 0x345   :  { %v820_v61 = vpop.xlane.xlu0 %819 }
 0x346   :  { %v831_v50 = vsub.f32 %v810_v23, %v820_v61 }
 0x348   :  { %v4311_v19 = vpop.eup %4310  ;;  %v840_v28 = vmul.f32 1.442695, %v831_v50 }
 0x349   :  { %852 = vadd.xlane.f32.xlu1 %v4311_v19 }
 0x34a   :  { %4312 = vpow2.f32 %v840_v28 }
 0x34d   :  { %v822_v36 = vpop.xlane.xlu2 %821 }
 0x34e   :  { %v832_v31 = vsub.f32 %v811_v0, %v822_v36 }
 0x350   :  { %v4313_v35 = vpop.eup %4312  ;;  %v842_v45 = vmul.f32 1.442695, %v832_v31 }
 0x351   :  { %854 = vadd.xlane.f32.xlu0 %v4313_v35 }
 0x352   :  { %4314 = vpow2.f32 %v842_v45 }
 0x355   :  { %v824_v16 = vpop.xlane.xlu2 %823 }
 0x356   :  { %v833_v49 = vsub.f32 %v812_v43, %v824_v16 }
 0x358   :  { %v5284_v46 = vpop.eup %4314  ;;  %v844_v6 = vmul.f32 1.442695, %v833_v49 }
 0x359   :  { %856 = vadd.xlane.f32.xlu2 %v5284_v46 }
 0x35d   :  { %v826_v23 = vpop.xlane.xlu1 %825 }
 0x35e   :  { %v834_v0 = vsub.f32 %v813_v48, %v826_v23 }
 0x360   :  { %v846_v32 = vmul.f32 1.442695, %v834_v0 }
 0x362   :  { %994 = vrot.lane.b32.xlu1 %v5035_v7, %s4560_s22  ;;  %4316 = vpow2.f32 %v846_v32 }
 0x365   :  { %992 = vrot.lane.b32.xlu0 %v5168_v52, %s4560_s22  ;;  %v828_v57 = vpop.xlane.xlu2 %827 }
 0x366   :  { %v835_v2 = vsub.f32 %v814_v59, %v828_v57 }
 0x368   :  { %v848_v63 = vmul.f32 1.442695, %v835_v2  ;;  %v5299_v40 = vpop.eup %4316 }
 0x36a   :  { %990 = vrot.lane.b32.xlu1 %v5130_v10, %s4560_s22  ;;  %4318 = vpow2.f32 %v848_v63 }
 0x36b   :  { %4320 = vpow2.f32 %v844_v6 }
 0x36d   :  { %986 = vrot.lane.b32.xlu0 %v5187_v37, %s4560_s22 }
 0x370   :  { %v5302_v61 = vpop.eup %4318 }
 0x371   :  { %996 = vrot.lane.b32.xlu2 %v5100_v60, %s4560_s22  ;;  %v5305_v50 = vpop.eup %4320 }
 0x372   :  { %988 = vrot.lane.b32.xlu1 %v5071_v41, %s4560_s22 }
 0x397   :  { %860 = vadd.xlane.f32.xlu0 %v5299_v40 }
 0x39a   :  { %862 = vadd.xlane.f32.xlu2 %v5302_v61 }
 0x39c   :  { %858 = vadd.xlane.f32.xlu1 %v5305_v50 }
 0x3ab   :  { %976 = vrot.lane.b32.xlu0 %v5130_v10, %s4562_s10 }
 0x3b2   :  { %974 = vrot.lane.b32.xlu2 %v5071_v41, %s4562_s10 }
 0x3b3   :  { %980 = vrot.lane.b32.xlu0 %v5035_v7, %s4562_s10 }
 0x3b4   :  { %v851_v43 = vpop.xlane.xlu0 %850 }
 0x3b5   :  { %4322 = vrcp.f32 %v851_v43  ;;  %972 = vrot.lane.b32.xlu1 %v5187_v37, %s4562_s10 }
 0x3ba   :  { %4031 = vrot.lane.b32.xlu2 %v5201_v34, %s4563_s11 }
 0x3bb   :  { %v4323_v48 = vpop.eup %4322  ;;  %984 = vrot.lane.b32.xlu0 %v5159_v25, %s4562_s10 }
 0x3bc   :  { %v853_v59 = vpop.xlane.xlu1 %852  ;;  %v871_v28 = vmul.f32 %v4323_v48, %v4309_v29 }
 0x3bd   :  { %4324 = vrcp.f32 %v853_v59  ;;  %978 = vrot.lane.b32.xlu1 %v5168_v52, %s4562_s10 }
 0x3be   :  { %878 = vst [vmem:[#allocation2] sm:$0xff] %v871_v28  ;;  %949 = vmatmul.f32.vlgmr.msra.gmra.mxu3 %v871_v28 }
 0x3c2   :  { %4041 = vrot.lane.b32.xlu2 %v5211_v17, %s4563_s11 }
 0x3c3   :  { %v4325_v36 = vpop.eup %4324  ;;  %4036 = vrot.lane.b32.xlu0 %v5104_v62, %s4563_s11 }
 0x3c4   :  { %v855_v31 = vpop.xlane.xlu0 %854  ;;  %v872_v45 = vmul.f32 %v4325_v36, %v4311_v19 }
 0x3c5   :  { %4326 = vrcp.f32 %v855_v31  ;;  %982 = vrot.lane.b32.xlu1 %v5100_v60, %s4562_s10 }
 0x3c6   :  { %879 = vst [vmem:[#allocation2 + $0x8] sm:$0xff] %v872_v45  ;;  %952 = vmatmul.f32.gmra.mxu3 %v872_v45 }
 0x3cb   :  { %v4327_v29 = vpop.eup %4326  ;;  %4046 = vrot.lane.b32.xlu0 %v5219_v15, %s4563_s11 }
 0x3cc   :  { %v857_v16 = vpop.xlane.xlu2 %856  ;;  %v873_v23 = vmul.f32 %v4327_v29, %v4313_v35 }
 0x3cd   :  { %4328 = vrcp.f32 %v857_v16  ;;  %4026 = vrot.lane.b32.xlu1 %v5157_v22, %s4563_s11 }
 0x3ce   :  { %880 = vst [vmem:[#allocation2 + $0x10] sm:$0xff] %v873_v23  ;;  %955 = vmatmul.f32.gmra.mxu3 %v873_v23 }
 0x3d3   :  { %v4329_v0 = vpop.eup %4328  ;;  %4051 = vrot.lane.b32.xlu0 %v5225_v20, %s4563_s11 }
 0x3d4   :  { %v995_v19 = vpop.permute.xlu1 %994  ;;  %v997_v57 = vpop.permute.xlu2 %996  ;;  %v874_v2 = vmul.f32 %v4329_v0, %v5284_v46 }
 0x3d5   :  { %3744 = vmatpush.xpose.msk.msrb.mxu3 %vm716_vm2, %v997_v57 }
 0x3d6   :  { %881 = vst [vmem:[#allocation2 + $0x18] sm:$0xff] %v874_v2  ;;  %958 = vmatmul.f32.gmra.mxu3 %v874_v2 }
 0x3d7   :  { %v993_v35 = vpop.permute.xlu0 %992 }
 0x3d9   :  { %3745 = vmatpush.xpose.msk.msrb.mxu3 %vm716_vm2, %v995_v19 }
 0x3dc   :  { %v991_v32 = vpop.permute.xlu1 %990 }
 0x3dd   :  { %3746 = vmatpush.xpose.msk.msrb.mxu3 %vm716_vm2, %v993_v35 }
 0x3df   :  { %v987_v63 = vpop.permute.xlu0 %986 }
 0x3e1   :  { %3747 = vmatpush.xpose.msk.msrb.mxu3 %vm716_vm2, %v991_v32 }
 0x3e4   :  { %v989_v49 = vpop.permute.xlu1 %988 }
 0x3e5   :  { %3748 = vmatpush.xpose.msk.msrb.mxu3 %vm716_vm2, %v989_v49 }
 0x3e9   :  { %3749 = vmatpush.xpose.msk.msrb.mxu3 %vm716_vm2, %v987_v63 }
 0x40a   :  { %v861_v6 = vpop.xlane.xlu0 %860 }
 0x40b   :  { %4330 = vrcp.f32 %v861_v6 }
 0x40d   :  { %v863_v46 = vpop.xlane.xlu2 %862 }
 0x40e   :  { %4332 = vrcp.f32 %v863_v46 }
 0x40f   :  { %v859_v43 = vpop.xlane.xlu1 %858 }
 0x410   :  { %4334 = vrcp.f32 %v859_v43 }
 0x411   :  { %v4331_v48 = vpop.eup %4330 }
 0x412   :  { %v876_v59 = vmul.f32 %v4331_v48, %v5299_v40 }
 0x414   :  { %v4333_v28 = vpop.eup %4332  ;;  %883 = vst [vmem:[#allocation2 + $0x28] sm:$0xff] %v876_v59 }
 0x415   :  { %v877_v36 = vmul.f32 %v4333_v28, %v5302_v61  ;;  %v975_v40 = vpop.permute.xlu2 %974 }
 0x416   :  { %v4335_v31 = vpop.eup %4334 }
 0x417   :  { %v875_v45 = vmul.f32 %v4335_v31, %v5305_v50  ;;  %884 = vst [vmem:[#allocation2 + $0x30] sm:$0xff] %v877_v36 }
 0x419   :  { %882 = vst [vmem:[#allocation2 + $0x20] sm:$0xff] %v875_v45  ;;  %961 = vmatmul.f32.gmra.mxu3 %v875_v45 }
 0x41d   :  { %v977_v29 = vpop.permute.xlu0 %976  ;;  %v4032_v2 = vpop.permute.xlu2 %4031 }
 0x41e   :  { %v4033_v49 = vunpack.i.l.bf16 %v4032_v2  ;;  %v4034_v63 = vunpack.i.h.bf16 %v4032_v2 }
 0x421   :  { %964 = vmatmul.f32.gmra.mxu3 %v876_v59 }
 0x425   :  { %v981_v23 = vpop.permute.xlu0 %980  ;;  %v4042_v43 = vpop.permute.xlu2 %4041 }
 0x426   :  { %v4043_v59 = vunpack.i.l.bf16 %v4042_v43  ;;  %v4044_v28 = vunpack.i.h.bf16 %v4042_v43 }
 0x427   :  { %v973_v16 = vpop.permute.xlu1 %972 }
 0x429   :  { %967 = vmatmul.f32.gmra.mxu3 %v877_v36 }
 0x42d   :  { %v985_v19 = vpop.permute.xlu0 %984 }
 0x42f   :  { %v979_v0 = vpop.permute.xlu1 %978 }
 0x431   :  { %3750 = vmatmul.msk.f32.vlgmr.msrb.gmra.mxu3 %vm716_vm2, %v973_v16 }
 0x435   :  { %v4037_v61 = vpop.permute.xlu0 %4036 }
 0x436   :  { %v4038_v46 = vunpack.i.l.bf16 %v4037_v61  ;;  %v4039_v48 = vunpack.i.h.bf16 %v4037_v61 }
 0x437   :  { %v983_v57 = vpop.permute.xlu1 %982 }
 0x439   :  { %3751 = vmatmul.msk.f32.gmra.mxu3 %vm716_vm2, %v975_v40 }
 0x43d   :  { %v4047_v6 = vpop.permute.xlu0 %4046 }
 0x43e   :  { %v4048_v36 = vunpack.i.l.bf16 %v4047_v6  ;;  %v4049_v45 = vunpack.i.h.bf16 %v4047_v6 }
 0x43f   :  { %v4027_v35 = vpop.permute.xlu1 %4026 }
 0x440   :  { %v4028_v50 = vunpack.i.l.bf16 %v4027_v35  ;;  %v4029_v32 = vunpack.i.h.bf16 %v4027_v35 }
 0x441   :  { %3752 = vmatmul.msk.f32.gmra.mxu3 %vm716_vm2, %v977_v29 }
 0x442   :  { %1235 = vmatpush.msrb.mxu2 %v4028_v50 }
 0x444   :  { %1236 = vmatpush.msrb.mxu2 %v4029_v32 }
 0x445   :  { %v4052_v31 = vpop.permute.xlu0 %4051 }
 0x446   :  { %1237 = vmatpush.msrb.mxu2 %v4033_v49  ;;  %v4053_v29 = vunpack.i.l.bf16 %v4052_v31  ;;  %v4054_v16 = vunpack.i.h.bf16 %v4052_v31 }
 0x448   :  { %1238 = vmatpush.msrb.mxu2 %v4034_v63 }
 0x449   :  { %3753 = vmatmul.msk.f32.gmra.mxu3 %vm716_vm2, %v979_v0  ;;  %v5351_v0 = vpop.f32.mrf.mxu3 }
 0x44a   :  { %1239 = vmatpush.msrb.mxu2 %v4038_v46 }
 0x44c   :  { %1240 = vmatpush.msrb.mxu2 %v4039_v48 }
 0x44e   :  { %1241 = vmatpush.msrb.mxu2 %v4043_v59 }
 0x450   :  { %1242 = vmatpush.msrb.mxu2 %v4044_v28 }
 0x451   :  { %3754 = vmatmul.msk.f32.gmra.mxu3 %vm716_vm2, %v981_v23  ;;  %v5353_v40 = vpop.f32.mrf.mxu3 }
 0x452   :  { %1243 = vmatpush.msrb.mxu2 %v4048_v36 }
 0x454   :  { %1244 = vmatpush.msrb.mxu2 %v4049_v45 }
 0x456   :  { %1245 = vmatpush.msrb.mxu2 %v4053_v29 }
 0x458   :  { %1246 = vmatpush.msrb.mxu2 %v4054_v16 }
 0x459   :  { %3755 = vmatmul.msk.f32.gmra.mxu3 %vm716_vm2, %v983_v57  ;;  %v5355_v61 = vpop.f32.mrf.mxu3 }
 0x461   :  { %3756 = vmatmul.msk.f32.gmra.mxu3 %vm716_vm2, %v985_v19  ;;  %v5357_v2 = vpop.f32.mrf.mxu3 }
 0x49c   :  { %v5359_v23 = vpop.f32.mrf.mxu3 }
 0x4a4   :  { %v5361_v35 = vpop.f32.mrf.mxu3 }
 0x4a5   :  { %6902 = vst [vmem:[#allocation14_spill] sm:$0xff] %v5361_v35 }
 0x4ac   :  { %v5363_v50 = vpop.f32.mrf.mxu3 }
 0x4ad   :  { %6903 = vst [vmem:[#allocation15_spill] sm:$0xff] %v5363_v50 }
 0x4b4   :  { %v1081_v32 = vpop.f32.mrf.mxu3 }
 0x4b5   :  { %v1102_v49 = vmul.f32 0.35355338, %v1081_v32 }
 0x4b7   :  { %v1109_v57 = vadd.f32 %v1102_v49, %v5275_v12 }
 0x4b9   :  { %1116 = vmax.xlane.f32.xlu1 %v1109_v57 }
 0x4bc   :  { %v1084_v19 = vpop.f32.mrf.mxu3 }
 0x4bd   :  { %v1103_v63 = vmul.f32 0.35355338, %v1084_v19 }
 0x4bf   :  { %v1110_v6 = vadd.f32 %v1103_v63, %v5275_v12 }
 0x4c1   :  { %1118 = vmax.xlane.f32.xlu2 %v1110_v6 }
 0x4c4   :  { %v1087_v46 = vpop.f32.mrf.mxu3 }
 0x4c5   :  { %v1104_v43 = vmul.f32 0.35355338, %v1087_v46 }
 0x4c7   :  { %v1111_v48 = vadd.f32 %v1104_v43, %v5275_v12  ;;  %v5387_v43 = vpop.f32.mrf.mxu1 }
 0x4c8   :  { %6904 = vst [vmem:[#allocation16_spill] sm:$0xff] %v5387_v43 }
 0x4c9   :  { %1120 = vmax.xlane.f32.xlu0 %v1111_v48 }
 0x4cc   :  { %v1090_v59 = vpop.f32.mrf.mxu3 }
 0x4cd   :  { %v1105_v28 = vmul.f32 0.35355338, %v1090_v59 }
 0x4cf   :  { %v5369_v36 = vadd.f32 %v1105_v28, %v5275_v12 }
 0x4d1   :  { %1122 = vmax.xlane.f32.xlu2 %v5369_v36 }
 0x4d4   :  { %v1093_v31 = vpop.f32.mrf.mxu3 }
 0x4d5   :  { %v1106_v45 = vmul.f32 0.35355338, %v1093_v31 }
 0x4d7   :  { %v1113_v29 = vadd.f32 %v1106_v45, %v5275_v12 }
 0x4d9   :  { %1124 = vmax.xlane.f32.xlu0 %v1113_v29 }
 0x4dc   :  { %v1096_v16 = vpop.f32.mrf.mxu3 }
 0x4dd   :  { %v1107_v32 = vmul.f32 0.35355338, %v1096_v16 }
 0x4df   :  { %v5374_v49 = vadd.f32 %v1107_v32, %v5275_v12  ;;  %v5391_v32 = vpop.f32.mrf.mxu1 }
 0x4e0   :  { %6905 = vst [vmem:[#allocation17_spill] sm:$0xff] %v5391_v32 }
 0x4e1   :  { %1126 = vmax.xlane.f32.xlu1 %v5374_v49 }
 0x4e4   :  { %v1099_v19 = vpop.f32.mrf.mxu3 }
 0x4e5   :  { %v1108_v63 = vmul.f32 0.35355338, %v1099_v19 }
 0x4e7   :  { %v5382_v46 = vadd.f32 %v1108_v63, %v5275_v12 }
 0x4e9   :  { %4061 = vrot.lane.b32.xlu2 %v5197_v58, %s4563_s11 }
 0x4fa   :  { %4056 = vrot.lane.b32.xlu1 %v5172_v26, %s4563_s11 }
 0x512   :  { %1128 = vmax.xlane.f32.xlu2 %v5382_v46 }
 0x52a   :  { %1430 = vrot.lane.b32.xlu2 %v5037_v8, %s4564_s12 }
 0x52c   :  { %v1117_v59 = vpop.xlane.xlu1 %1116 }
 0x52d   :  { %v1130_v28 = vsub.f32 %v1109_v57, %v1117_v59 }
 0x52f   :  { %v1137_v31 = vmul.f32 1.442695, %v1130_v28 }
 0x531   :  { %4336 = vpow2.f32 %v1137_v31  ;;  %v5400_v31 = vpop.f32.mrf.mxu1 }
 0x532   :  { %1418 = vrot.lane.b32.xlu2 %v5159_v25, %s4564_s12  ;;  %6906 = vst [vmem:[#allocation18_spill] sm:$0xff] %v5400_v31  ;;  %v597_v31 = vld [vmem:[%s6879_s6 + $0xe8] sm:$0xff] }
 0x534   :  { %v1119_v45 = vpop.xlane.xlu2 %1118 }
 0x535   :  { %v1131_v16 = vsub.f32 %v1110_v6, %v1119_v45 }
 0x537   :  { %v5393_v19 = vpop.eup %4336  ;;  %v1139_v63 = vmul.f32 1.442695, %v1131_v16 }
 0x538   :  { %1151 = vadd.xlane.f32.xlu0 %v5393_v19 }
 0x539   :  { %4338 = vpow2.f32 %v1139_v63  ;;  %v5406_v45 = vpop.f32.mrf.mxu1 }
 0x53a   :  { %1412 = vrot.lane.b32.xlu2 %v5168_v52, %s4564_s12 }
 0x53c   :  { %v1121_v21 = vpop.xlane.xlu0 %1120 }
 0x53d   :  { %v1132_v57 = vsub.f32 %v1111_v48, %v1121_v21 }
 0x53f   :  { %v5398_v59 = vpop.eup %4338  ;;  %v1141_v28 = vmul.f32 1.442695, %v1132_v57 }
 0x540   :  { %1153 = vadd.xlane.f32.xlu0 %v5398_v59 }
 0x541   :  { %4340 = vpow2.f32 %v1141_v28  ;;  %v5408_v63 = vpop.f32.mrf.mxu1 }
 0x544   :  { %v1123_v28 = vpop.xlane.xlu2 %1122 }
 0x547   :  { %v5403_v6 = vpop.eup %4340 }
 0x548   :  { %1155 = vadd.xlane.f32.xlu1 %v5403_v6 }
 0x549   :  { %v5414_v48 = vpop.f32.mrf.mxu1 }
 0x54c   :  { %v1125_v16 = vpop.xlane.xlu0 %1124 }
 0x54d   :  { %v1134_v32 = vsub.f32 %v1113_v29, %v1125_v16 }
 0x54f   :  { %v1145_v21 = vmul.f32 1.442695, %v1134_v32 }
 0x551   :  { %4342 = vpow2.f32 %v1145_v21  ;;  %v5425_v29 = vpop.f32.mrf.mxu1  ;;  %v4062_v21 = vpop.permute.xlu2 %4061 }
 0x552   :  { %v4063_v12 = vunpack.i.l.bf16 %v4062_v21  ;;  %v4064_v24 = vunpack.i.h.bf16 %v4062_v21 }
 0x554   :  { %1436 = vrot.lane.b32.xlu0 %v5075_v9, %s4564_s12  ;;  %v5421_v18 = vpop.xlane.xlu1 %1126 }
 0x557   :  { %v5418_v57 = vpop.eup %4342 }
 0x559   :  { %v5433_v50 = vpop.f32.mrf.mxu1 }
 0x55c   :  { %1432 = vrot.lane.b32.xlu0 %v5009_v54, %s4564_s12 }
 0x561   :  { %1434 = vrot.lane.b32.xlu1 %v5109_v5, %s4564_s12 }
 0x563   :  { %1159 = vadd.xlane.f32.xlu2 %v5418_v57 }
 0x564   :  { %1428 = vrot.lane.b32.xlu0 %v4968_v4, %s4564_s12 }
 0x569   :  { %1424 = vrot.lane.b32.xlu1 %v5132_v11, %s4564_s12 }
 0x56c   :  { %1426 = vrot.lane.b32.xlu0 %v4984_v14, %s4564_s12  ;;  %v4057_v32 = vpop.permute.xlu1 %4056 }
 0x56d   :  { %v4058_v16 = vunpack.i.l.bf16 %v4057_v32  ;;  %v4059_v43 = vunpack.i.h.bf16 %v4057_v32  ;;  %v5441_v32 = vpop.f32.mrf.mxu1 }
 0x56f   :  { %1247 = vmatpush.msrb.mxu2 %v4058_v16 }
 0x571   :  { %1420 = vrot.lane.b32.xlu1 %v5007_v53, %s4564_s12  ;;  %1248 = vmatpush.msrb.mxu2 %v4059_v43 }
 0x573   :  { %1249 = vmatpush.msrb.mxu2 %v4063_v12 }
 0x574   :  { %1422 = vrot.lane.b32.xlu0 %v5073_v55, %s4564_s12 }
 0x575   :  { %1250 = vmatpush.msrb.mxu2 %v4064_v24  ;;  %v5447_v12 = vpop.f32.mrf.mxu1  ;;  %v1133_v24 = vsub.f32 %v5369_v36, %v1123_v28 }
 0x577   :  { %v1143_v16 = vmul.f32 1.442695, %v1133_v24  ;;  %v1273_v24 = vld [vmem:[%s6876_s3 + $0x8] sm:$0xff] }
 0x578   :  { %1310 = vmatpush.msra.mxu3 %v1273_v24 }
 0x579   :  { %1414 = vrot.lane.b32.xlu1 %v5035_v7, %s4564_s12  ;;  %4344 = vpow2.f32 %v1143_v16 }
 0x57b   :  { %1406 = vrot.lane.b32.xlu2 %v5187_v37, %s4564_s12 }
 0x57d   :  { %v5454_v43 = vpop.f32.mrf.mxu1 }
 0x57f   :  { %v5466_v36 = vpop.eup %4344 }
 0x581   :  { %1408 = vrot.lane.b32.xlu1 %v5071_v41, %s4564_s12 }
 0x583   :  { %1396 = vrot.lane.b32.xlu2 %v5130_v10, %s4565_s13 }
 0x585   :  { %v5462_v21 = vpop.f32.mrf.mxu1 }
 0x589   :  { %1394 = vrot.lane.b32.xlu1 %v5071_v41, %s4565_s13 }
 0x58b   :  { %1402 = vrot.lane.b32.xlu2 %v5100_v60, %s4565_s13 }
 0x58d   :  { %v5473_v28 = vpop.f32.mrf.mxu1 }
 0x591   :  { %1400 = vrot.lane.b32.xlu1 %v5035_v7, %s4565_s13 }
 0x593   :  { %4066 = vrot.lane.b32.xlu2 %v5157_v22, %s4566_s2  ;;  %v5482_v22 = vpop.xlane.xlu2 %1128 }
 0x599   :  { %4071 = vrot.lane.b32.xlu1 %v5201_v34, %s4566_s2 }
 0x59b   :  { %4096 = vrot.lane.b32.xlu2 %v5172_v26, %s4566_s2  ;;  %v495_v26 = vpop.f32.mrf.mxu1 }
 0x59e   :  { %1157 = vadd.xlane.f32.xlu0 %v5466_v36 }
 0x5a1   :  { %4081 = vrot.lane.b32.xlu1 %v5211_v17, %s4566_s2 }
 0x5a3   :  { %1802 = vrot.lane.b32.xlu2 %v5109_v5, %s4567_s14 }
 0x5a9   :  { %4101 = vrot.lane.b32.xlu1 %v5197_v58, %s4566_s2 }
 0x5ab   :  { %v1152_v16 = vpop.xlane.xlu0 %1151  ;;  %1794 = vrot.lane.b32.xlu2 %v4984_v14, %s4567_s14  ;;  %v5491_v14 = vpop.f32.mrf.mxu1 }
 0x5ac   :  { %4346 = vrcp.f32 %v1152_v16 }
 0x5b1   :  { %1798 = vrot.lane.b32.xlu1 %v5037_v8, %s4567_s14  ;;  %v1431_v8 = vpop.permute.xlu2 %1430 }
 0x5b2   :  { %v4347_v5 = vpop.eup %4346  ;;  %1416 = vrot.lane.b32.xlu0 %v5100_v60, %s4564_s12 }
 0x5b3   :  { %v1154_v17 = vpop.xlane.xlu0 %1153  ;;  %1790 = vrot.lane.b32.xlu2 %v5073_v55, %s4567_s14  ;;  %v1172_v24 = vmul.f32 %v4347_v5, %v5393_v19  ;;  %v599_v19 = vld [vmem:[%s6879_s6 + $0xf8] sm:$0xff] }
 0x5b4   :  { %4348 = vrcp.f32 %v1154_v17  ;;  %v501_v17 = vpop.f32.mrf.mxu1 }
 0x5b5   :  { %1180 = vst [vmem:[#allocation2 + $0x38] sm:$0xff] %v1172_v24  ;;  %1251 = vmatmul.f32.vlgmr.msrb.gmra.mxu2 %v1172_v24 }
 0x5b9   :  { %1784 = vrot.lane.b32.xlu1 %v5100_v60, %s4567_s14 }
 0x5ba   :  { %v4349_v16 = vpop.eup %4348 }
 0x5bb   :  { %v1156_v58 = vpop.xlane.xlu1 %1155  ;;  %1786 = vrot.lane.b32.xlu2 %v5159_v25, %s4567_s14  ;;  %v1173_v34 = vmul.f32 %v4349_v16, %v5398_v59  ;;  %v5509_v59 = vpop.permute.xlu2 %1418 }
 0x5bc   :  { %4350 = vrcp.f32 %v1156_v58  ;;  %v535_v58 = vld [vmem:[%s6878_s5 + $0xf8] sm:$0xff] }
 0x5bd   :  { %1181 = vst [vmem:[#allocation2 + $0x40] sm:$0xff] %v1173_v34  ;;  %1254 = vmatmul.f32.gmra.mxu2 %v1173_v34  ;;  %v631_v34 = vmul.f32 %v599_v19, %v501_v17  ;;  %v567_v16 = vmul.f32 %v535_v58, %v5069_v39  ;;  %v1135_v17 = vsub.f32 %v5374_v49, %v5421_v18 }
 0x5bf   :  { %v5516_v35 = vadd.f32 %v631_v34, %v567_v16  ;;  %v595_v34 = vld [vmem:[%s6879_s6 + $0xd8] sm:$0xff] }
 0x5c1   :  { %1778 = vrot.lane.b32.xlu1 %v5130_v10, %s4567_s14 }
 0x5c2   :  { %v4351_v55 = vpop.eup %4350 }
 0x5c3   :  { %1780 = vrot.lane.b32.xlu2 %v5168_v52, %s4567_s14  ;;  %v1174_v5 = vmul.f32 %v4351_v55, %v5403_v6  ;;  %v533_v6 = vld [vmem:[%s6878_s5 + $0xe8] sm:$0xff]  ;;  %v629_v55 = vmul.f32 %v597_v31, %v495_v26  ;;  %v5528_v19 = vpop.permute.xlu2 %1412  ;;  %v627_v26 = vmul.f32 %v595_v34, %v5462_v21  ;;  %v1136_v31 = vsub.f32 %v5382_v46, %v5482_v22  ;;  %v971_v21 = vld [vmem:[%s6876_s3] sm:$0xff] }
 0x5c4   :  { %v565_v39 = vmul.f32 %v533_v6, %v5005_v44  ;;  %v531_v44 = vld [vmem:[%s6878_s5 + $0xd8] sm:$0xff]  ;;  %1369 = vmatpush.msra.mxu2 %v971_v21  ;;  %v529_v22 = vld [vmem:[%s6878_s5 + $0xc8] sm:$0xff] }
 0x5c5   :  { %1182 = vst [vmem:[#allocation2 + $0x48] sm:$0xff] %v1174_v5  ;;  %1257 = vmatmul.f32.gmra.mxu2 %v1174_v5  ;;  %v563_v49 = vmul.f32 %v531_v44, %v4966_v1  ;;  %v1149_v1 = vmul.f32 1.442695, %v1136_v31 }
 0x5c6   :  { %v1437_v24 = vpop.permute.xlu0 %1436  ;;  %v5530_v58 = vadd.f32 %v629_v55, %v565_v39  ;;  %v593_v39 = vld [vmem:[%s6879_s6 + $0xc8] sm:$0xff] }
 0x5c7   :  { %3771 = vmatpush.xpose.msk.msrb.mxu3 %vm716_vm2, %v1437_v24  ;;  %v1147_v24 = vmul.f32 1.442695, %v1135_v17  ;;  %v5547_v6 = vadd.f32 %v627_v26, %v563_v49  ;;  %v625_v17 = vmul.f32 %v593_v39, %v5447_v12  ;;  %v591_v12 = vld [vmem:[%s6879_s6 + $0xb8] sm:$0xff]  ;;  %v589_v39 = vld [vmem:[%s6879_s6 + $0xa8] sm:$0xff] }
 0x5c8   :  { %v623_v49 = vmul.f32 %v591_v12, %v5433_v50  ;;  %v525_v50 = vld [vmem:[%s6878_s5 + $0xa8] sm:$0xff] }
 0x5c9   :  { %1774 = vrot.lane.b32.xlu1 %v5187_v37, %s4567_s14  ;;  %4352 = vpow2.f32 %v1147_v24  ;;  %v561_v24 = vmul.f32 %v529_v22, %v4949_v51  ;;  %v527_v51 = vld [vmem:[%s6878_s5 + $0xb8] sm:$0xff] }
 0x5cb   :  { %2192 = vrot.lane.b32.xlu2 %v5516_v35, %s4558_s20 }
 0x5ce   :  { %v1433_v5 = vpop.permute.xlu0 %1432 }
 0x5cf   :  { %v5561_v46 = vpop.eup %4352 }
 0x5d1   :  { %2188 = vrot.lane.b32.xlu1 %v5530_v58, %s4558_s20 }
 0x5d3   :  { %v1435_v18 = vpop.permute.xlu1 %1434  ;;  %1760 = vrot.lane.b32.xlu2 %v5187_v37, %s4568_s29 }
 0x5d4   :  { %3772 = vmatpush.xpose.msk.msrb.mxu3 %vm716_vm2, %v1435_v18  ;;  %v5574_v18 = vadd.f32 %v625_v17, %v561_v24  ;;  %v557_v17 = vmul.f32 %v525_v50, %v4923_v33  ;;  %v587_v24 = vld [vmem:[%s6879_s6 + $0x98] sm:$0xff] }
 0x5d5   :  { %v619_v12 = vmul.f32 %v587_v24, %v5406_v45 }
 0x5d6   :  { %v1160_v16 = vpop.xlane.xlu2 %1159  ;;  %v1429_v55 = vpop.permute.xlu0 %1428 }
 0x5d7   :  { %4354 = vrcp.f32 %v1160_v16  ;;  %v559_v16 = vmul.f32 %v527_v51, %v4935_v42 }
 0x5d8   :  { %3773 = vmatpush.xpose.msk.msrb.mxu3 %vm716_vm2, %v1433_v5  ;;  %4356 = vpow2.f32 %v1149_v1  ;;  %v621_v1 = vmul.f32 %v589_v39, %v5414_v48  ;;  %v523_v48 = vld [vmem:[%s6878_s5 + $0x98] sm:$0xff] }
 0x5d9   :  { %2184 = vrot.lane.b32.xlu1 %v5547_v6, %s4558_s20  ;;  %v5596_v21 = vadd.f32 %v623_v49, %v559_v16 }
 0x5db   :  { %v1425_v34 = vpop.permute.xlu1 %1424  ;;  %1762 = vrot.lane.b32.xlu2 %v5071_v41, %s4568_s29 }
 0x5dc   :  { %1161 = vadd.xlane.f32.xlu0 %v5561_v46  ;;  %3774 = vmatpush.xpose.msk.msrb.mxu3 %vm716_vm2, %v1431_v8 }
 0x5dd   :  { %v4355_v5 = vpop.eup %4354 }
 0x5de   :  { %v5569_v44 = vpop.permute.xlu2 %1406  ;;  %v5572_v26 = vmul.f32 %v4355_v5, %v5418_v57  ;;  %v1427_v8 = vpop.permute.xlu0 %1426 }
 0x5df   :  { %v5586_v57 = vpop.eup %4356 }
 0x5e0   :  { %3775 = vmatpush.xpose.msk.msrb.mxu3 %vm716_vm2, %v1429_v55  ;;  %1184 = vst [vmem:[#allocation2 + $0x58] sm:$0xff] %v5572_v26 }
 0x5e1   :  { %2180 = vrot.lane.b32.xlu1 %v5574_v18, %s4558_s20 }
 0x5e3   :  { %v1421_v31 = vpop.permute.xlu1 %1420  ;;  %1764 = vrot.lane.b32.xlu2 %v5130_v10, %s4568_s29 }
 0x5e4   :  { %1163 = vadd.xlane.f32.xlu0 %v5586_v57  ;;  %3776 = vmatpush.xpose.msk.msrb.mxu3 %vm716_vm2, %v1427_v8  ;;  %v555_v8 = vmul.f32 %v523_v48, %v4909_v27 }
 0x5e6   :  { %v5594_v55 = vpop.permute.xlu2 %1396  ;;  %v1423_v42 = vpop.permute.xlu0 %1422  ;;  %v5633_v49 = vadd.f32 %v619_v12, %v555_v8 }
 0x5e8   :  { %3777 = vmatpush.xpose.msk.msrb.mxu3 %vm716_vm2, %v1425_v34  ;;  %v5614_v34 = vadd.f32 %v621_v1, %v557_v17 }
 0x5e9   :  { %2176 = vrot.lane.b32.xlu1 %v5596_v21, %s4558_s20 }
 0x5eb   :  { %v1415_v22 = vpop.permute.xlu1 %1414  ;;  %1766 = vrot.lane.b32.xlu2 %v5168_v52, %s4568_s29 }
 0x5ec   :  { %3778 = vmatpush.xpose.msk.msrb.mxu3 %vm716_vm2, %v1423_v42 }
 0x5ee   :  { %v5612_v5 = vpop.permute.xlu2 %1402 }
 0x5f0   :  { %3779 = vmatpush.xpose.msk.msrb.mxu3 %vm716_vm2, %v1421_v31 }
 0x5f1   :  { %2172 = vrot.lane.b32.xlu1 %v5614_v34, %s4558_s20 }
 0x5f3   :  { %v5626_v33 = vpop.permute.xlu1 %1408  ;;  %1768 = vrot.lane.b32.xlu2 %v5035_v7, %s4568_s29 }
 0x5f4   :  { %3780 = vmatpush.xpose.msk.msrb.mxu3 %vm716_vm2, %v5509_v59 }
 0x5f6   :  { %v4067_v51 = vpop.permute.xlu2 %4066 }
 0x5f7   :  { %v4068_v31 = vunpack.i.l.bf16 %v4067_v51  ;;  %v4069_v16 = vunpack.i.h.bf16 %v4067_v51 }
 0x5f8   :  { %1410 = vrot.lane.b32.xlu0 %v5130_v10, %s4564_s12 }
 0x5f9   :  { %2168 = vrot.lane.b32.xlu1 %v5633_v49, %s4558_s20  ;;  %1655 = vmatpush.msrb.mxu2 %v4068_v31 }
 0x5fb   :  { %v5639_v45 = vpop.permute.xlu1 %1394  ;;  %1770 = vrot.lane.b32.xlu2 %v5100_v60, %s4568_s29  ;;  %1656 = vmatpush.msrb.mxu2 %v4069_v16  ;;  %v1693_v60 = vld [vmem:[%s6876_s3 + $0x10] sm:$0xff] }
 0x5fc   :  { %1730 = vmatpush.msra.mxu0 %v1693_v60  ;;  %v594_v60 = vld [vmem:[%s6879_s6 + $0xd0] sm:$0xff] }
 0x5fe   :  { %v5643_v59 = vpop.permute.xlu2 %4096 }
 0x600   :  { %1392 = vrot.lane.b32.xlu0 %v5187_v37, %s4565_s13 }
 0x603   :  { %v5647_v27 = vpop.permute.xlu1 %1400  ;;  %1772 = vrot.lane.b32.xlu2 %v5159_v25, %s4568_s29 }
 0x606   :  { %v5651_v10 = vpop.permute.xlu2 %1802 }
 0x608   :  { %1398 = vrot.lane.b32.xlu0 %v5168_v52, %s4565_s13 }
 0x60b   :  { %v4072_v39 = vpop.permute.xlu1 %4071 }
 0x60c   :  { %v4073_v50 = vunpack.i.l.bf16 %v4072_v39  ;;  %v4074_v1 = vunpack.i.h.bf16 %v4072_v39  ;;  %v596_v39 = vld [vmem:[%s6879_s6 + $0xe0] sm:$0xff] }
 0x60e   :  { %v5658_v42 = vpop.permute.xlu2 %1794  ;;  %1657 = vmatpush.msrb.mxu2 %v4073_v50 }
 0x610   :  { %1404 = vrot.lane.b32.xlu0 %v5159_v25, %s4565_s13  ;;  %1658 = vmatpush.msrb.mxu2 %v4074_v1 }
 0x611   :  { %v1158_v37 = vpop.xlane.xlu0 %1157 }
 0x612   :  { %4358 = vrcp.f32 %v1158_v37  ;;  %v592_v37 = vld [vmem:[%s6879_s6 + $0xc0] sm:$0xff] }
 0x616   :  { %v5662_v17 = vpop.permute.xlu2 %1790 }
 0x618   :  { %v4359_v52 = vpop.eup %4358  ;;  %4076 = vrot.lane.b32.xlu0 %v5104_v62, %s4566_s2 }
 0x619   :  { %v1175_v24 = vmul.f32 %v4359_v52, %v5466_v36 }
 0x61b   :  { %1183 = vst [vmem:[#allocation2 + $0x50] sm:$0xff] %v1175_v24  ;;  %1260 = vmatmul.f32.gmra.mxu2 %v1175_v24  ;;  %v590_v24 = vld [vmem:[%s6879_s6 + $0xb0] sm:$0xff] }
 0x61e   :  { %v5667_v48 = vpop.permute.xlu2 %1786 }
 0x620   :  { %4086 = vrot.lane.b32.xlu0 %v5219_v15, %s4566_s2 }
 0x623   :  { %1263 = vmatmul.f32.gmra.mxu2 %v5572_v26 }
 0x624   :  { %v1417_v25 = vpop.permute.xlu0 %1416 }
 0x625   :  { %3781 = vmatpush.xpose.msk.msrb.mxu3 %vm716_vm2, %v1417_v25  ;;  %v526_v25 = vld [vmem:[%s6878_s5 + $0xb0] sm:$0xff] }
 0x626   :  { %v5673_v12 = vpop.permute.xlu2 %1780 }
 0x628   :  { %4091 = vrot.lane.b32.xlu0 %v5225_v20, %s4566_s2 }
 0x629   :  { %3782 = vmatpush.xpose.msk.msrb.mxu3 %vm716_vm2, %v1415_v22 }
 0x62d   :  { %3783 = vmatpush.xpose.msk.msrb.mxu3 %vm716_vm2, %v5528_v19 }
 0x62e   :  { %v2193_v36 = vpop.permute.xlu2 %2192 }
 0x62f   :  { %3831 = vmatpush.xpose.msk.msrb.mxu0 %vm716_vm2, %v2193_v36 }
 0x630   :  { %1804 = vrot.lane.b32.xlu0 %v5075_v9, %s4567_s14 }
 0x638   :  { %v1252_v26 = vpop.f32.mrf.mxu2  ;;  %1800 = vrot.lane.b32.xlu0 %v5009_v54, %s4567_s14 }
 0x639   :  { %3757 = vmatmul.msk.f32.vlgmr.msra.gmra.mxu3 %vm716_vm2, %v1252_v26  ;;  %v588_v26 = vld [vmem:[%s6879_s6 + $0xa0] sm:$0xff] }
 0x640   :  { %v1255_v8 = vpop.f32.mrf.mxu2  ;;  %1796 = vrot.lane.b32.xlu0 %v4968_v4, %s4567_s14 }
 0x641   :  { %3758 = vmatmul.msk.f32.gmra.mxu3 %vm716_vm2, %v1255_v8  ;;  %v524_v8 = vld [vmem:[%s6878_s5 + $0xa0] sm:$0xff] }
 0x648   :  { %v1258_v22 = vpop.f32.mrf.mxu2  ;;  %1792 = vrot.lane.b32.xlu0 %v5132_v11, %s4567_s14  ;;  %v598_v11 = vld [vmem:[%s6879_s6 + $0xf0] sm:$0xff] }
 0x649   :  { %3759 = vmatmul.msk.f32.gmra.mxu3 %vm716_vm2, %v1258_v22  ;;  %v556_v22 = vmul.f32 %v524_v8, %v4916_v30  ;;  %v6908_v30 = vld [vmem:[#allocation18_spill] sm:$0xff] }
 0x64f   :  { %v1162_v19 = vpop.xlane.xlu0 %1161 }
 0x650   :  { %4360 = vrcp.f32 %v1162_v19  ;;  %1788 = vrot.lane.b32.xlu0 %v5007_v53, %s4567_s14  ;;  %v534_v53 = vld [vmem:[%s6878_s5 + $0xf0] sm:$0xff]  ;;  %v4082_v19 = vpop.permute.xlu1 %4081 }
 0x656   :  { %v4361_v54 = vpop.eup %4360 }
 0x657   :  { %v1164_v9 = vpop.xlane.xlu0 %1163  ;;  %v1177_v51 = vmul.f32 %v4361_v54, %v5561_v46  ;;  %v566_v46 = vmul.f32 %v534_v53, %v5033_v3 }
 0x658   :  { %4362 = vrcp.f32 %v1164_v9  ;;  %1782 = vrot.lane.b32.xlu0 %v5035_v7, %s4567_s14  ;;  %v630_v7 = vmul.f32 %v598_v11, %v5491_v14  ;;  %v628_v14 = vmul.f32 %v596_v39, %v5473_v28 }
 0x659   :  { %1185 = vst [vmem:[#allocation2 + $0x60] sm:$0xff] %v1177_v51  ;;  %1266 = vmatmul.f32.gmra.mxu2 %v1177_v51  ;;  %v586_v51 = vld [vmem:[%s6879_s6 + $0x90] sm:$0xff] }
 0x65a   :  { %v5708_v16 = vadd.f32 %v630_v7, %v566_v46  ;;  %v618_v11 = vmul.f32 %v586_v51, %v6908_v30  ;;  %v6909_v46 = vld [vmem:[#allocation7_spill] sm:$0xff] }
 0x65e   :  { %v4363_v4 = vpop.eup %4362 }
 0x65f   :  { %v1178_v31 = vmul.f32 %v4363_v4, %v5586_v57  ;;  %v4083_v4 = vunpack.i.l.bf16 %v4082_v19 }
 0x660   :  { %1776 = vrot.lane.b32.xlu0 %v5071_v41, %s4567_s14  ;;  %v532_v41 = vld [vmem:[%s6878_s5 + $0xe0] sm:$0xff] }
 0x661   :  { %1186 = vst [vmem:[#allocation2 + $0x68] sm:$0xff] %v1178_v31  ;;  %1269 = vmatmul.f32.gmra.mxu2 %v1178_v31  ;;  %v564_v3 = vmul.f32 %v532_v41, %v4982_v13  ;;  %v626_v13 = vmul.f32 %v594_v60, %v5454_v43  ;;  %v624_v43 = vmul.f32 %v592_v37, %v5441_v32  ;;  %v4084_v31 = vunpack.i.h.bf16 %v4082_v19  ;;  %v4102_v37 = vpop.permute.xlu1 %4101  ;;  %v1761_v19 = vpop.permute.xlu2 %1760 }
 0x663   :  { %v5723_v50 = vadd.f32 %v628_v14, %v564_v3 }
 0x668   :  { %2190 = vrot.lane.b32.xlu0 %v5708_v16, %s4558_s20 }
 0x669   :  { %3764 = vmatmul.msk.f32.vlgmr.msra.gmra.mxu2 %vm716_vm2, %v5351_v0  ;;  %v530_v0 = vld [vmem:[%s6878_s5 + $0xd0] sm:$0xff]  ;;  %v1763_v51 = vpop.permute.xlu2 %1762 }
 0x66a   :  { %v1411_v57 = vpop.permute.xlu0 %1410  ;;  %v562_v1 = vmul.f32 %v530_v0, %v4954_v56 }
 0x66b   :  { %3784 = vmatpush.xpose.msk.msrb.mxu3 %vm716_vm2, %v1411_v57  ;;  %v6910_v57 = vld [vmem:[#allocation15_spill] sm:$0xff] }
 0x66f   :  { %3785 = vmatpush.xpose.msk.msrb.mxu3 %vm716_vm2, %v5626_v33  ;;  %v5743_v33 = vadd.f32 %v626_v13, %v562_v1  ;;  %v4098_v1 = vunpack.i.l.bf16 %v5643_v59 }
 0x670   :  { %2186 = vrot.lane.b32.xlu0 %v5723_v50, %s4558_s20 }
 0x671   :  { %3765 = vmatmul.msk.f32.gmra.mxu2 %vm716_vm2, %v5353_v40  ;;  %v528_v40 = vld [vmem:[%s6878_s5 + $0xc0] sm:$0xff] }
 0x672   :  { %v5738_v28 = vpop.permute.xlu0 %1392  ;;  %v560_v56 = vmul.f32 %v528_v40, %v4942_v47  ;;  %v558_v47 = vmul.f32 %v526_v25, %v4930_v38  ;;  %v4099_v40 = vunpack.i.h.bf16 %v5643_v59 }
 0x673   :  { %3786 = vmatpush.xpose.msk.msrb.mxu3 %vm716_vm2, %v5569_v44 }
 0x674   :  { %v5759_v52 = vadd.f32 %v624_v43, %v560_v56  ;;  %v4103_v56 = vunpack.i.l.bf16 %v4102_v37 }
 0x678   :  { %2182 = vrot.lane.b32.xlu0 %v5743_v33, %s4558_s20 }
 0x679   :  { %3766 = vmatmul.msk.f32.gmra.mxu2 %vm716_vm2, %v5355_v61  ;;  %v622_v61 = vmul.f32 %v590_v24, %v5425_v29  ;;  %v4104_v24 = vunpack.i.h.bf16 %v4102_v37 }
 0x67a   :  { %v5756_v44 = vpop.permute.xlu0 %1398 }
 0x67b   :  { %v5775_v36 = vadd.f32 %v622_v61, %v558_v47  ;;  %v1799_v47 = vpop.permute.xlu1 %1798 }
 0x680   :  { %2178 = vrot.lane.b32.xlu0 %v5759_v52, %s4558_s20 }
 0x681   :  { %3767 = vmatmul.msk.f32.gmra.mxu2 %vm716_vm2, %v5357_v2  ;;  %v620_v2 = vmul.f32 %v588_v26, %v5408_v63  ;;  %v6907_v63 = vld [vmem:[#allocation14_spill] sm:$0xff] }
 0x682   :  { %v5772_v32 = vpop.permute.xlu0 %1404 }
 0x683   :  { %v5789_v9 = vadd.f32 %v620_v2, %v556_v22  ;;  %v1785_v26 = vpop.permute.xlu1 %1784 }
 0x688   :  { %2174 = vrot.lane.b32.xlu0 %v5775_v36, %s4558_s20 }
 0x689   :  { %3768 = vmatmul.msk.f32.gmra.mxu2 %vm716_vm2, %v5359_v23  ;;  %v522_v23 = vld [vmem:[%s6878_s5 + $0x90] sm:$0xff] }
 0x68a   :  { %v4077_v29 = vpop.permute.xlu0 %4076  ;;  %v554_v39 = vmul.f32 %v522_v23, %v6909_v46 }
 0x68b   :  { %v4078_v38 = vunpack.i.l.bf16 %v4077_v29  ;;  %v4079_v54 = vunpack.i.h.bf16 %v4077_v29  ;;  %v1779_v2 = vpop.permute.xlu1 %1778 }
 0x68c   :  { %v5803_v41 = vadd.f32 %v618_v11, %v554_v39 }
 0x68d   :  { %1659 = vmatpush.msrb.mxu2 %v4078_v38 }
 0x68f   :  { %1660 = vmatpush.msrb.mxu2 %v4079_v54 }
 0x690   :  { %2170 = vrot.lane.b32.xlu0 %v5789_v9, %s4558_s20 }
 0x691   :  { %3769 = vmatmul.msk.f32.gmra.mxu2 %vm716_vm2, %v6907_v63  ;;  %v1765_v63 = vpop.permute.xlu2 %1764 }
 0x692   :  { %1661 = vmatpush.msrb.mxu2 %v4083_v4  ;;  %v4087_v53 = vpop.permute.xlu0 %4086 }
 0x693   :  { %v4088_v7 = vunpack.i.l.bf16 %v4087_v53  ;;  %v4089_v14 = vunpack.i.h.bf16 %v4087_v53  ;;  %v1775_v29 = vpop.permute.xlu1 %1774 }
 0x694   :  { %1662 = vmatpush.msrb.mxu2 %v4084_v31 }
 0x696   :  { %1663 = vmatpush.msrb.mxu2 %v4088_v7 }
 0x698   :  { %1664 = vmatpush.msrb.mxu2 %v4089_v14  ;;  %2166 = vrot.lane.b32.xlu0 %v5803_v41, %s4558_s20 }
 0x699   :  { %3770 = vmatmul.msk.f32.gmra.mxu2 %vm716_vm2, %v6910_v57  ;;  %v1767_v53 = vpop.permute.xlu2 %1766 }
 0x69a   :  { %v4092_v3 = vpop.permute.xlu0 %4091 }
 0x69b   :  { %v4093_v60 = vunpack.i.l.bf16 %v4092_v3  ;;  %v4094_v0 = vunpack.i.h.bf16 %v4092_v3  ;;  %v2189_v22 = vpop.permute.xlu1 %2188 }
 0x69d   :  { %1665 = vmatpush.msrb.mxu2 %v4093_v60 }
 0x69e   :  { %v1261_v13 = vpop.f32.mrf.mxu2 }
 0x69f   :  { %3760 = vmatmul.msk.f32.gmra.mxu3 %vm716_vm2, %v1261_v13  ;;  %1666 = vmatpush.msrb.mxu2 %v4094_v0 }
 0x6a1   :  { %1667 = vmatpush.msrb.mxu2 %v4098_v1  ;;  %v1769_v46 = vpop.permute.xlu2 %1768 }
 0x6a2   :  { %v1805_v43 = vpop.permute.xlu0 %1804 }
 0x6a3   :  { %1668 = vmatpush.msrb.mxu2 %v4099_v40  ;;  %3801 = vmatpush.xpose.msk.msrb.mxu1 %vm716_vm2, %v1805_v43  ;;  %v2185_v54 = vpop.permute.xlu1 %2184 }
 0x6a5   :  { %1669 = vmatpush.msrb.mxu2 %v4103_v56  ;;  %v6911_v56 = vld [vmem:[#allocation13_spill] sm:$0xff] }
 0x6a6   :  { %v1264_v25 = vpop.f32.mrf.mxu2 }
 0x6a7   :  { %3761 = vmatmul.msk.f32.gmra.mxu3 %vm716_vm2, %v1264_v25  ;;  %1670 = vmatpush.msrb.mxu2 %v4104_v24 }
 0x6a8   :  { %3802 = vmatpush.xpose.msk.msrb.mxu1 %vm716_vm2, %v5651_v10 }
 0x6a9   :  { %v1771_v14 = vpop.permute.xlu2 %1770 }
 0x6aa   :  { %v1801_v61 = vpop.permute.xlu0 %1800 }
 0x6ab   :  { %v2181_v23 = vpop.permute.xlu1 %2180 }
 0x6ac   :  { %3803 = vmatpush.xpose.msk.msrb.mxu1 %vm716_vm2, %v1801_v61 }
 0x6b0   :  { %3804 = vmatpush.xpose.msk.msrb.mxu1 %vm716_vm2, %v1799_v47 }
 0x6b2   :  { %v1797_v59 = vpop.permute.xlu0 %1796 }
 0x6b3   :  { %v2177_v11 = vpop.permute.xlu1 %2176 }
 0x6b4   :  { %3805 = vmatpush.xpose.msk.msrb.mxu1 %vm716_vm2, %v1797_v59 }
 0x6b8   :  { %3806 = vmatpush.xpose.msk.msrb.mxu1 %vm716_vm2, %v5658_v42 }
 0x6ba   :  { %v1793_v8 = vpop.permute.xlu0 %1792 }
 0x6bc   :  { %3807 = vmatpush.xpose.msk.msrb.mxu1 %vm716_vm2, %v1793_v8 }
 0x6c0   :  { %3808 = vmatpush.xpose.msk.msrb.mxu1 %vm716_vm2, %v5662_v17 }
 0x6c2   :  { %v1789_v10 = vpop.permute.xlu0 %1788 }
 0x6c4   :  { %3809 = vmatpush.xpose.msk.msrb.mxu1 %vm716_vm2, %v1789_v10 }
 0x6c8   :  { %3810 = vmatpush.xpose.msk.msrb.mxu1 %vm716_vm2, %v5667_v48 }
 0x6ca   :  { %v1783_v38 = vpop.permute.xlu0 %1782 }
 0x6cc   :  { %3811 = vmatpush.xpose.msk.msrb.mxu1 %vm716_vm2, %v1785_v26 }
 0x6d0   :  { %3812 = vmatpush.xpose.msk.msrb.mxu1 %vm716_vm2, %v1783_v38 }
 0x6d2   :  { %v1777_v42 = vpop.permute.xlu0 %1776 }
 0x6d4   :  { %3813 = vmatpush.xpose.msk.msrb.mxu1 %vm716_vm2, %v5673_v12 }
 0x6d8   :  { %3814 = vmatpush.xpose.msk.msrb.mxu1 %vm716_vm2, %v1779_v2 }
 0x6da   :  { %v2191_v17 = vpop.permute.xlu0 %2190 }
 0x6db   :  { %3832 = vmatpush.xpose.msk.msrb.mxu0 %vm716_vm2, %v2191_v17 }
 0x6dc   :  { %3815 = vmatpush.xpose.msk.msrb.mxu1 %vm716_vm2, %v1777_v42  ;;  %v1267_v48 = vpop.f32.mrf.mxu2 }
 0x6dd   :  { %3762 = vmatmul.msk.f32.gmra.mxu3 %vm716_vm2, %v1267_v48  ;;  %v584_v48 = vld [vmem:[%s6879_s6 + $0x80] sm:$0xff] }
 0x6df   :  { %3833 = vmatpush.xpose.msk.msrb.mxu0 %vm716_vm2, %v2189_v22 }
 0x6e0   :  { %3816 = vmatpush.xpose.msk.msrb.mxu1 %vm716_vm2, %v1775_v29 }
 0x6e2   :  { %v2187_v4 = vpop.permute.xlu0 %2186 }
 0x6e3   :  { %3817 = vmatmul.msk.f32.vlgmr.msrb.gmra.mxu1 %vm716_vm2, %v1761_v19  ;;  %3834 = vmatpush.xpose.msk.msrb.mxu0 %vm716_vm2, %v2187_v4  ;;  %v6912_v4 = vld [vmem:[#allocation16_spill] sm:$0xff] }
 0x6e4   :  { %v1270_v12 = vpop.f32.mrf.mxu2 }
 0x6e5   :  { %3763 = vmatmul.msk.f32.gmra.mxu3 %vm716_vm2, %v1270_v12  ;;  %v616_v12 = vmul.f32 %v584_v48, %v6912_v4 }
 0x6e7   :  { %3835 = vmatpush.xpose.msk.msrb.mxu0 %vm716_vm2, %v2185_v54 }
 0x6ea   :  { %v2183_v30 = vpop.permute.xlu0 %2182 }
 0x6eb   :  { %3818 = vmatmul.msk.f32.gmra.mxu1 %vm716_vm2, %v1763_v51  ;;  %3836 = vmatpush.xpose.msk.msrb.mxu0 %vm716_vm2, %v2183_v30  ;;  %v520_v51 = vld [vmem:[%s6878_s5 + $0x80] sm:$0xff] }
 0x6ed   :  { %3787 = vmatmul.msk.f32.vlgmr.msrb.gmra.mxu3 %vm716_vm2, %v5738_v28  ;;  %v2173_v28 = vpop.permute.xlu1 %2172 }
 0x6ef   :  { %3837 = vmatpush.xpose.msk.msrb.mxu0 %vm716_vm2, %v2181_v23  ;;  %v6913_v23 = vld [vmem:[#allocation5_spill] sm:$0xff] }
 0x6f2   :  { %v2179_v31 = vpop.permute.xlu0 %2178 }
 0x6f3   :  { %3819 = vmatmul.msk.f32.gmra.mxu1 %vm716_vm2, %v1765_v63  ;;  %3838 = vmatpush.xpose.msk.msrb.mxu0 %vm716_vm2, %v2179_v31  ;;  %v552_v63 = vmul.f32 %v520_v51, %v6913_v23 }
 0x6f5   :  { %3788 = vmatmul.msk.f32.gmra.mxu3 %vm716_vm2, %v5639_v45  ;;  %v2169_v45 = vpop.permute.xlu1 %2168  ;;  %v5904_v30 = vadd.f32 %v616_v12, %v552_v63 }
 0x6f7   :  { %3839 = vmatpush.xpose.msk.msrb.mxu0 %vm716_vm2, %v2177_v11 }
 0x6fa   :  { %v2175_v7 = vpop.permute.xlu0 %2174 }
 0x6fb   :  { %3820 = vmatmul.msk.f32.gmra.mxu1 %vm716_vm2, %v1767_v53  ;;  %3840 = vmatpush.xpose.msk.msrb.mxu0 %vm716_vm2, %v2175_v7  ;;  %v585_v7 = vld [vmem:[%s6879_s6 + $0x88] sm:$0xff] }
 0x6fd   :  { %3789 = vmatmul.msk.f32.gmra.mxu3 %vm716_vm2, %v5594_v55  ;;  %v1773_v55 = vpop.permute.xlu2 %1772 }
 0x6ff   :  { %3841 = vmatpush.xpose.msk.msrb.mxu0 %vm716_vm2, %v2173_v28  ;;  %v521_v28 = vld [vmem:[%s6878_s5 + $0x88] sm:$0xff]  ;;  %s4569_s5 = smov 40  }
 0x702   :  { %v2171_v39 = vpop.permute.xlu0 %2170 }
 0x703   :  { %3821 = vmatmul.msk.f32.gmra.mxu1 %vm716_vm2, %v1769_v46  ;;  %3842 = vmatpush.xpose.msk.msrb.mxu0 %vm716_vm2, %v2171_v39  ;;  %v6914_v46 = vld [vmem:[#allocation17_spill] sm:$0xff] }
 0x704   :  { %v617_v39 = vmul.f32 %v585_v7, %v6914_v46 }
 0x705   :  { %3790 = vmatmul.msk.f32.gmra.mxu3 %vm716_vm2, %v5756_v44  ;;  %v5870_v44 = vpop.f32.mrf.mxu3 }
 0x707   :  { %3843 = vmatpush.xpose.msk.msrb.mxu0 %vm716_vm2, %v2169_v45  ;;  %v6915_v45 = vld [vmem:[#allocation6_spill] sm:$0xff] }
 0x70a   :  { %v2167_v57 = vpop.permute.xlu0 %2166 }
 0x70b   :  { %3822 = vmatmul.msk.f32.gmra.mxu1 %vm716_vm2, %v1771_v14  ;;  %3844 = vmatpush.xpose.msk.msrb.mxu0 %vm716_vm2, %v2167_v57  ;;  %v553_v14 = vmul.f32 %v521_v28, %v6915_v45 }
 0x70d   :  { %3791 = vmatmul.msk.f32.gmra.mxu3 %vm716_vm2, %v5647_v27  ;;  %v5872_v3 = vpop.f32.mrf.mxu3  ;;  %v5920_v57 = vadd.f32 %v617_v39, %v553_v14  ;;  %v6917_v39 = vld [vmem:[#allocation12_spill] sm:$0xff] }
 0x713   :  { %3823 = vmatmul.msk.f32.gmra.mxu1 %vm716_vm2, %v1773_v55 }
 0x715   :  { %3792 = vmatmul.msk.f32.gmra.mxu3 %vm716_vm2, %v5612_v5  ;;  %v5874_v60 = vpop.f32.mrf.mxu3 }
 0x71d   :  { %3793 = vmatmul.msk.f32.gmra.mxu3 %vm716_vm2, %v5772_v32 }
 0x722   :  { %v5876_v0 = vpop.f32.mrf.mxu3 }
 0x72a   :  { %v5878_v13 = vpop.f32.mrf.mxu3 }
 0x760   :  { %v5880_v27 = vpop.f32.mrf.mxu3  ;;  %v1869_v1 = vpop.f32.mrf.mxu1 }
 0x761   :  { %v1890_v59 = vmul.f32 0.35355338, %v1869_v1 }
 0x763   :  { %v5887_v2 = vadd.f32 %v1890_v59, %v6911_v56 }
 0x768   :  { %v5882_v37 = vpop.f32.mrf.mxu3  ;;  %v1872_v40 = vpop.f32.mrf.mxu1 }
 0x770   :  { %v1501_v5 = vpop.f32.mrf.mxu3  ;;  %v1875_v61 = vpop.f32.mrf.mxu1 }
 0x771   :  { %v1522_v43 = vmul.f32 0.35355338, %v1501_v5  ;;  %v1892_v55 = vmul.f32 0.35355338, %v1875_v61 }
 0x773   :  { %v1529_v32 = vadd.f32 %v1522_v43, %v6911_v56  ;;  %v5925_v1 = vadd.f32 %v1892_v55, %v6911_v56 }
 0x775   :  { %1536 = vmax.xlane.f32.xlu1 %v1529_v32 }
 0x778   :  { %v1504_v24 = vpop.f32.mrf.mxu3  ;;  %v1878_v29 = vpop.f32.mrf.mxu1 }
 0x779   :  { %v1523_v25 = vmul.f32 0.35355338, %v1504_v24  ;;  %v1893_v38 = vmul.f32 0.35355338, %v1878_v29  ;;  %v1891_v24 = vmul.f32 0.35355338, %v1872_v40 }
 0x77b   :  { %v1530_v47 = vadd.f32 %v1523_v25, %v6911_v56  ;;  %v5892_v19 = vadd.f32 %v1893_v38, %v6911_v56  ;;  %v5930_v25 = vadd.f32 %v1891_v24, %v6911_v56 }
 0x77d   :  { %1538 = vmax.xlane.f32.xlu2 %v1530_v47 }
 0x780   :  { %v1507_v26 = vpop.f32.mrf.mxu3 }
 0x781   :  { %v1524_v8 = vmul.f32 0.35355338, %v1507_v26 }
 0x783   :  { %v1531_v10 = vadd.f32 %v1524_v8, %v6911_v56 }
 0x785   :  { %1540 = vmax.xlane.f32.xlu0 %v1531_v10  ;;  %1904 = vmax.xlane.f32.xlu2 %v5887_v2 }
 0x788   :  { %v1510_v42 = vpop.f32.mrf.mxu3 }
 0x789   :  { %v1525_v22 = vmul.f32 0.35355338, %v1510_v42 }
 0x78b   :  { %v1532_v17 = vadd.f32 %v1525_v22, %v6911_v56 }
 0x78d   :  { %1542 = vmax.xlane.f32.xlu1 %v1532_v17  ;;  %1910 = vmax.xlane.f32.xlu2 %v5892_v19 }
 0x790   :  { %v1513_v54 = vpop.f32.mrf.mxu3 }
 0x791   :  { %v1526_v5 = vmul.f32 0.35355338, %v1513_v54 }
 0x793   :  { %v1533_v43 = vadd.f32 %v1526_v5, %v6911_v56 }
 0x798   :  { %v1516_v11 = vpop.f32.mrf.mxu3 }
 0x799   :  { %v1527_v31 = vmul.f32 0.35355338, %v1516_v11  ;;  %2162 = vrot.lane.b32.xlu0 %v5904_v30, %s4558_s20 }
 0x79b   :  { %v5909_v53 = vadd.f32 %v1527_v31, %v6911_v56  ;;  %v1881_v31 = vpop.f32.mrf.mxu1 }
 0x79d   :  { %1546 = vmax.xlane.f32.xlu2 %v5909_v53 }
 0x7a0   :  { %v1519_v59 = vpop.f32.mrf.mxu3 }
 0x7a1   :  { %v1528_v26 = vmul.f32 0.35355338, %v1519_v59 }
 0x7a3   :  { %v5934_v8 = vadd.f32 %v1528_v26, %v6911_v56  ;;  %v5963_v45 = vpop.f32.mrf.mxu1 }
 0x7a6   :  { %2164 = vrot.lane.b32.xlu1 %v5920_v57, %s4558_s20 }
 0x7ab   :  { %v1887_v55 = vpop.f32.mrf.mxu1 }
 0x7ac   :  { %v1896_v24 = vmul.f32 0.35355338, %v1887_v55 }
 0x7c3   :  { %1908 = vmax.xlane.f32.xlu0 %v5925_v1 }
 0x7cb   :  { %1544 = vmax.xlane.f32.xlu0 %v1533_v43 }
 0x7d0   :  { %1906 = vmax.xlane.f32.xlu1 %v5930_v25 }
 0x7d8   :  { %1548 = vmax.xlane.f32.xlu1 %v5934_v8 }
 0x7e8   :  { %v1537_v61 = vpop.xlane.xlu1 %1536 }
 0x7e9   :  { %v1550_v29 = vsub.f32 %v1529_v32, %v1537_v61  ;;  %v5968_v61 = vadd.f32 %v1896_v24, %v6911_v56 }
 0x7eb   :  { %v1557_v38 = vmul.f32 1.442695, %v1550_v29 }
 0x7ed   :  { %4364 = vpow2.f32 %v1557_v38 }
 0x7f0   :  { %v1539_v42 = vpop.xlane.xlu2 %1538 }
 0x7f1   :  { %v1551_v22 = vsub.f32 %v1530_v47, %v1539_v42 }
 0x7f3   :  { %v5937_v40 = vpop.eup %4364  ;;  %v1559_v48 = vmul.f32 1.442695, %v1551_v22  ;;  %v6918_v22 = vld [vmem:[#allocation10_spill] sm:$0xff] }
 0x7f4   :  { %1571 = vadd.xlane.f32.xlu0 %v5937_v40 }
 0x7f5   :  { %4366 = vpow2.f32 %v1559_v48 }
 0x7f8   :  { %v1541_v54 = vpop.xlane.xlu0 %1540 }
 0x7f9   :  { %v1552_v51 = vsub.f32 %v1531_v10, %v1541_v54  ;;  %v1894_v10 = vmul.f32 0.35355338, %v1881_v31 }
 0x7fb   :  { %v5940_v4 = vpop.eup %4366  ;;  %v1561_v12 = vmul.f32 1.442695, %v1552_v51  ;;  %v5950_v7 = vadd.f32 %v1894_v10, %v6911_v56 }
 0x7fc   :  { %1573 = vadd.xlane.f32.xlu2 %v5940_v4 }
 0x7fd   :  { %4368 = vpow2.f32 %v1561_v12 }
 0x800   :  { %v1543_v23 = vpop.xlane.xlu1 %1542 }
 0x801   :  { %v1553_v32 = vsub.f32 %v1532_v17, %v1543_v23  ;;  %v6916_v17 = vld [vmem:[#allocation11_spill] sm:$0xff] }
 0x803   :  { %v5943_v63 = vpop.eup %4368  ;;  %v1563_v11 = vmul.f32 1.442695, %v1553_v32 }
 0x804   :  { %1575 = vadd.xlane.f32.xlu0 %v5943_v63 }
 0x805   :  { %4370 = vpow2.f32 %v1563_v11 }
 0x80b   :  { %v5946_v47 = vpop.eup %4370  ;;  %v2163_v46 = vpop.permute.xlu0 %2162 }
 0x80c   :  { %1577 = vadd.xlane.f32.xlu0 %v5946_v47 }
 0x814   :  { %1912 = vmax.xlane.f32.xlu0 %v5950_v7  ;;  %4111 = vrot.lane.b32.xlu2 %v6916_v17, %s4569_s5 }
 0x818   :  { %v2165_v28 = vpop.permute.xlu1 %2164 }
 0x819   :  { %3845 = vmatpush.xpose.msk.msrb.mxu0 %vm716_vm2, %v2165_v28 }
 0x81c   :  { %4121 = vrot.lane.b32.xlu2 %v6917_v39, %s4569_s5 }
 0x81d   :  { %3846 = vmatpush.xpose.msk.msrb.mxu0 %vm716_vm2, %v2163_v46 }
 0x828   :  { %4116 = vrot.lane.b32.xlu0 %v5104_v62, %s4569_s5 }
 0x830   :  { %4126 = vrot.lane.b32.xlu0 %v5219_v15, %s4569_s5  ;;  %v1905_v15 = vpop.xlane.xlu2 %1904 }
 0x831   :  { %v1918_v29 = vsub.f32 %v5887_v2, %v1905_v15  ;;  %v6919_v2 = vld [vmem:[#allocation8_spill] sm:$0xff] }
 0x833   :  { %v1925_v38 = vmul.f32 1.442695, %v1918_v29 }
 0x836   :  { %v1909_v14 = vpop.xlane.xlu0 %1908 }
 0x837   :  { %v1920_v39 = vsub.f32 %v5925_v1, %v1909_v14 }
 0x838   :  { %4131 = vrot.lane.b32.xlu0 %v5225_v20, %s4569_s5  ;;  %v1911_v20 = vpop.xlane.xlu2 %1910 }
 0x839   :  { %v1929_v24 = vmul.f32 1.442695, %v1920_v39 }
 0x83e   :  { %v1545_v5 = vpop.xlane.xlu0 %1544 }
 0x83f   :  { %v1554_v59 = vsub.f32 %v1533_v43, %v1545_v5  ;;  %v1921_v5 = vsub.f32 %v5892_v19, %v1911_v20 }
 0x840   :  { %v1547_v54 = vpop.xlane.xlu2 %1546 }
 0x841   :  { %v1565_v26 = vmul.f32 1.442695, %v1554_v59  ;;  %v1555_v12 = vsub.f32 %v5909_v53, %v1547_v54  ;;  %v6920_v54 = vld [vmem:[#allocation9_spill] sm:$0xff] }
 0x843   :  { %4372 = vpow2.f32 %v1565_v26  ;;  %v1907_v42 = vpop.xlane.xlu1 %1906  ;;  %v1567_v23 = vmul.f32 1.442695, %v1555_v12 }
 0x844   :  { %4374 = vpow2.f32 %v1925_v38  ;;  %v1919_v43 = vsub.f32 %v5930_v25, %v1907_v42  ;;  %v1895_v38 = vmul.f32 0.35355338, %v5963_v45  ;;  %v6017_v45 = vpack.i.bf16 %v5743_v33, %v5547_v6 }
 0x845   :  { %1916 = vmax.xlane.f32.xlu2 %v5968_v61 }
 0x846   :  { %v1927_v48 = vmul.f32 1.442695, %v1919_v43 }
 0x848   :  { %4376 = vpow2.f32 %v1927_v48 }
 0x849   :  { %v5971_v62 = vpop.eup %4372 }
 0x84a   :  { %1579 = vadd.xlane.f32.xlu1 %v5971_v62  ;;  %v5978_v51 = vpop.eup %4374 }
 0x84b   :  { %v1549_v11 = vpop.xlane.xlu1 %1548 }
 0x84c   :  { %v1556_v31 = vsub.f32 %v5934_v8, %v1549_v11 }
 0x84e   :  { %v5984_v25 = vpop.eup %4376  ;;  %v1569_v17 = vmul.f32 1.442695, %v1556_v31 }
 0x85d   :  { %4141 = vrot.lane.b32.xlu2 %v6918_v22, %s4569_s5  ;;  %v6009_v22 = vadd.f32 %v1895_v38, %v6911_v56 }
 0x862   :  { %1939 = vadd.xlane.f32.xlu0 %v5978_v51 }
 0x863   :  { %4106 = vrot.lane.b32.xlu1 %v6919_v2, %s4569_s5  ;;  %v6037_v2 = vpack.i.bf16 %v5723_v50, %v5530_v58 }
 0x867   :  { %v1572_v32 = vpop.xlane.xlu0 %1571 }
 0x868   :  { %4378 = vrcp.f32 %v1572_v32 }
 0x869   :  { %4380 = vpow2.f32 %v1567_v23  ;;  %v6041_v23 = vpop.f32.mrf.mxu2 }
 0x86a   :  { %1941 = vadd.xlane.f32.xlu0 %v5984_v25 }
 0x86e   :  { %v4379_v10 = vpop.eup %4378 }
 0x86f   :  { %v1574_v28 = vpop.xlane.xlu2 %1573  ;;  %v1592_v53 = vmul.f32 %v4379_v10, %v5937_v40  ;;  %v5989_v46 = vpop.eup %4380  ;;  %v1931_v40 = vmul.f32 1.442695, %v1921_v5 }
 0x870   :  { %4382 = vrcp.f32 %v1574_v28 }
 0x871   :  { %1600 = vst [vmem:[#allocation2 + $0x70] sm:$0xff] %v1592_v53  ;;  %1671 = vmatmul.f32.vlgmr.msrb.gmra.mxu2 %v1592_v53  ;;  %4384 = vpow2.f32 %v1569_v17  ;;  %v6045_v31 = vpop.f32.mrf.mxu2 }
 0x872   :  { %1581 = vadd.xlane.f32.xlu0 %v5989_v46 }
 0x876   :  { %v4383_v55 = vpop.eup %4382 }
 0x877   :  { %v1576_v8 = vpop.xlane.xlu0 %1575  ;;  %v1593_v59 = vmul.f32 %v4383_v55, %v5940_v4  ;;  %v5995_v26 = vpop.eup %4384 }
 0x878   :  { %4386 = vrcp.f32 %v1576_v8  ;;  %v4112_v12 = vpop.permute.xlu2 %4111 }
 0x879   :  { %1601 = vst [vmem:[#allocation2 + $0x78] sm:$0xff] %v1593_v59  ;;  %1674 = vmatmul.f32.gmra.mxu2 %v1593_v59  ;;  %4388 = vpow2.f32 %v1929_v24  ;;  %v6050_v55 = vpop.f32.mrf.mxu2 }
 0x87a   :  { %1583 = vadd.xlane.f32.xlu0 %v5995_v26  ;;  %4390 = vpow2.f32 %v1931_v40 }
 0x87e   :  { %v4387_v15 = vpop.eup %4386 }
 0x87f   :  { %v1578_v1 = vpop.xlane.xlu0 %1577  ;;  %v1594_v14 = vmul.f32 %v4387_v15, %v5943_v63  ;;  %v5999_v19 = vpop.eup %4388 }
 0x880   :  { %4392 = vrcp.f32 %v1578_v1  ;;  %v6002_v4 = vpop.eup %4390  ;;  %v4122_v32 = vpop.permute.xlu2 %4121 }
 0x881   :  { %1602 = vst [vmem:[#allocation2 + $0x80] sm:$0xff] %v1594_v14  ;;  %1677 = vmatmul.f32.gmra.mxu2 %v1594_v14  ;;  %v6057_v40 = vpop.f32.mrf.mxu2 }
 0x882   :  { %1943 = vadd.xlane.f32.xlu0 %v5999_v19 }
 0x886   :  { %v4393_v29 = vpop.eup %4392  ;;  %1945 = vadd.xlane.f32.xlu2 %v6002_v4 }
 0x887   :  { %v1913_v20 = vpop.xlane.xlu0 %1912  ;;  %v1595_v42 = vmul.f32 %v4393_v29, %v5946_v47  ;;  %v6023_v47 = vpack.i.bf16 %v5759_v52, %v5574_v18  ;;  %v4113_v29 = vunpack.i.l.bf16 %v4112_v12 }
 0x888   :  { %v1922_v43 = vsub.f32 %v5950_v7, %v1913_v20  ;;  %v6027_v7 = vpack.i.bf16 %v5708_v16, %v5516_v35  ;;  %v4114_v20 = vunpack.i.h.bf16 %v4112_v12 }
 0x889   :  { %1603 = vst [vmem:[#allocation2 + $0x88] sm:$0xff] %v1595_v42  ;;  %1680 = vmatmul.f32.gmra.mxu2 %v1595_v42 }
 0x88a   :  { %v1933_v63 = vmul.f32 1.442695, %v1922_v43 }
 0x88c   :  { %4394 = vpow2.f32 %v1933_v63 }
 0x88d   :  { %1914 = vmax.xlane.f32.xlu1 %v6009_v22 }
 0x892   :  { %v6012_v48 = vpop.eup %4394 }
 0x893   :  { %1947 = vadd.xlane.f32.xlu0 %v6012_v48 }
 0x89a   :  { %v4117_v11 = vpop.permute.xlu0 %4116 }
 0x89b   :  { %v4118_v63 = vunpack.i.l.bf16 %v4117_v11 }
 0x89e   :  { %4156 = vrot.lane.b32.xlu2 %v6017_v45, %s4559_s0 }
 0x8a2   :  { %v4127_v53 = vpop.permute.xlu0 %4126 }
 0x8a6   :  { %4136 = vrot.lane.b32.xlu1 %v6920_v54, %s4569_s5  ;;  %4161 = vrot.lane.b32.xlu2 %v6023_v47, %s4559_s0  ;;  %v4119_v54 = vunpack.i.h.bf16 %v4117_v11 }
 0x8a7   :  { %4146 = vrot.lane.b32.xlu0 %v6027_v7, %s4559_s0 }
 0x8aa   :  { %v4132_v8 = vpop.permute.xlu0 %4131 }
 0x8ab   :  { %v4133_v11 = vunpack.i.l.bf16 %v4132_v8 }
 0x8ae   :  { %4151 = vrot.lane.b32.xlu1 %v6037_v2, %s4559_s0 }
 0x8b6   :  { %2494 = vrot.lane.b32.xlu1 %v5516_v35, %s4560_s22 }
 0x8b8   :  { %v1917_v10 = vpop.xlane.xlu2 %1916 }
 0x8b9   :  { %v1924_v28 = vsub.f32 %v5968_v61, %v1917_v10 }
 0x8bb   :  { %v1937_v5 = vmul.f32 1.442695, %v1924_v28  ;;  %v4124_v28 = vunpack.i.h.bf16 %v4122_v32 }
 0x8bd   :  { %v1580_v17 = vpop.xlane.xlu1 %1579 }
 0x8be   :  { %4396 = vrcp.f32 %v1580_v17  ;;  %2492 = vrot.lane.b32.xlu1 %v5708_v16, %s4560_s22  ;;  %v4123_v17 = vunpack.i.l.bf16 %v4122_v32  ;;  %v4129_v32 = vunpack.i.h.bf16 %v4127_v53 }
 0x8bf   :  { %4398 = vpow2.f32 %v1937_v5 }
 0x8c4   :  { %v4397_v39 = vpop.eup %4396 }
 0x8c5   :  { %v1596_v24 = vmul.f32 %v4397_v39, %v5971_v62  ;;  %v6055_v59 = vpop.eup %4398  ;;  %v6064_v62 = vpop.f32.mrf.mxu2  ;;  %v6076_v39 = vpack.i.bf16 %v5904_v30, %v5920_v57 }
 0x8c6   :  { %2482 = vrot.lane.b32.xlu1 %v5574_v18, %s4560_s22 }
 0x8c7   :  { %1604 = vst [vmem:[#allocation2 + $0x90] sm:$0xff] %v1596_v24  ;;  %1683 = vmatmul.f32.gmra.mxu2 %v1596_v24  ;;  %v4128_v24 = vunpack.i.l.bf16 %v4127_v53  ;;  %v4142_v53 = vpop.permute.xlu2 %4141 }
 0x8cd   :  { %v6072_v10 = vpop.f32.mrf.mxu2 }
 0x8ce   :  { %2472 = vrot.lane.b32.xlu1 %v5789_v9, %s4560_s22 }
 0x8cf   :  { %1951 = vadd.xlane.f32.xlu2 %v6055_v59 }
 0x8d5   :  { %v4107_v61 = vpop.permute.xlu1 %4106  ;;  %v1940_v15 = vpop.xlane.xlu0 %1939 }
 0x8d6   :  { %v4108_v1 = vunpack.i.l.bf16 %v4107_v61  ;;  %4400 = vrcp.f32 %v1940_v15  ;;  %2468 = vrot.lane.b32.xlu1 %v5803_v41, %s4560_s22  ;;  %v4109_v14 = vunpack.i.h.bf16 %v4107_v61  ;;  %v6086_v15 = vpop.f32.mrf.mxu2 }
 0x8d8   :  { %2023 = vmatpush.msra.mxu3 %v4108_v1 }
 0x8da   :  { %2024 = vmatpush.msra.mxu3 %v4109_v14 }
 0x8dc   :  { %v4401_v38 = vpop.eup %4400  ;;  %2025 = vmatpush.msra.mxu3 %v4113_v29 }
 0x8dd   :  { %v6067_v42 = vmul.f32 %v4401_v38, %v5978_v51  ;;  %v1942_v43 = vpop.xlane.xlu0 %1941 }
 0x8de   :  { %4402 = vrcp.f32 %v1942_v43  ;;  %2914 = vrot.lane.b32.xlu1 %v5516_v35, %s4564_s12  ;;  %2026 = vmatpush.msra.mxu3 %v4114_v20 }
 0x8df   :  { %1968 = vst [vmem:[#allocation2 + $0xa8] sm:$0xff] %v6067_v42 }
 0x8e0   :  { %2027 = vmatpush.msra.mxu3 %v4118_v63 }
 0x8e2   :  { %2028 = vmatpush.msra.mxu3 %v4119_v54 }
 0x8e4   :  { %v4403_v12 = vpop.eup %4402  ;;  %2029 = vmatpush.msra.mxu3 %v4123_v17 }
 0x8e5   :  { %v1582_v51 = vpop.xlane.xlu0 %1581  ;;  %v6079_v5 = vmul.f32 %v4403_v12, %v5984_v25  ;;  %v4134_v25 = vunpack.i.h.bf16 %v4132_v8 }
 0x8e6   :  { %4404 = vrcp.f32 %v1582_v51  ;;  %2450 = vrot.lane.b32.xlu1 %v5904_v30, %s4562_s10  ;;  %2030 = vmatpush.msra.mxu3 %v4124_v28 }
 0x8e7   :  { %4181 = vrot.lane.b32.xlu2 %v6076_v39, %s4559_s0  ;;  %1969 = vst [vmem:[#allocation2 + $0xb0] sm:$0xff] %v6079_v5 }
 0x8e8   :  { %2031 = vmatpush.msra.mxu3 %v4128_v24 }
 0x8ea   :  { %2032 = vmatpush.msra.mxu3 %v4129_v32 }
 0x8ec   :  { %v4405_v61 = vpop.eup %4404  ;;  %2033 = vmatpush.msra.mxu3 %v4133_v11 }
 0x8ed   :  { %v1584_v1 = vpop.xlane.xlu0 %1583  ;;  %v1597_v14 = vmul.f32 %v4405_v61, %v5989_v46 }
 0x8ee   :  { %4406 = vrcp.f32 %v1584_v1  ;;  %2452 = vrot.lane.b32.xlu1 %v5920_v57, %s4562_s10  ;;  %2034 = vmatpush.msra.mxu3 %v4134_v25 }
 0x8ef   :  { %2488 = vrot.lane.b32.xlu2 %v5723_v50, %s4560_s22  ;;  %1605 = vst [vmem:[#allocation2 + $0x98] sm:$0xff] %v1597_v14  ;;  %1686 = vmatmul.f32.gmra.mxu2 %v1597_v14  ;;  %v4143_v14 = vunpack.i.l.bf16 %v4142_v53 }
 0x8f4   :  { %v4407_v29 = vpop.eup %4406  ;;  %v1672_v38 = vpop.f32.mrf.mxu2 }
 0x8f5   :  { %v1944_v20 = vpop.xlane.xlu0 %1943  ;;  %3794 = vmatmul.msk.f32.vlgmr.msra.gmra.mxu0 %vm716_vm2, %v1672_v38  ;;  %v1598_v8 = vmul.f32 %v4407_v29, %v5995_v26  ;;  %v4144_v38 = vunpack.i.h.bf16 %v4142_v53  ;;  %v6146_v53 = vpack.i.bf16 %v5789_v9, %v5614_v34 }
 0x8f6   :  { %4408 = vrcp.f32 %v1944_v20  ;;  %2454 = vrot.lane.b32.xlu1 %v5803_v41, %s4562_s10 }
 0x8f7   :  { %2484 = vrot.lane.b32.xlu2 %v5743_v33, %s4560_s22  ;;  %1606 = vst [vmem:[#allocation2 + $0xa0] sm:$0xff] %v1598_v8  ;;  %1689 = vmatmul.f32.gmra.mxu2 %v1598_v8 }
 0x8f9   :  { %v1946_v46 = vpop.xlane.xlu2 %1945 }
 0x8fa   :  { %4410 = vrcp.f32 %v1946_v46 }
 0x8fc   :  { %v4409_v43 = vpop.eup %4408  ;;  %v1675_v63 = vpop.f32.mrf.mxu2 }
 0x8fd   :  { %3795 = vmatmul.msk.f32.gmra.mxu0 %vm716_vm2, %v1675_v63  ;;  %v6101_v54 = vmul.f32 %v4409_v43, %v5999_v19 }
 0x8fe   :  { %2456 = vrot.lane.b32.xlu1 %v5633_v49, %s4562_s10 }
 0x8ff   :  { %2480 = vrot.lane.b32.xlu2 %v5759_v52, %s4560_s22  ;;  %1970 = vst [vmem:[#allocation2 + $0xb8] sm:$0xff] %v6101_v54 }
 0x900   :  { %v4411_v26 = vpop.eup %4410  ;;  %v1915_v17 = vpop.xlane.xlu1 %1914 }
 0x901   :  { %v1923_v12 = vsub.f32 %v6009_v22, %v1915_v17  ;;  %v6110_v28 = vmul.f32 %v4411_v26, %v6002_v4  ;;  %v4157_v20 = vpop.permute.xlu2 %4156 }
 0x903   :  { %v1935_v51 = vmul.f32 1.442695, %v1923_v12  ;;  %1971 = vst [vmem:[#allocation2 + $0xc0] sm:$0xff] %v6110_v28 }
 0x904   :  { %v1678_v19 = vpop.f32.mrf.mxu2 }
 0x905   :  { %4412 = vpow2.f32 %v1935_v51  ;;  %3796 = vmatmul.msk.f32.gmra.mxu0 %vm716_vm2, %v1678_v19  ;;  %v4159_v51 = vunpack.i.h.bf16 %v4157_v20 }
 0x906   :  { %2458 = vrot.lane.b32.xlu1 %v5789_v9, %s4562_s10  ;;  %v1948_v24 = vpop.xlane.xlu0 %1947 }
 0x907   :  { %4414 = vrcp.f32 %v1948_v24  ;;  %2478 = vrot.lane.b32.xlu2 %v5596_v21, %s4560_s22  ;;  %v6158_v24 = vpack.i.bf16 %v5803_v41, %v5633_v49 }
 0x909   :  { %v4162_v12 = vpop.permute.xlu2 %4161 }
 0x90a   :  { %v4163_v19 = vunpack.i.l.bf16 %v4162_v12 }
 0x90b   :  { %v6118_v32 = vpop.eup %4412 }
 0x90c   :  { %1949 = vadd.xlane.f32.xlu0 %v6118_v32  ;;  %v1681_v4 = vpop.f32.mrf.mxu2 }
 0x90d   :  { %v4415_v22 = vpop.eup %4414  ;;  %3797 = vmatmul.msk.f32.gmra.mxu0 %vm716_vm2, %v1681_v4  ;;  %v4164_v4 = vunpack.i.h.bf16 %v4162_v12 }
 0x90e   :  { %2460 = vrot.lane.b32.xlu1 %v5614_v34, %s4562_s10  ;;  %v1964_v11 = vmul.f32 %v4415_v22, %v6012_v48  ;;  %v6135_v48 = vpack.i.bf16 %v5775_v36, %v5596_v21 }
 0x90f   :  { %2476 = vrot.lane.b32.xlu2 %v5775_v36, %s4560_s22 }
 0x910   :  { %1972 = vst [vmem:[#allocation2 + $0xc8] sm:$0xff] %v1964_v11 }
 0x916   :  { %2888 = vrot.lane.b32.xlu1 %v5803_v41, %s4564_s12 }
 0x917   :  { %2470 = vrot.lane.b32.xlu2 %v5633_v49, %s4560_s22 }
 0x918   :  { %v4137_v61 = vpop.permute.xlu1 %4136 }
 0x919   :  { %v4138_v25 = vunpack.i.l.bf16 %v4137_v61  ;;  %v4139_v1 = vunpack.i.h.bf16 %v4137_v61  ;;  %v4147_v29 = vpop.permute.xlu0 %4146 }
 0x91a   :  { %v4148_v46 = vunpack.i.l.bf16 %v4147_v29  ;;  %v4149_v43 = vunpack.i.h.bf16 %v4147_v29 }
 0x91b   :  { %2035 = vmatpush.msra.mxu3 %v4138_v25 }
 0x91d   :  { %2036 = vmatpush.msra.mxu3 %v4139_v1 }
 0x91e   :  { %2886 = vrot.lane.b32.xlu1 %v5920_v57, %s4564_s12 }
 0x91f   :  { %2466 = vrot.lane.b32.xlu2 %v5920_v57, %s4560_s22  ;;  %2037 = vmatpush.msra.mxu3 %v4143_v14 }
 0x920   :  { %v4152_v8 = vpop.permute.xlu1 %4151  ;;  %4166 = vrot.lane.b32.xlu0 %v6135_v48, %s4559_s0 }
 0x921   :  { %2038 = vmatpush.msra.mxu3 %v4144_v38  ;;  %v4153_v63 = vunpack.i.l.bf16 %v4152_v8  ;;  %v4154_v26 = vunpack.i.h.bf16 %v4152_v8 }
 0x922   :  { %2039 = vmatmul.f32.vlgmr.msra.gmra.mxu3 %v6067_v42  ;;  %v4158_v42 = vunpack.i.l.bf16 %v4157_v20 }
 0x923   :  { %2411 = vmatpush.msrb.mxu3 %v4148_v46 }
 0x925   :  { %2412 = vmatpush.msrb.mxu3 %v4149_v43 }
 0x926   :  { %3276 = vrot.lane.b32.xlu1 %v5723_v50, %s4567_s14 }
 0x927   :  { %2413 = vmatpush.msrb.mxu3 %v4153_v63  ;;  %2912 = vrot.lane.b32.xlu2 %v5708_v16, %s4564_s12 }
 0x928   :  { %v2495_v17 = vpop.permute.xlu1 %2494  ;;  %4171 = vrot.lane.b32.xlu0 %v6146_v53, %s4559_s0 }
 0x929   :  { %2414 = vmatpush.msrb.mxu3 %v4154_v26  ;;  %3854 = vmatpush.xpose.msk.msra.mxu1 %vm716_vm2, %v2495_v17 }
 0x92a   :  { %2042 = vmatmul.f32.gmra.mxu3 %v6079_v5 }
 0x92b   :  { %2415 = vmatpush.msrb.mxu3 %v4158_v42 }
 0x92d   :  { %2416 = vmatpush.msrb.mxu3 %v4159_v51 }
 0x92e   :  { %3272 = vrot.lane.b32.xlu1 %v5743_v33, %s4567_s14 }
 0x92f   :  { %2417 = vmatpush.msrb.mxu3 %v4163_v19  ;;  %2908 = vrot.lane.b32.xlu2 %v5723_v50, %s4564_s12 }
 0x930   :  { %v2493_v22 = vpop.permute.xlu1 %2492  ;;  %4176 = vrot.lane.b32.xlu0 %v6158_v24, %s4559_s0  ;;  %s3633_s0 = sshll.u32 %s6882_s9, 4  ;;  %s3634_s0 = int_to_ptr.hbm [resolvable:$true] %s3633_s0 }
 0x931   :  { %2418 = vmatpush.msrb.mxu3 %v4164_v4  ;;  %3855 = vmatpush.xpose.msk.msra.mxu1 %vm716_vm2, %v2493_v22 }
 0x932   :  { %2045 = vmatmul.f32.gmra.mxu3 %v6101_v54 }
 0x936   :  { %3268 = vrot.lane.b32.xlu1 %v5759_v52, %s4567_s14 }
 0x937   :  { %2904 = vrot.lane.b32.xlu2 %v5743_v33, %s4564_s12 }
 0x938   :  { %2490 = vrot.lane.b32.xlu0 %v5530_v58, %s4560_s22  ;;  %v2483_v26 = vpop.permute.xlu1 %2482 }
 0x93a   :  { %2048 = vmatmul.f32.gmra.mxu3 %v6110_v28 }
 0x93e   :  { %3264 = vrot.lane.b32.xlu1 %v5775_v36, %s4567_s14 }
 0x93f   :  { %2900 = vrot.lane.b32.xlu2 %v5759_v52, %s4564_s12 }
 0x940   :  { %2486 = vrot.lane.b32.xlu0 %v5547_v6, %s4560_s22  ;;  %v2473_v51 = vpop.permute.xlu1 %2472 }
 0x942   :  { %v1952_v50 = vpop.xlane.xlu2 %1951  ;;  %2051 = vmatmul.f32.gmra.mxu3 %v1964_v11 }
 0x943   :  { %4416 = vrcp.f32 %v1952_v50 }
 0x946   :  { %3260 = vrot.lane.b32.xlu1 %v5789_v9, %s4567_s14 }
 0x947   :  { %2896 = vrot.lane.b32.xlu2 %v5775_v36, %s4564_s12 }
 0x948   :  { %2474 = vrot.lane.b32.xlu0 %v5614_v34, %s4560_s22 }
 0x949   :  { %v4417_v33 = vpop.eup %4416 }
 0x94a   :  { %v1684_v5 = vpop.f32.mrf.mxu2  ;;  %v1966_v54 = vmul.f32 %v4417_v33, %v6055_v59  ;;  %v4182_v59 = vpop.permute.xlu2 %4181 }
 0x94b   :  { %3798 = vmatmul.msk.f32.gmra.mxu0 %vm716_vm2, %v1684_v5  ;;  %v4183_v63 = vunpack.i.l.bf16 %v4182_v59  ;;  %v2469_v33 = vpop.permute.xlu1 %2468 }
 0x94c   :  { %1974 = vst [vmem:[#allocation2 + $0xd8] sm:$0xff] %v1966_v54 }
 0x94e   :  { %3256 = vrot.lane.b32.xlu1 %v5803_v41, %s4567_s14 }
 0x94f   :  { %2892 = vrot.lane.b32.xlu2 %v5789_v9, %s4564_s12 }
 0x950   :  { %2464 = vrot.lane.b32.xlu0 %v5904_v30, %s4560_s22  ;;  %s4571_s22 = smov 128  }
 0x952   :  { %v2489_v11 = vpop.permute.xlu2 %2488 }
 0x956   :  { %3252 = vrot.lane.b32.xlu1 %v5904_v30, %s4567_s14 }
 0x957   :  { %3282 = vrot.lane.b32.xlu2 %v5516_v35, %s4567_s14 }
 0x958   :  { %2910 = vrot.lane.b32.xlu0 %v5530_v58, %s4564_s12 }
 0x95e   :  { %3240 = vrot.lane.b32.xlu1 %v5920_v57, %s4568_s29 }
 0x95f   :  { %2462 = vrot.lane.b32.xlu2 %v5775_v36, %s4562_s10  ;;  %s4572_s10 = smov 8  }
 0x960   :  { %2906 = vrot.lane.b32.xlu0 %v5547_v6, %s4564_s12 }
 0x967   :  { %2884 = vrot.lane.b32.xlu2 %v5904_v30, %s4564_s12 }
 0x968   :  { %2902 = vrot.lane.b32.xlu0 %v5574_v18, %s4564_s12 }
 0x96f   :  { %3274 = vrot.lane.b32.xlu2 %v5547_v6, %s4567_s14  ;;  %v2061_v6 = vld [vmem:[%s6876_s3 + $0x18] sm:$0xff] }
 0x970   :  { %2898 = vrot.lane.b32.xlu0 %v5596_v21, %s4564_s12  ;;  %2098 = vmatpush.msra.mxu2 %v2061_v6 }
 0x972   :  { %v1687_v35 = vpop.f32.mrf.mxu2  ;;  %v6275_v5 = vpop.f32.mrf.mxu0 }
 0x973   :  { %3799 = vmatmul.msk.f32.gmra.mxu0 %vm716_vm2, %v1687_v35 }
 0x977   :  { %3270 = vrot.lane.b32.xlu2 %v5574_v18, %s4567_s14 }
 0x978   :  { %2894 = vrot.lane.b32.xlu0 %v5614_v34, %s4564_s12 }
 0x97a   :  { %v1690_v52 = vpop.f32.mrf.mxu2  ;;  %v6282_v6 = vpop.f32.mrf.mxu0 }
 0x97b   :  { %3800 = vmatmul.msk.f32.gmra.mxu0 %vm716_vm2, %v1690_v52 }
 0x97f   :  { %v1950_v28 = vpop.xlane.xlu0 %1949  ;;  %3266 = vrot.lane.b32.xlu2 %v5596_v21, %s4567_s14  ;;  %v2485_v21 = vpop.permute.xlu2 %2484 }
 0x980   :  { %4418 = vrcp.f32 %v1950_v28  ;;  %2890 = vrot.lane.b32.xlu0 %v5633_v49, %s4564_s12 }
 0x983   :  { %3847 = vmatmul.msk.f32.vlgmr.msrb.gmra.mxu0 %vm716_vm2, %v5904_v30 }
 0x986   :  { %v4419_v18 = vpop.eup %4418 }
 0x987   :  { %3262 = vrot.lane.b32.xlu2 %v5614_v34, %s4567_s14  ;;  %v1965_v61 = vmul.f32 %v4419_v18, %v6118_v32 }
 0x988   :  { %3280 = vrot.lane.b32.xlu0 %v5708_v16, %s4567_s14  ;;  %v2481_v16 = vpop.permute.xlu2 %2480 }
 0x989   :  { %1973 = vst [vmem:[#allocation2 + $0xd0] sm:$0xff] %v1965_v61  ;;  %2054 = vmatmul.f32.gmra.mxu3 %v1965_v61 }
 0x98b   :  { %3848 = vmatmul.msk.f32.gmra.mxu0 %vm716_vm2, %v5920_v57 }
 0x98f   :  { %3258 = vrot.lane.b32.xlu2 %v5633_v49, %s4567_s14 }
 0x990   :  { %3278 = vrot.lane.b32.xlu0 %v5530_v58, %s4567_s14  ;;  %v2479_v8 = vpop.permute.xlu2 %2478 }
 0x991   :  { %2057 = vmatmul.f32.gmra.mxu3 %v1966_v54 }
 0x992   :  { %v4167_v25 = vpop.permute.xlu0 %4166 }
 0x993   :  { %v4168_v1 = vunpack.i.l.bf16 %v4167_v25  ;;  %3849 = vmatmul.msk.f32.gmra.mxu0 %vm716_vm2, %v5803_v41  ;;  %v4169_v32 = vunpack.i.h.bf16 %v4167_v25 }
 0x995   :  { %2419 = vmatpush.msrb.mxu3 %v4168_v1 }
 0x997   :  { %3254 = vrot.lane.b32.xlu2 %v5920_v57, %s4567_s14  ;;  %2420 = vmatpush.msrb.mxu3 %v4169_v32 }
 0x998   :  { %2870 = vrot.lane.b32.xlu0 %v5904_v30, %s4565_s13  ;;  %v2477_v42 = vpop.permute.xlu2 %2476 }
 0x99a   :  { %v4172_v14 = vpop.permute.xlu0 %4171 }
 0x99b   :  { %v4173_v29 = vunpack.i.l.bf16 %v4172_v14  ;;  %3850 = vmatmul.msk.f32.gmra.mxu0 %vm716_vm2, %v5633_v49  ;;  %v4174_v58 = vunpack.i.h.bf16 %v4172_v14 }
 0x99d   :  { %2421 = vmatpush.msrb.mxu3 %v4173_v29 }
 0x99f   :  { %3238 = vrot.lane.b32.xlu2 %v5904_v30, %s4568_s29  ;;  %2422 = vmatpush.msrb.mxu3 %v4174_v58  ;;  %v4184_v30 = vunpack.i.h.bf16 %v4182_v59  ;;  %v2915_v59 = vpop.permute.xlu1 %2914 }
 0x9a0   :  { %2872 = vrot.lane.b32.xlu0 %v5920_v57, %s4565_s13  ;;  %v2471_v4 = vpop.permute.xlu2 %2470 }
 0x9a2   :  { %v4177_v38 = vpop.permute.xlu0 %4176 }
 0x9a3   :  { %v4178_v20 = vunpack.i.l.bf16 %v4177_v38  ;;  %3851 = vmatmul.msk.f32.gmra.mxu0 %vm716_vm2, %v5789_v9  ;;  %v4179_v46 = vunpack.i.h.bf16 %v4177_v38 }
 0x9a5   :  { %v2040_v43 = vpop.f32.mrf.mxu3  ;;  %2423 = vmatpush.msrb.mxu3 %v4178_v20 }
 0x9a6   :  { %3824 = vmatmul.msk.f32.vlgmr.msra.gmra.mxu2 %vm716_vm2, %v2040_v43 }
 0x9a7   :  { %2424 = vmatpush.msrb.mxu3 %v4179_v46 }
 0x9a8   :  { %2874 = vrot.lane.b32.xlu0 %v5803_v41, %s4565_s13  ;;  %v2467_v54 = vpop.permute.xlu2 %2466 }
 0x9a9   :  { %2425 = vmatpush.msrb.mxu3 %v4183_v63 }
 0x9aa   :  { %v2491_v57 = vpop.permute.xlu0 %2490 }
 0x9ab   :  { %3852 = vmatmul.msk.f32.gmra.mxu0 %vm716_vm2, %v5614_v34  ;;  %2426 = vmatpush.msrb.mxu3 %v4184_v30 }
 0x9ac   :  { %3856 = vmatpush.xpose.msk.msra.mxu1 %vm716_vm2, %v2491_v57 }
 0x9ad   :  { %v2043_v17 = vpop.f32.mrf.mxu3 }
 0x9ae   :  { %3825 = vmatmul.msk.f32.gmra.mxu2 %vm716_vm2, %v2043_v17 }
 0x9b0   :  { %3857 = vmatpush.xpose.msk.msra.mxu1 %vm716_vm2, %v2489_v11  ;;  %2876 = vrot.lane.b32.xlu0 %v5633_v49, %s4565_s13  ;;  %v2913_v18 = vpop.permute.xlu2 %2912  ;;  %v2451_v11 = vpop.permute.xlu1 %2450 }
 0x9b2   :  { %v2487_v12 = vpop.permute.xlu0 %2486 }
 0x9b3   :  { %3853 = vmatmul.msk.f32.gmra.mxu0 %vm716_vm2, %v5775_v36 }
 0x9b4   :  { %3858 = vmatpush.xpose.msk.msra.mxu1 %vm716_vm2, %v2487_v12 }
 0x9b5   :  { %v2046_v19 = vpop.f32.mrf.mxu3 }
 0x9b6   :  { %3826 = vmatmul.msk.f32.gmra.mxu2 %vm716_vm2, %v2046_v19 }
 0x9b8   :  { %3859 = vmatpush.xpose.msk.msra.mxu1 %vm716_vm2, %v2485_v21  ;;  %2878 = vrot.lane.b32.xlu0 %v5789_v9, %s4565_s13  ;;  %v6287_v21 = vpop.f32.mrf.mxu0  ;;  %v2909_v25 = vpop.permute.xlu2 %2908 }
 0x9b9   :  { %v2453_v32 = vpop.permute.xlu1 %2452 }
 0x9ba   :  { %v2475_v22 = vpop.permute.xlu0 %2474 }
 0x9bc   :  { %3860 = vmatpush.xpose.msk.msra.mxu1 %vm716_vm2, %v2483_v26 }
 0x9bd   :  { %v2049_v50 = vpop.f32.mrf.mxu3 }
 0x9be   :  { %3827 = vmatmul.msk.f32.gmra.mxu2 %vm716_vm2, %v2049_v50 }
 0x9c0   :  { %3861 = vmatpush.xpose.msk.msra.mxu1 %vm716_vm2, %v2481_v16  ;;  %2880 = vrot.lane.b32.xlu0 %v5614_v34, %s4565_s13  ;;  %v6291_v16 = vpop.f32.mrf.mxu0  ;;  %v2905_v14 = vpop.permute.xlu2 %2904 }
 0x9c1   :  { %v2455_v58 = vpop.permute.xlu1 %2454 }
 0x9c2   :  { %v2465_v35 = vpop.permute.xlu0 %2464 }
 0x9c4   :  { %3862 = vmatpush.xpose.msk.msra.mxu1 %vm716_vm2, %v2479_v8 }
 0x9c5   :  { %v2052_v52 = vpop.f32.mrf.mxu3 }
 0x9c6   :  { %3828 = vmatmul.msk.f32.gmra.mxu2 %vm716_vm2, %v2052_v52 }
 0x9c8   :  { %3863 = vmatpush.xpose.msk.msra.mxu1 %vm716_vm2, %v2477_v42  ;;  %2882 = vrot.lane.b32.xlu0 %v5775_v36, %s4565_s13  ;;  %v6297_v38 = vpop.f32.mrf.mxu0  ;;  %v2901_v20 = vpop.permute.xlu2 %2900 }
 0x9c9   :  { %v2457_v46 = vpop.permute.xlu1 %2456 }
 0x9ca   :  { %v2911_v28 = vpop.permute.xlu0 %2910 }
 0x9cc   :  { %3864 = vmatpush.xpose.msk.msra.mxu1 %vm716_vm2, %v2475_v22 }
 0x9d0   :  { %3865 = vmatpush.xpose.msk.msra.mxu1 %vm716_vm2, %v2473_v51  ;;  %v2897_v63 = vpop.permute.xlu2 %2896 }
 0x9d1   :  { %v2459_v57 = vpop.permute.xlu1 %2458 }
 0x9d2   :  { %v2907_v61 = vpop.permute.xlu0 %2906 }
 0x9d4   :  { %3866 = vmatpush.xpose.msk.msra.mxu1 %vm716_vm2, %v2471_v4 }
 0x9d8   :  { %3867 = vmatpush.xpose.msk.msra.mxu1 %vm716_vm2, %v2469_v33  ;;  %v2893_v17 = vpop.permute.xlu2 %2892 }
 0x9d9   :  { %v2461_v4 = vpop.permute.xlu1 %2460 }
 0x9da   :  { %v2903_v1 = vpop.permute.xlu0 %2902 }
 0x9dc   :  { %3868 = vmatpush.xpose.msk.msra.mxu1 %vm716_vm2, %v2467_v54 }
 0x9e0   :  { %3869 = vmatpush.xpose.msk.msra.mxu1 %vm716_vm2, %v2465_v35  ;;  %v6321_v22 = vpop.permute.xlu2 %3282 }
 0x9e2   :  { %v2899_v29 = vpop.permute.xlu0 %2898 }
 0x9e3   :  { %3870 = vmatmul.msk.f32.vlgmr.msra.gmra.mxu1 %vm716_vm2, %v2451_v11 }
 0x9e4   :  { %3891 = vmatpush.xpose.msk.msrb.mxu1 %vm716_vm2, %v2915_v59  ;;  %v2889_v59 = vpop.permute.xlu1 %2888 }
 0x9e8   :  { %3892 = vmatpush.xpose.msk.msrb.mxu1 %vm716_vm2, %v2913_v18  ;;  %v2463_v11 = vpop.permute.xlu2 %2462 }
 0x9ea   :  { %v2895_v8 = vpop.permute.xlu0 %2894 }
 0x9eb   :  { %3871 = vmatmul.msk.f32.gmra.mxu1 %vm716_vm2, %v2453_v32 }
 0x9ec   :  { %3893 = vmatpush.xpose.msk.msrb.mxu1 %vm716_vm2, %v2911_v28  ;;  %v2887_v32 = vpop.permute.xlu1 %2886 }
 0x9f0   :  { %3894 = vmatpush.xpose.msk.msrb.mxu1 %vm716_vm2, %v2909_v25  ;;  %v6302_v43 = vpop.f32.mrf.mxu0 }
 0x9f2   :  { %v2891_v30 = vpop.permute.xlu0 %2890 }
 0x9f3   :  { %3872 = vmatmul.msk.f32.gmra.mxu1 %vm716_vm2, %v2455_v58 }
 0x9f4   :  { %3895 = vmatpush.xpose.msk.msrb.mxu1 %vm716_vm2, %v2907_v61 }
 0x9f8   :  { %3896 = vmatpush.xpose.msk.msrb.mxu1 %vm716_vm2, %v2905_v14  ;;  %v6307_v26 = vpop.f32.mrf.mxu0 }
 0x9fa   :  { %v6312_v42 = vpop.permute.xlu0 %3280 }
 0x9fb   :  { %3873 = vmatmul.msk.f32.gmra.mxu1 %vm716_vm2, %v2457_v46  ;;  %v1372_v46 = vadd.f32 %v6041_v23, %v5870_v44  ;;  %v1375_v44 = vadd.f32 %v6045_v31, %v5872_v3  ;;  %v1378_v31 = vadd.f32 %v6050_v55, %v5874_v60 }
 0x9fc   :  { %3897 = vmatpush.xpose.msk.msrb.mxu1 %vm716_vm2, %v2903_v1 }
 0xa00   :  { %3898 = vmatpush.xpose.msk.msrb.mxu1 %vm716_vm2, %v2901_v20  ;;  %v2257_v12 = vpop.f32.mrf.mxu0  ;;  %v2885_v20 = vpop.permute.xlu2 %2884 }
 0xa01   :  { %v2278_v51 = vmul.f32 0.35355338, %v2257_v12 }
 0xa02   :  { %v6323_v33 = vpop.permute.xlu0 %3278 }
 0xa03   :  { %v6316_v19 = vadd.f32 %v2278_v51, %v6911_v56  ;;  %3874 = vmatmul.msk.f32.gmra.mxu1 %vm716_vm2, %v2459_v57  ;;  %v6359_v57 = vld [vmem:[%s6877_s4] ss:$0 sm:$0xff] }
 0xa04   :  { %3899 = vmatpush.xpose.msk.msrb.mxu1 %vm716_vm2, %v2899_v29 }
 0xa05   :  { %2292 = vmax.xlane.f32.xlu2 %v6316_v19 }
 0xa08   :  { %3900 = vmatpush.xpose.msk.msrb.mxu1 %vm716_vm2, %v2897_v63  ;;  %v2260_v50 = vpop.f32.mrf.mxu0 }
 0xa09   :  { %v2279_v54 = vmul.f32 0.35355338, %v2260_v50  ;;  %v6374_v50 = vpop.permute.xlu2 %3274 }
 0xa0a   :  { %v2871_v61 = vpop.permute.xlu0 %2870 }
 0xa0b   :  { %v6327_v35 = vadd.f32 %v2279_v54, %v6911_v56  ;;  %3875 = vmatmul.msk.f32.gmra.mxu1 %vm716_vm2, %v2461_v4  ;;  %v6372_v4 = vpop.permute.xlu1 %3276 }
 0xa0c   :  { %3901 = vmatpush.xpose.msk.msrb.mxu1 %vm716_vm2, %v2895_v8  ;;  %v2055_v52 = vpop.f32.mrf.mxu3 }
 0xa0d   :  { %3829 = vmatmul.msk.f32.gmra.mxu2 %vm716_vm2, %v2055_v52  ;;  %2294 = vmax.xlane.f32.xlu1 %v6327_v35 }
 0xa10   :  { %3902 = vmatpush.xpose.msk.msrb.mxu1 %vm716_vm2, %v2893_v17  ;;  %v2263_v28 = vpop.f32.mrf.mxu0 }
 0xa11   :  { %v2280_v18 = vmul.f32 0.35355338, %v2263_v28  ;;  %v6390_v60 = vpop.permute.xlu2 %3270 }
 0xa12   :  { %v2873_v8 = vpop.permute.xlu0 %2872 }
 0xa13   :  { %v6335_v25 = vadd.f32 %v2280_v18, %v6911_v56  ;;  %3876 = vmatmul.msk.f32.gmra.mxu1 %vm716_vm2, %v2463_v11  ;;  %v6386_v28 = vpop.permute.xlu1 %3272  ;;  %v1381_v18 = vadd.f32 %v6057_v40, %v5876_v0  ;;  %v1384_v0 = vadd.f32 %v6064_v62, %v5878_v13 }
 0xa14   :  { %3903 = vmatpush.xpose.msk.msrb.mxu1 %vm716_vm2, %v2891_v30  ;;  %v2058_v1 = vpop.f32.mrf.mxu3  ;;  %v1753_v30 = vadd.f32 %v6275_v5, %v1372_v46 }
 0xa15   :  { %3830 = vmatmul.msk.f32.gmra.mxu2 %vm716_vm2, %v2058_v1  ;;  %2296 = vmax.xlane.f32.xlu0 %v6335_v25  ;;  %v1756_v55 = vadd.f32 %v6291_v16, %v1381_v18  ;;  %v1757_v16 = vadd.f32 %v6297_v38, %v1384_v0 }
 0xa18   :  { %3904 = vmatpush.xpose.msk.msrb.mxu1 %vm716_vm2, %v2889_v59  ;;  %v2266_v14 = vpop.f32.mrf.mxu0 }
 0xa19   :  { %v2281_v29 = vmul.f32 0.35355338, %v2266_v14  ;;  %v6408_v14 = vpop.permute.xlu2 %3266 }
 0xa1a   :  { %v2875_v63 = vpop.permute.xlu0 %2874 }
 0xa1b   :  { %v6343_v58 = vadd.f32 %v2281_v29, %v6911_v56  ;;  %v6405_v40 = vpop.permute.xlu1 %3268 }
 0xa1c   :  { %3905 = vmatpush.xpose.msk.msrb.mxu1 %vm716_vm2, %v2887_v32 }
 0xa1d   :  { %3244 = vrot.lane.b32.xlu2 %v5633_v49, %s4568_s29  ;;  %2298 = vmax.xlane.f32.xlu0 %v6343_v58 }
 0xa20   :  { %3906 = vmatpush.xpose.msk.msrb.mxu1 %vm716_vm2, %v2885_v20 }
 0xa22   :  { %v2877_v23 = vpop.permute.xlu0 %2876 }
 0xa23   :  { %3907 = vmatmul.msk.f32.vlgmr.msrb.gmra.mxu1 %vm716_vm2, %v2871_v61  ;;  %v2269_v61 = vpop.f32.mrf.mxu0  ;;  %v6418_v38 = vpop.permute.xlu1 %3264 }
 0xa26   :  { %3246 = vrot.lane.b32.xlu1 %v5789_v9, %s4568_s29  ;;  %v1754_v9 = vadd.f32 %v6282_v6, %v1375_v44  ;;  %v1755_v6 = vadd.f32 %v6287_v21, %v1378_v31 }
 0xa29   :  { %v2100_v49 = vpop.f32.mrf.mxu2 }
 0xa2a   :  { %v2121_v17 = vadd.f32 %v2100_v49, %v1753_v30  ;;  %v2879_v52 = vpop.permute.xlu0 %2878  ;;  %v6420_v30 = vpop.permute.xlu2 %3262 }
 0xa2b   :  { %3908 = vmatmul.msk.f32.gmra.mxu1 %vm716_vm2, %v2873_v8  ;;  %v2282_v8 = vmul.f32 0.35355338, %v2269_v61  ;;  %v6423_v44 = vpop.permute.xlu1 %3260 }
 0xa2c   :  { %v2132_v12 = vadd.f32 %v6359_v57, %v2121_v17 }
 0xa2d   :  { %v2289_v13 = vadd.f32 %v2282_v8, %v6911_v56 }
 0xa2e   :  { %2139 = vst.msk [vmem:[%s6881_s8] sm:$0xff] %vm72_vm0, %v2132_v12 }
 0xa31   :  { %v2103_v5 = vpop.f32.mrf.mxu2  ;;  %3242 = vrot.lane.b32.xlu0 %v5803_v41, %s4568_s29 }
 0xa32   :  { %v2122_v51 = vadd.f32 %v2103_v5, %v1754_v9  ;;  %v2881_v32 = vpop.permute.xlu0 %2880 }
 0xa33   :  { %3909 = vmatmul.msk.f32.gmra.mxu1 %vm716_vm2, %v2875_v63  ;;  %v2272_v63 = vpop.f32.mrf.mxu0 }
 0xa34   :  { %v2133_v3 = vadd.f32 %v6359_v57, %v2122_v51  ;;  %v2283_v49 = vmul.f32 0.35355338, %v2272_v63  ;;  %v6428_v51 = vpop.permute.xlu1 %3256 }
 0xa36   :  { %2140 = vst.msk [vmem:[%s6881_s8 + $0x8] sm:$0xff] %vm72_vm0, %v2133_v3  ;;  %v2290_v17 = vadd.f32 %v2283_v49, %v6911_v56 }
 0xa39   :  { %v2106_v54 = vpop.f32.mrf.mxu2 }
 0xa3a   :  { %v2123_v41 = vadd.f32 %v2106_v54, %v1755_v6  ;;  %v2883_v62 = vpop.permute.xlu0 %2882 }
 0xa3b   :  { %3910 = vmatmul.msk.f32.gmra.mxu1 %vm716_vm2, %v2877_v23  ;;  %v2275_v12 = vpop.f32.mrf.mxu0  ;;  %v6425_v23 = vpop.permute.xlu2 %3258 }
 0xa3c   :  { %v2134_v59 = vadd.f32 %v6359_v57, %v2123_v41  ;;  %v2284_v9 = vmul.f32 0.35355338, %v2275_v12  ;;  %v6432_v31 = vpop.permute.xlu1 %3252 }
 0xa3e   :  { %2141 = vst.msk [vmem:[%s6881_s8 + $0x10] sm:$0xff] %vm72_vm0, %v2134_v59  ;;  %v2291_v5 = vadd.f32 %v2284_v9, %v6911_v56 }
 0xa41   :  { %v2109_v21 = vpop.f32.mrf.mxu2 }
 0xa42   :  { %v2124_v11 = vadd.f32 %v2109_v21, %v1756_v55 }
 0xa43   :  { %3911 = vmatmul.msk.f32.gmra.mxu1 %vm716_vm2, %v2879_v52  ;;  %v6430_v3 = vpop.permute.xlu2 %3254 }
 0xa44   :  { %v2135_v1 = vadd.f32 %v6359_v57, %v2124_v11  ;;  %v6436_v41 = vpop.permute.xlu1 %3240 }
 0xa46   :  { %2142 = vst.msk [vmem:[%s6881_s8 + $0x18] sm:$0xff] %vm72_vm0, %v2135_v1 }
 0xa49   :  { %v2112_v29 = vpop.f32.mrf.mxu2 }
 0xa4a   :  { %v2125_v20 = vadd.f32 %v2112_v29, %v1757_v16 }
 0xa4b   :  { %3912 = vmatmul.msk.f32.gmra.mxu1 %vm716_vm2, %v2881_v32  ;;  %v6434_v6 = vpop.permute.xlu2 %3238 }
 0xa4c   :  { %v2136_v46 = vadd.f32 %v6359_v57, %v2125_v20 }
 0xa4e   :  { %2143 = vst.msk [vmem:[%s6881_s8 + $0x20] sm:$0xff] %vm72_vm0, %v2136_v46 }
 0xa50   :  { %2300 = vmax.xlane.f32.xlu1 %v2289_v13 }
 0xa53   :  { %3913 = vmatmul.msk.f32.gmra.mxu1 %vm716_vm2, %v2883_v62  ;;  %v1390_v62 = vadd.f32 %v6086_v15, %v5882_v37 }
 0xa58   :  { %2302 = vmax.xlane.f32.xlu1 %v2290_v17 }
 0xa60   :  { %2304 = vmax.xlane.f32.xlu1 %v2291_v5  ;;  %v2559_v15 = vpop.f32.mrf.mxu1 }
 0xa78   :  { %v2293_v54 = vpop.xlane.xlu2 %2292 }
 0xa79   :  { %v2306_v52 = vsub.f32 %v6316_v19, %v2293_v54  ;;  %v1387_v19 = vadd.f32 %v6072_v10, %v5880_v27  ;;  %v1759_v27 = vadd.f32 %v6307_v26, %v1390_v62  ;;  %v6472_v26 = vpop.f32.mrf.mxu1 }
 0xa7b   :  { %v2313_v59 = vmul.f32 1.442695, %v2306_v52 }
 0xa7d   :  { %4420 = vpow2.f32 %v2313_v59 }
 0xa80   :  { %v2295_v18 = vpop.xlane.xlu1 %2294 }
 0xa81   :  { %v2307_v55 = vsub.f32 %v6327_v35, %v2295_v18  ;;  %v1758_v35 = vadd.f32 %v6302_v43, %v1387_v19 }
 0xa83   :  { %v6440_v21 = vpop.eup %4420  ;;  %v2315_v11 = vmul.f32 1.442695, %v2307_v55 }
 0xa84   :  { %2327 = vadd.xlane.f32.xlu1 %v6440_v21 }
 0xa85   :  { %4422 = vpow2.f32 %v2315_v11  ;;  %v2565_v11 = vpop.f32.mrf.mxu1 }
 0xa88   :  { %v2297_v61 = vpop.xlane.xlu0 %2296 }
 0xa89   :  { %v2308_v1 = vsub.f32 %v6335_v25, %v2297_v61 }
 0xa8b   :  { %v6444_v32 = vpop.eup %4422  ;;  %v2317_v0 = vmul.f32 1.442695, %v2308_v1 }
 0xa8c   :  { %2329 = vadd.xlane.f32.xlu1 %v6444_v32 }
 0xa8d   :  { %4424 = vpow2.f32 %v2317_v0 }
 0xa90   :  { %v2115_v16 = vpop.f32.mrf.mxu2  ;;  %v2299_v20 = vpop.xlane.xlu0 %2298 }
 0xa91   :  { %v2126_v29 = vadd.f32 %v2115_v16, %v1758_v35  ;;  %v2309_v8 = vsub.f32 %v6343_v58, %v2299_v20  ;;  %v2568_v35 = vpop.f32.mrf.mxu1 }
 0xa92   :  { %v2583_v16 = vmul.f32 0.35355338, %v2568_v35 }
 0xa93   :  { %v2137_v46 = vadd.f32 %v6359_v57, %v2126_v29  ;;  %v6452_v63 = vpop.eup %4424  ;;  %v2319_v25 = vmul.f32 1.442695, %v2309_v8 }
 0xa94   :  { %2331 = vadd.xlane.f32.xlu0 %v6452_v63  ;;  %v6491_v29 = vadd.f32 %v2583_v16, %v6911_v56 }
 0xa95   :  { %2144 = vst.msk [vmem:[%s6881_s8 + $0x28] sm:$0xff] %vm72_vm0, %v2137_v46  ;;  %4426 = vpow2.f32 %v2319_v25 }
 0xa98   :  { %v2118_v10 = vpop.f32.mrf.mxu2  ;;  %v6470_v37 = vpop.permute.xlu1 %3246 }
 0xa99   :  { %v2127_v43 = vadd.f32 %v2118_v10, %v1759_v27 }
 0xa9b   :  { %v2138_v58 = vadd.f32 %v6359_v57, %v2127_v43  ;;  %v6463_v49 = vpop.eup %4426 }
 0xa9c   :  { %2333 = vadd.xlane.f32.xlu1 %v6463_v49 }
 0xa9d   :  { %2145 = vst.msk [vmem:[%s6881_s8 + $0x30] sm:$0xff] %vm72_vm0, %v2138_v58 }
 0xaa3   :  { %v6499_v25 = vpop.permute.xlu0 %3242 }
 0xac3   :  { %v2301_v12 = vpop.xlane.xlu1 %2300 }
 0xac4   :  { %v2310_v9 = vsub.f32 %v2289_v13, %v2301_v12  ;;  %v2580_v13 = vmul.f32 0.35355338, %v2559_v15 }
 0xac6   :  { %v2321_v54 = vmul.f32 1.442695, %v2310_v9  ;;  %v6481_v19 = vadd.f32 %v2580_v13, %v6911_v56 }
 0xac8   :  { %4428 = vpow2.f32 %v2321_v54 }
 0xacb   :  { %v2303_v52 = vpop.xlane.xlu1 %2302 }
 0xacc   :  { %v2311_v57 = vsub.f32 %v2290_v17, %v2303_v52 }
 0xace   :  { %v6474_v59 = vpop.eup %4428  ;;  %v2323_v18 = vmul.f32 1.442695, %v2311_v57 }
 0xacf   :  { %2335 = vadd.xlane.f32.xlu2 %v6474_v59 }
 0xad0   :  { %4430 = vpow2.f32 %v2323_v18 }
 0xad3   :  { %v2305_v55 = vpop.xlane.xlu1 %2304 }
 0xad4   :  { %v2312_v61 = vsub.f32 %v2291_v5, %v2305_v55  ;;  %v2449_v5 = vld [vmem:[%s6876_s3] sm:$0xff] }
 0xad5   :  { %2847 = vmatpush.msra.mxu3 %v2449_v5 }
 0xad6   :  { %v6477_v1 = vpop.eup %4430  ;;  %v2325_v0 = vmul.f32 1.442695, %v2312_v61 }
 0xad7   :  { %2337 = vadd.xlane.f32.xlu1 %v6477_v1 }
 0xad8   :  { %4432 = vpow2.f32 %v2325_v0 }
 0xade   :  { %v6483_v17 = vpop.eup %4432 }
 0xadf   :  { %2594 = vmax.xlane.f32.xlu1 %v6481_v19  ;;  %2339 = vadd.xlane.f32.xlu0 %v6483_v17 }
 0xae7   :  { %3250 = vrot.lane.b32.xlu2 %v5775_v36, %s4568_s29  ;;  %2600 = vmax.xlane.f32.xlu1 %v6491_v29 }
 0xaf3   :  { %3248 = vrot.lane.b32.xlu0 %v5614_v34, %s4568_s29 }
 0xaf7   :  { %v2328_v20 = vpop.xlane.xlu1 %2327 }
 0xaf8   :  { %4434 = vrcp.f32 %v2328_v20 }
 0xafe   :  { %v4435_v8 = vpop.eup %4434 }
 0xaff   :  { %v2348_v46 = vmul.f32 %v4435_v8, %v6440_v21  ;;  %v2330_v62 = vpop.xlane.xlu1 %2329  ;;  %v2582_v21 = vmul.f32 0.35355338, %v2565_v11 }
 0xb00   :  { %4436 = vrcp.f32 %v2330_v62  ;;  %4191 = vrot.lane.b32.xlu1 %v6037_v2, %s4563_s11 }
 0xb01   :  { %2356 = vst [vmem:[#allocation2 + $0xe0] sm:$0xff] %v2348_v46  ;;  %2427 = vmatmul.f32.vlgmr.msrb.gmra.mxu3 %v2348_v46 }
 0xb02   :  { %3921 = vmatpush.xpose.msk.msrb.mxu3 %vm716_vm2, %v6321_v22  ;;  %v6513_v22 = vadd.f32 %v2582_v21, %v6911_v56 }
 0xb06   :  { %3922 = vmatpush.xpose.msk.msrb.mxu3 %vm716_vm2, %v6312_v42  ;;  %v4437_v34 = vpop.eup %4436  ;;  %v2571_v42 = vpop.f32.mrf.mxu1 }
 0xb07   :  { %v2332_v36 = vpop.xlane.xlu0 %2331  ;;  %v2349_v27 = vmul.f32 %v4437_v34, %v6444_v32  ;;  %v2584_v58 = vmul.f32 0.35355338, %v2571_v42 }
 0xb08   :  { %4438 = vrcp.f32 %v2332_v36  ;;  %4201 = vrot.lane.b32.xlu1 %v6023_v47, %s4563_s11 }
 0xb09   :  { %2357 = vst [vmem:[#allocation2 + $0xe8] sm:$0xff] %v2349_v27  ;;  %2430 = vmatmul.f32.gmra.mxu3 %v2349_v27  ;;  %v6522_v15 = vadd.f32 %v2584_v58, %v6911_v56 }
 0xb0a   :  { %3923 = vmatpush.xpose.msk.msrb.mxu3 %vm716_vm2, %v6323_v33 }
 0xb0e   :  { %v4439_v10 = vpop.eup %4438  ;;  %3924 = vmatpush.xpose.msk.msrb.mxu3 %vm716_vm2, %v6372_v4  ;;  %v2581_v4 = vmul.f32 0.35355338, %v6472_v26 }
 0xb0f   :  { %v2334_v43 = vpop.xlane.xlu1 %2333  ;;  %v2350_v32 = vmul.f32 %v4439_v10, %v6452_v63 }
 0xb10   :  { %4440 = vrcp.f32 %v2334_v43  ;;  %2598 = vmax.xlane.f32.xlu2 %v6513_v22 }
 0xb11   :  { %2358 = vst [vmem:[#allocation2 + $0xf0] sm:$0xff] %v2350_v32  ;;  %2433 = vmatmul.f32.gmra.mxu3 %v2350_v32 }
 0xb12   :  { %3925 = vmatpush.xpose.msk.msrb.mxu3 %vm716_vm2, %v6374_v50  ;;  %v6532_v50 = vadd.f32 %v2581_v4, %v6911_v56 }
 0xb16   :  { %v4441_v33 = vpop.eup %4440  ;;  %3926 = vmatpush.xpose.msk.msrb.mxu3 %vm716_vm2, %v6386_v28  ;;  %v2574_v28 = vpop.f32.mrf.mxu1 }
 0xb17   :  { %v2351_v63 = vmul.f32 %v4441_v33, %v6463_v49 }
 0xb18   :  { %2602 = vmax.xlane.f32.xlu2 %v6522_v15 }
 0xb19   :  { %2359 = vst [vmem:[#allocation2 + $0xf8] sm:$0xff] %v2351_v63  ;;  %2436 = vmatmul.f32.gmra.mxu3 %v2351_v63 }
 0xb1a   :  { %3927 = vmatpush.xpose.msk.msrb.mxu3 %vm716_vm2, %v6390_v60 }
 0xb1d   :  { %2596 = vmax.xlane.f32.xlu0 %v6532_v50 }
 0xb1e   :  { %3928 = vmatpush.xpose.msk.msrb.mxu3 %vm716_vm2, %v6405_v40  ;;  %v2577_v49 = vpop.f32.mrf.mxu1  ;;  %v6559_v40 = vpop.permute.xlu2 %3244 }
 0xb1f   :  { %v2586_v60 = vmul.f32 0.35355338, %v2577_v49 }
 0xb21   :  { %v6546_v12 = vadd.f32 %v2586_v60, %v6911_v56 }
 0xb22   :  { %3929 = vmatpush.xpose.msk.msrb.mxu3 %vm716_vm2, %v6408_v14 }
 0xb26   :  { %3930 = vmatpush.xpose.msk.msrb.mxu3 %vm716_vm2, %v6418_v38  ;;  %v2979_v54 = vpop.f32.mrf.mxu1 }
 0xb27   :  { %v3000_v62 = vmul.f32 0.35355338, %v2979_v54 }
 0xb29   :  { %v6596_v10 = vadd.f32 %v3000_v62, %v6911_v56 }
 0xb2a   :  { %3931 = vmatpush.xpose.msk.msrb.mxu3 %vm716_vm2, %v6420_v30 }
 0xb2e   :  { %3932 = vmatpush.xpose.msk.msrb.mxu3 %vm716_vm2, %v6423_v44  ;;  %v2982_v55 = vpop.f32.mrf.mxu1 }
 0xb2f   :  { %v3001_v33 = vmul.f32 0.35355338, %v2982_v55 }
 0xb30   :  { %4196 = vrot.lane.b32.xlu2 %v6017_v45, %s4563_s11 }
 0xb31   :  { %4186 = vrot.lane.b32.xlu0 %v6027_v7, %s4563_s11 }
 0xb32   :  { %3933 = vmatpush.xpose.msk.msrb.mxu3 %vm716_vm2, %v6425_v23  ;;  %2606 = vmax.xlane.f32.xlu1 %v6546_v12 }
 0xb36   :  { %3934 = vmatpush.xpose.msk.msrb.mxu3 %vm716_vm2, %v6428_v51  ;;  %v2985_v61 = vpop.f32.mrf.mxu1 }
 0xb38   :  { %4206 = vrot.lane.b32.xlu2 %v6135_v48, %s4563_s11 }
 0xb3a   :  { %3935 = vmatpush.xpose.msk.msrb.mxu3 %vm716_vm2, %v6430_v3 }
 0xb3e   :  { %3936 = vmatpush.xpose.msk.msrb.mxu3 %vm716_vm2, %v6432_v31  ;;  %v2585_v31 = vmul.f32 0.35355338, %v2574_v28  ;;  %v2988_v27 = vpop.f32.mrf.mxu1  ;;  %v6608_v28 = vadd.f32 %v3001_v33, %v6911_v56 }
 0xb40   :  { %4211 = vrot.lane.b32.xlu2 %v6146_v53, %s4563_s11  ;;  %v6572_v52 = vadd.f32 %v2585_v31, %v6911_v56 }
 0xb42   :  { %v2336_v14 = vpop.xlane.xlu2 %2335 }
 0xb43   :  { %4442 = vrcp.f32 %v2336_v14 }
 0xb46   :  { %v2991_v4 = vpop.f32.mrf.mxu1 }
 0xb47   :  { %v3004_v49 = vmul.f32 0.35355338, %v2991_v4 }
 0xb49   :  { %v4443_v38 = vpop.eup %4442 }
 0xb4a   :  { %v2338_v30 = vpop.xlane.xlu1 %2337  ;;  %v2352_v44 = vmul.f32 %v4443_v38, %v6474_v59  ;;  %v6586_v13 = vpop.permute.xlu2 %3250 }
 0xb4b   :  { %4444 = vrcp.f32 %v2338_v30  ;;  %4221 = vrot.lane.b32.xlu1 %v6076_v39, %s4563_s11 }
 0xb4c   :  { %2360 = vst [vmem:[#allocation2 + $0x100] sm:$0xff] %v2352_v44  ;;  %2439 = vmatmul.f32.gmra.mxu3 %v2352_v44  ;;  %v6613_v44 = vadd.f32 %v3004_v49, %v6911_v56 }
 0xb51   :  { %v4445_v23 = vpop.eup %4444 }
 0xb52   :  { %v2340_v51 = vpop.xlane.xlu0 %2339  ;;  %v2353_v3 = vmul.f32 %v4445_v23, %v6477_v1  ;;  %v2595_v9 = vpop.xlane.xlu1 %2594  ;;  %v3002_v1 = vmul.f32 0.35355338, %v2985_v61 }
 0xb53   :  { %4446 = vrcp.f32 %v2340_v51  ;;  %v2608_v57 = vsub.f32 %v6481_v19, %v2595_v9 }
 0xb54   :  { %2361 = vst [vmem:[#allocation2 + $0x108] sm:$0xff] %v2353_v3  ;;  %2442 = vmatmul.f32.gmra.mxu3 %v2353_v3  ;;  %v6583_v0 = vadd.f32 %v3002_v1, %v6911_v56  ;;  %v3003_v1 = vmul.f32 0.35355338, %v2988_v27  ;;  %v2994_v27 = vpop.f32.mrf.mxu1 }
 0xb55   :  { %v2615_v18 = vmul.f32 1.442695, %v2608_v57 }
 0xb57   :  { %4448 = vpow2.f32 %v2615_v18 }
 0xb59   :  { %v4447_v26 = vpop.eup %4446 }
 0xb5a   :  { %v2354_v59 = vmul.f32 %v4447_v26, %v6483_v17  ;;  %v2601_v43 = vpop.xlane.xlu1 %2600 }
 0xb5b   :  { %2604 = vmax.xlane.f32.xlu0 %v6572_v52 }
 0xb5c   :  { %2362 = vst [vmem:[#allocation2 + $0x110] sm:$0xff] %v2354_v59  ;;  %2445 = vmatmul.f32.gmra.mxu3 %v2354_v59 }
 0xb5d   :  { %v6577_v11 = vpop.eup %4448 }
 0xb65   :  { %v6589_v35 = vpop.permute.xlu0 %3248 }
 0xb69   :  { %2629 = vadd.xlane.f32.xlu2 %v6577_v11 }
 0xb6f   :  { %4216 = vrot.lane.b32.xlu0 %v6158_v24, %s4563_s11 }
 0xb72   :  { %v4192_v60 = vpop.permute.xlu1 %4191 }
 0xb73   :  { %v4193_v23 = vunpack.i.l.bf16 %v4192_v60  ;;  %v4194_v3 = vunpack.i.h.bf16 %v4192_v60 }
 0xb75   :  { %3018 = vmax.xlane.f32.xlu1 %v6583_v0 }
 0xb83   :  { %v2599_v17 = vpop.xlane.xlu2 %2598 }
 0xb84   :  { %v2428_v19 = vpop.f32.mrf.mxu3  ;;  %v2610_v58 = vsub.f32 %v6513_v22, %v2599_v17  ;;  %v2611_v22 = vsub.f32 %v6491_v29, %v2601_v43  ;;  %v4202_v29 = vpop.permute.xlu1 %4201  ;;  %v3005_v43 = vmul.f32 0.35355338, %v2994_v27 }
 0xb85   :  { %3884 = vmatmul.msk.f32.vlgmr.msra.gmra.mxu3 %vm716_vm2, %v2428_v19  ;;  %v4203_v57 = vunpack.i.l.bf16 %v4202_v29  ;;  %v4204_v59 = vunpack.i.h.bf16 %v4202_v29 }
 0xb86   :  { %v2619_v63 = vmul.f32 1.442695, %v2610_v58  ;;  %v2621_v51 = vmul.f32 1.442695, %v2611_v22  ;;  %v6641_v58 = vadd.f32 %v3005_v43, %v6911_v56 }
 0xb8b   :  { %v2603_v16 = vpop.xlane.xlu2 %2602 }
 0xb8c   :  { %v2431_v5 = vpop.f32.mrf.mxu3  ;;  %v2612_v46 = vsub.f32 %v6522_v15, %v2603_v16 }
 0xb8d   :  { %3885 = vmatmul.msk.f32.gmra.mxu3 %vm716_vm2, %v2431_v5  ;;  %v6623_v5 = vadd.f32 %v3003_v1, %v6911_v56 }
 0xb8e   :  { %v2623_v21 = vmul.f32 1.442695, %v2612_v46 }
 0xb90   :  { %v2597_v20 = vpop.xlane.xlu0 %2596 }
 0xb91   :  { %v2609_v8 = vsub.f32 %v6532_v50, %v2597_v20 }
 0xb93   :  { %v2617_v34 = vmul.f32 1.442695, %v2609_v8  ;;  %v4197_v50 = vpop.permute.xlu2 %4196 }
 0xb94   :  { %v2434_v36 = vpop.f32.mrf.mxu3  ;;  %v4198_v54 = vunpack.i.l.bf16 %v4197_v50  ;;  %v4199_v26 = vunpack.i.h.bf16 %v4197_v50 }
 0xb95   :  { %4450 = vpow2.f32 %v2617_v34  ;;  %3886 = vmatmul.msk.f32.gmra.mxu3 %vm716_vm2, %v2434_v36 }
 0xb96   :  { %4452 = vpow2.f32 %v2623_v21 }
 0xb97   :  { %4454 = vpow2.f32 %v2619_v63 }
 0xb98   :  { %4456 = vpow2.f32 %v2621_v51 }
 0xb99   :  { %3014 = vmax.xlane.f32.xlu0 %v6596_v10 }
 0xb9b   :  { %v6599_v42 = vpop.eup %4450  ;;  %v4207_v9 = vpop.permute.xlu2 %4206 }
 0xb9c   :  { %v2437_v32 = vpop.f32.mrf.mxu3  ;;  %2631 = vadd.xlane.f32.xlu2 %v6599_v42  ;;  %v6604_v15 = vpop.eup %4452  ;;  %v4208_v55 = vunpack.i.l.bf16 %v4207_v9  ;;  %v4209_v19 = vunpack.i.h.bf16 %v4207_v9 }
 0xb9d   :  { %3887 = vmatmul.msk.f32.gmra.mxu3 %vm716_vm2, %v2437_v32  ;;  %v6616_v31 = vpop.eup %4454 }
 0xb9e   :  { %v6619_v18 = vpop.eup %4456 }
 0xba1   :  { %2637 = vadd.xlane.f32.xlu0 %v6604_v15 }
 0xba3   :  { %v4187_v14 = vpop.permute.xlu0 %4186  ;;  %v4212_v61 = vpop.permute.xlu2 %4211 }
 0xba4   :  { %v4188_v38 = vunpack.i.l.bf16 %v4187_v14  ;;  %3016 = vmax.xlane.f32.xlu2 %v6608_v28  ;;  %v4189_v30 = vunpack.i.h.bf16 %v4187_v14  ;;  %v4213_v17 = vunpack.i.l.bf16 %v4212_v61  ;;  %v4214_v16 = vunpack.i.h.bf16 %v4212_v61  ;;  %v2997_v14 = vpop.f32.mrf.mxu1 }
 0xba5   :  { %v2607_v21 = vpop.xlane.xlu1 %2606 }
 0xba6   :  { %2713 = vmatpush.msrb.mxu2 %v4188_v38 }
 0xba8   :  { %2714 = vmatpush.msrb.mxu2 %v4189_v30  ;;  %v3006_v30 = vmul.f32 0.35355338, %v2997_v14 }
 0xba9   :  { %3022 = vmax.xlane.f32.xlu0 %v6613_v44 }
 0xbaa   :  { %2715 = vmatpush.msrb.mxu2 %v4193_v23  ;;  %v6649_v23 = vadd.f32 %v3006_v30, %v6911_v56 }
 0xbac   :  { %2633 = vadd.xlane.f32.xlu2 %v6616_v31  ;;  %2716 = vmatpush.msrb.mxu2 %v4194_v3 }
 0xbae   :  { %2717 = vmatpush.msrb.mxu2 %v4198_v54 }
 0xbb0   :  { %2718 = vmatpush.msrb.mxu2 %v4199_v26 }
 0xbb2   :  { %2719 = vmatpush.msrb.mxu2 %v4203_v57 }
 0xbb4   :  { %2635 = vadd.xlane.f32.xlu2 %v6619_v18  ;;  %2720 = vmatpush.msrb.mxu2 %v4204_v59 }
 0xbb6   :  { %2721 = vmatpush.msrb.mxu2 %v4208_v55 }
 0xbb8   :  { %2722 = vmatpush.msrb.mxu2 %v4209_v19 }
 0xbba   :  { %2723 = vmatpush.msrb.mxu2 %v4213_v17 }
 0xbbc   :  { %3020 = vmax.xlane.f32.xlu2 %v6623_v5  ;;  %2724 = vmatpush.msrb.mxu2 %v4214_v16 }
 0xbbd   :  { %4231 = vrot.lane.b32.xlu0 %v6037_v2, %s4566_s2  ;;  %v4222_v50 = vpop.permute.xlu1 %4221 }
 0xbbe   :  { %v4223_v38 = vunpack.i.l.bf16 %v4222_v50  ;;  %v4224_v22 = vunpack.i.h.bf16 %v4222_v50 }
 0xbc5   :  { %4241 = vrot.lane.b32.xlu0 %v6023_v47, %s4566_s2 }
 0xbce   :  { %v2605_v20 = vpop.xlane.xlu0 %2604 }
 0xbcf   :  { %v2613_v8 = vsub.f32 %v6572_v52, %v2605_v20  ;;  %v2440_v46 = vpop.f32.mrf.mxu3 }
 0xbd0   :  { %3888 = vmatmul.msk.f32.gmra.mxu3 %vm716_vm2, %v2440_v46 }
 0xbd1   :  { %v2625_v62 = vmul.f32 1.442695, %v2613_v8 }
 0xbd3   :  { %4458 = vpow2.f32 %v2625_v62 }
 0xbd4   :  { %4226 = vrot.lane.b32.xlu2 %v6027_v7, %s4566_s2 }
 0xbd7   :  { %v2443_v34 = vpop.f32.mrf.mxu3 }
 0xbd8   :  { %3889 = vmatmul.msk.f32.gmra.mxu3 %vm716_vm2, %v2443_v34 }
 0xbd9   :  { %v6635_v36 = vpop.eup %4458 }
 0xbda   :  { %2639 = vadd.xlane.f32.xlu1 %v6635_v36 }
 0xbdc   :  { %v2630_v32 = vpop.xlane.xlu2 %2629  ;;  %4236 = vrot.lane.b32.xlu2 %v6017_v45, %s4566_s2 }
 0xbdd   :  { %4460 = vrcp.f32 %v2630_v32 }
 0xbdf   :  { %v2446_v52 = vpop.f32.mrf.mxu3 }
 0xbe0   :  { %3890 = vmatmul.msk.f32.gmra.mxu3 %vm716_vm2, %v2446_v52 }
 0xbe1   :  { %v4217_v33 = vpop.permute.xlu0 %4216 }
 0xbe2   :  { %v4218_v4 = vunpack.i.l.bf16 %v4217_v33  ;;  %3024 = vmax.xlane.f32.xlu1 %v6641_v58  ;;  %v4219_v60 = vunpack.i.h.bf16 %v4217_v33 }
 0xbe3   :  { %v4461_v63 = vpop.eup %4460 }
 0xbe4   :  { %v2650_v49 = vmul.f32 %v4461_v63, %v6577_v11  ;;  %2725 = vmatpush.msrb.mxu2 %v4218_v4  ;;  %v2614_v11 = vsub.f32 %v6546_v12, %v2607_v21 }
 0xbe6   :  { %2658 = vst [vmem:[#allocation2 + $0x118] sm:$0xff] %v2650_v49  ;;  %2726 = vmatpush.msrb.mxu2 %v4219_v60  ;;  %v2627_v51 = vmul.f32 1.442695, %v2614_v11 }
 0xbe8   :  { %3937 = vmatmul.msk.f32.vlgmr.msrb.gmra.mxu3 %vm716_vm2, %v6434_v6  ;;  %2727 = vmatpush.msrb.mxu2 %v4223_v38  ;;  %4462 = vpow2.f32 %v2627_v51  ;;  %v3019_v29 = vpop.xlane.xlu1 %3018 }
 0xbea   :  { %2728 = vmatpush.msrb.mxu2 %v4224_v22  ;;  %v2751_v22 = vld [vmem:[%s6876_s3 + $0x8] sm:$0xff] }
 0xbeb   :  { %2729 = vmatmul.f32.vlgmr.msrb.gmra.mxu2 %v2650_v49  ;;  %2788 = vmatpush.msra.mxu0 %v2751_v22 }
 0xbee   :  { %v6665_v6 = vpop.eup %4462 }
 0xbef   :  { %3026 = vmax.xlane.f32.xlu0 %v6649_v23 }
 0xbf0   :  { %3938 = vmatmul.msk.f32.gmra.mxu3 %vm716_vm2, %v6436_v41 }
 0xbf8   :  { %3939 = vmatmul.msk.f32.gmra.mxu3 %vm716_vm2, %v6499_v25 }
 0xbfb   :  { %4246 = vrot.lane.b32.xlu1 %v6135_v48, %s4566_s2 }
 0xc00   :  { %3940 = vmatmul.msk.f32.gmra.mxu3 %vm716_vm2, %v6559_v40 }
 0xc03   :  { %4261 = vrot.lane.b32.xlu0 %v6076_v39, %s4566_s2  ;;  %4251 = vrot.lane.b32.xlu1 %v6146_v53, %s4566_s2 }
 0xc05   :  { %2641 = vadd.xlane.f32.xlu2 %v6665_v6 }
 0xc08   :  { %3941 = vmatmul.msk.f32.gmra.mxu3 %vm716_vm2, %v6470_v37  ;;  %v6687_v55 = vpop.f32.mrf.mxu3 }
 0xc0b   :  { %4271 = vrot.lane.b32.xlu0 %v6037_v2, %s4569_s5 }
 0xc0c   :  { %v3015_v41 = vpop.xlane.xlu0 %3014 }
 0xc0f   :  { %v2632_v25 = vpop.xlane.xlu2 %2631 }
 0xc10   :  { %4464 = vrcp.f32 %v2632_v25  ;;  %3942 = vmatmul.msk.f32.gmra.mxu3 %vm716_vm2, %v6589_v35  ;;  %v3028_v35 = vsub.f32 %v6596_v10, %v3015_v41  ;;  %v6695_v16 = vpop.f32.mrf.mxu3 }
 0xc12   :  { %v3035_v54 = vmul.f32 1.442695, %v3028_v35 }
 0xc13   :  { %4281 = vrot.lane.b32.xlu0 %v6023_v47, %s4569_s5 }
 0xc14   :  { %v2638_v12 = vpop.xlane.xlu0 %2637 }
 0xc15   :  { %4466 = vrcp.f32 %v2638_v12 }
 0xc16   :  { %v4465_v40 = vpop.eup %4464 }
 0xc17   :  { %v3017_v3 = vpop.xlane.xlu2 %3016  ;;  %v2651_v9 = vmul.f32 %v4465_v40, %v6599_v42  ;;  %v3030_v42 = vsub.f32 %v6583_v0, %v3019_v29 }
 0xc18   :  { %3943 = vmatmul.msk.f32.gmra.mxu3 %vm716_vm2, %v6586_v13  ;;  %v3029_v20 = vsub.f32 %v6608_v28, %v3017_v3  ;;  %v6702_v52 = vpop.f32.mrf.mxu3 }
 0xc19   :  { %2659 = vst [vmem:[#allocation2 + $0x120] sm:$0xff] %v2651_v9  ;;  %2732 = vmatmul.f32.gmra.mxu2 %v2651_v9 }
 0xc1b   :  { %v4467_v2 = vpop.eup %4466 }
 0xc1c   :  { %v2654_v37 = vmul.f32 %v4467_v2, %v6604_v15  ;;  %v3039_v15 = vmul.f32 1.442695, %v3030_v42  ;;  %v3023_v61 = vpop.xlane.xlu0 %3022 }
 0xc1d   :  { %4256 = vrot.lane.b32.xlu2 %v6158_v24, %s4566_s2  ;;  %v3032_v43 = vsub.f32 %v6613_v44, %v3023_v61 }
 0xc1e   :  { %2662 = vst [vmem:[#allocation2 + $0x138] sm:$0xff] %v2654_v37 }
 0xc1f   :  { %v2634_v47 = vpop.xlane.xlu2 %2633  ;;  %v3043_v63 = vmul.f32 1.442695, %v3032_v43 }
 0xc20   :  { %4468 = vrcp.f32 %v2634_v47  ;;  %v6707_v44 = vpop.f32.mrf.mxu3 }
 0xc21   :  { %4470 = vpow2.f32 %v3035_v54 }
 0xc26   :  { %v4469_v26 = vpop.eup %4468 }
 0xc27   :  { %v2636_v13 = vpop.xlane.xlu2 %2635  ;;  %v2652_v57 = vmul.f32 %v4469_v26, %v6616_v31  ;;  %v6685_v59 = vpop.eup %4470 }
 0xc28   :  { %4472 = vrcp.f32 %v2636_v13 }
 0xc29   :  { %2660 = vst [vmem:[#allocation2 + $0x128] sm:$0xff] %v2652_v57  ;;  %2735 = vmatmul.f32.gmra.mxu2 %v2652_v57  ;;  %4474 = vpow2.f32 %v3039_v15 }
 0xc2d   :  { %3049 = vadd.xlane.f32.xlu1 %v6685_v59 }
 0xc2e   :  { %v4473_v10 = vpop.eup %4472 }
 0xc2f   :  { %v3021_v1 = vpop.xlane.xlu2 %3020  ;;  %v2653_v0 = vmul.f32 %v4473_v10, %v6619_v18  ;;  %v6692_v17 = vpop.eup %4474  ;;  %v3037_v18 = vmul.f32 1.442695, %v3029_v20 }
 0xc30   :  { %v3031_v19 = vsub.f32 %v6623_v5, %v3021_v1  ;;  %v4232_v8 = vpop.permute.xlu0 %4231 }
 0xc31   :  { %2661 = vst [vmem:[#allocation2 + $0x130] sm:$0xff] %v2653_v0  ;;  %2738 = vmatmul.f32.gmra.mxu2 %v2653_v0  ;;  %v4233_v27 = vunpack.i.l.bf16 %v4232_v8  ;;  %v4234_v21 = vunpack.i.h.bf16 %v4232_v8 }
 0xc32   :  { %v3041_v31 = vmul.f32 1.442695, %v3031_v19 }
 0xc34   :  { %4476 = vpow2.f32 %v3041_v31 }
 0xc35   :  { %3053 = vadd.xlane.f32.xlu1 %v6692_v17  ;;  %4478 = vpow2.f32 %v3037_v18 }
 0xc36   :  { %4480 = vpow2.f32 %v3043_v63 }
 0xc37   :  { %v4227_v46 = vpop.permute.xlu2 %4226 }
 0xc38   :  { %v4228_v62 = vunpack.i.l.bf16 %v4227_v46  ;;  %v4229_v34 = vunpack.i.h.bf16 %v4227_v46  ;;  %v4242_v33 = vpop.permute.xlu0 %4241 }
 0xc39   :  { %2741 = vmatmul.f32.gmra.mxu2 %v2654_v37  ;;  %v4243_v50 = vunpack.i.l.bf16 %v4242_v33  ;;  %v4244_v60 = vunpack.i.h.bf16 %v4242_v33 }
 0xc3a   :  { %3133 = vmatpush.msra.mxu2 %v4228_v62  ;;  %v6698_v5 = vpop.eup %4476 }
 0xc3b   :  { %v6704_v49 = vpop.eup %4478 }
 0xc3c   :  { %3134 = vmatpush.msra.mxu2 %v4229_v34  ;;  %v6709_v14 = vpop.eup %4480 }
 0xc3d   :  { %3055 = vadd.xlane.f32.xlu1 %v6698_v5 }
 0xc3e   :  { %3135 = vmatpush.msra.mxu2 %v4233_v27 }
 0xc3f   :  { %v4237_v32 = vpop.permute.xlu2 %4236 }
 0xc40   :  { %v4238_v28 = vunpack.i.l.bf16 %v4237_v32  ;;  %3136 = vmatpush.msra.mxu2 %v4234_v21  ;;  %v4239_v4 = vunpack.i.h.bf16 %v4237_v32 }
 0xc42   :  { %3137 = vmatpush.msra.mxu2 %v4238_v28 }
 0xc44   :  { %3138 = vmatpush.msra.mxu2 %v4239_v4 }
 0xc46   :  { %3051 = vadd.xlane.f32.xlu2 %v6704_v49  ;;  %3139 = vmatpush.msra.mxu2 %v4243_v50 }
 0xc48   :  { %3140 = vmatpush.msra.mxu2 %v4244_v60 }
 0xc4d   :  { %v2640_v38 = vpop.xlane.xlu1 %2639 }
 0xc4e   :  { %4482 = vrcp.f32 %v2640_v38  ;;  %3057 = vadd.xlane.f32.xlu2 %v6709_v14 }
 0xc53   :  { %v6715_v30 = vpop.f32.mrf.mxu3 }
 0xc54   :  { %v4483_v11 = vpop.eup %4482 }
 0xc55   :  { %v3025_v51 = vpop.xlane.xlu1 %3024  ;;  %v2655_v41 = vmul.f32 %v4483_v11, %v6635_v36 }
 0xc56   :  { %v3033_v25 = vsub.f32 %v6641_v58, %v3025_v51  ;;  %4266 = vrot.lane.b32.xlu1 %v6027_v7, %s4569_s5 }
 0xc57   :  { %2663 = vst [vmem:[#allocation2 + $0x140] sm:$0xff] %v2655_v41  ;;  %2744 = vmatmul.f32.gmra.mxu2 %v2655_v41 }
 0xc58   :  { %v3045_v12 = vmul.f32 1.442695, %v3033_v25 }
 0xc5a   :  { %4484 = vpow2.f32 %v3045_v12 }
 0xc5b   :  { %v6721_v40 = vpop.f32.mrf.mxu3 }
 0xc60   :  { %v6723_v3 = vpop.eup %4484 }
 0xc61   :  { %3059 = vadd.xlane.f32.xlu2 %v6723_v3 }
 0xc62   :  { %v3027_v9 = vpop.xlane.xlu0 %3026 }
 0xc63   :  { %v3034_v2 = vsub.f32 %v6649_v23, %v3027_v9  ;;  %v6727_v37 = vpop.f32.mrf.mxu3 }
 0xc65   :  { %v3047_v36 = vmul.f32 1.442695, %v3034_v2 }
 0xc67   :  { %4486 = vpow2.f32 %v3047_v36 }
 0xc6b   :  { %v3347_v58 = vpop.f32.mrf.mxu3 }
 0xc6c   :  { %v3368_v29 = vmul.f32 0.35355338, %v3347_v58 }
 0xc6d   :  { %v6729_v35 = vpop.eup %4486  ;;  %v4247_v7 = vpop.permute.xlu1 %4246 }
 0xc6e   :  { %v4248_v47 = vunpack.i.l.bf16 %v4247_v7  ;;  %3061 = vadd.xlane.f32.xlu0 %v6729_v35  ;;  %v2730_v54 = vpop.f32.mrf.mxu2  ;;  %v4249_v26 = vunpack.i.h.bf16 %v4247_v7  ;;  %v6734_v23 = vadd.f32 %v3368_v29, %v6911_v56 }
 0xc6f   :  { %3877 = vmatmul.msk.f32.vlgmr.msra.gmra.mxu0 %vm716_vm2, %v2730_v54 }
 0xc70   :  { %3141 = vmatpush.msra.mxu2 %v4248_v47 }
 0xc72   :  { %3142 = vmatpush.msra.mxu2 %v4249_v26 }
 0xc73   :  { %v3350_v42 = vpop.f32.mrf.mxu3 }
 0xc74   :  { %v3369_v15 = vmul.f32 0.35355338, %v3350_v42 }
 0xc75   :  { %v4252_v13 = vpop.permute.xlu1 %4251  ;;  %v4262_v34 = vpop.permute.xlu0 %4261 }
 0xc76   :  { %3382 = vmax.xlane.f32.xlu0 %v6734_v23  ;;  %v4253_v57 = vunpack.i.l.bf16 %v4252_v13  ;;  %v4254_v61 = vunpack.i.h.bf16 %v4252_v13  ;;  %v6740_v0 = vadd.f32 %v3369_v15, %v6911_v56  ;;  %v4263_v21 = vunpack.i.l.bf16 %v4262_v34 }
 0xc77   :  { %v4264_v32 = vunpack.i.h.bf16 %v4262_v34 }
 0xc78   :  { %v2642_v10 = vpop.xlane.xlu2 %2641  ;;  %3143 = vmatpush.msra.mxu2 %v4253_v57 }
 0xc79   :  { %4488 = vrcp.f32 %v2642_v10  ;;  %4276 = vrot.lane.b32.xlu2 %v6017_v45, %s4569_s5 }
 0xc7a   :  { %3144 = vmatpush.msra.mxu2 %v4254_v61 }
 0xc7b   :  { %v3353_v1 = vpop.f32.mrf.mxu3 }
 0xc7c   :  { %v3370_v19 = vmul.f32 0.35355338, %v3353_v1 }
 0xc7d   :  { %v4272_v26 = vpop.permute.xlu0 %4271 }
 0xc7e   :  { %v6743_v31 = vadd.f32 %v3370_v19, %v6911_v56  ;;  %3384 = vmax.xlane.f32.xlu0 %v6740_v0  ;;  %v4273_v42 = vunpack.i.l.bf16 %v4272_v26  ;;  %v4274_v13 = vunpack.i.h.bf16 %v4272_v26 }
 0xc7f   :  { %v4489_v20 = vpop.eup %4488 }
 0xc80   :  { %v4257_v8 = vpop.permute.xlu2 %4256  ;;  %3386 = vmax.xlane.f32.xlu1 %v6743_v31  ;;  %v2656_v46 = vmul.f32 %v4489_v20, %v6665_v6 }
 0xc81   :  { %v4258_v62 = vunpack.i.l.bf16 %v4257_v8  ;;  %v4259_v45 = vunpack.i.h.bf16 %v4257_v8 }
 0xc82   :  { %2664 = vst [vmem:[#allocation2 + $0x148] sm:$0xff] %v2656_v46  ;;  %2747 = vmatmul.f32.gmra.mxu2 %v2656_v46 }
 0xc83   :  { %3145 = vmatpush.msra.mxu2 %v4258_v62  ;;  %v3356_v18 = vpop.f32.mrf.mxu3 }
 0xc84   :  { %v3371_v27 = vmul.f32 0.35355338, %v3356_v18 }
 0xc85   :  { %3146 = vmatpush.msra.mxu2 %v4259_v45  ;;  %v4282_v57 = vpop.permute.xlu0 %4281 }
 0xc86   :  { %v6749_v43 = vadd.f32 %v3371_v27, %v6911_v56  ;;  %v4283_v34 = vunpack.i.l.bf16 %v4282_v57  ;;  %v4284_v45 = vunpack.i.h.bf16 %v4282_v57 }
 0xc87   :  { %3147 = vmatpush.msra.mxu2 %v4263_v21 }
 0xc88   :  { %3388 = vmax.xlane.f32.xlu1 %v6749_v43 }
 0xc89   :  { %3148 = vmatpush.msra.mxu2 %v4264_v32 }
 0xc8b   :  { %v3359_v28 = vpop.f32.mrf.mxu3 }
 0xc8c   :  { %v3372_v63 = vmul.f32 0.35355338, %v3359_v28 }
 0xc8e   :  { %v6758_v60 = vadd.f32 %v3372_v63, %v6911_v56 }
 0xc93   :  { %v3362_v6 = vpop.f32.mrf.mxu3 }
 0xc94   :  { %v3373_v33 = vmul.f32 0.35355338, %v3362_v6 }
 0xc96   :  { %v6753_v4 = vadd.f32 %v3373_v33, %v6911_v56 }
 0xc98   :  { %3392 = vmax.xlane.f32.xlu1 %v6753_v4 }
 0xc9b   :  { %v3365_v15 = vpop.f32.mrf.mxu3 }
 0xc9c   :  { %v2733_v50 = vpop.f32.mrf.mxu2  ;;  %v3374_v19 = vmul.f32 0.35355338, %v3365_v15 }
 0xc9d   :  { %3878 = vmatmul.msk.f32.gmra.mxu0 %vm716_vm2, %v2733_v50 }
 0xc9e   :  { %v6778_v46 = vadd.f32 %v3374_v19, %v6911_v56 }
 0xca0   :  { %v3050_v38 = vpop.xlane.xlu1 %3049 }
 0xca1   :  { %4490 = vrcp.f32 %v3050_v38 }
 0xca2   :  { %3390 = vmax.xlane.f32.xlu2 %v6758_v60 }
 0xca7   :  { %v4491_v22 = vpop.eup %4490 }
 0xca8   :  { %v3070_v11 = vmul.f32 %v4491_v22, %v6685_v59  ;;  %v3054_v51 = vpop.xlane.xlu1 %3053 }
 0xca9   :  { %4492 = vrcp.f32 %v3054_v51 }
 0xcaa   :  { %3078 = vst [vmem:[#allocation2 + $0x150] sm:$0xff] %v3070_v11  ;;  %3149 = vmatmul.f32.vlgmr.msra.gmra.mxu2 %v3070_v11 }
 0xcac   :  { %v2736_v41 = vpop.f32.mrf.mxu2 }
 0xcad   :  { %3879 = vmatmul.msk.f32.gmra.mxu0 %vm716_vm2, %v2736_v41 }
 0xcaf   :  { %v4493_v25 = vpop.eup %4492 }
 0xcb0   :  { %v3056_v12 = vpop.xlane.xlu1 %3055  ;;  %v3072_v9 = vmul.f32 %v4493_v25, %v6692_v17  ;;  %v3171_v25 = vld [vmem:[%s6876_s3 + $0x10] sm:$0xff] }
 0xcb1   :  { %4494 = vrcp.f32 %v3056_v12  ;;  %4291 = vrot.lane.b32.xlu1 %v6146_v53, %s4569_s5  ;;  %3208 = vmatpush.msrb.mxu0 %v3171_v25 }
 0xcb2   :  { %3080 = vst [vmem:[#allocation2 + $0x160] sm:$0xff] %v3072_v9 }
 0xcb4   :  { %v2739_v2 = vpop.f32.mrf.mxu2 }
 0xcb5   :  { %3880 = vmatmul.msk.f32.gmra.mxu0 %vm716_vm2, %v2739_v2 }
 0xcb7   :  { %v4495_v59 = vpop.eup %4494 }
 0xcb8   :  { %v3073_v36 = vmul.f32 %v4495_v59, %v6698_v5 }
 0xcb9   :  { %v3052_v58 = vpop.xlane.xlu2 %3051  ;;  %4301 = vrot.lane.b32.xlu1 %v6076_v39, %s4569_s5 }
 0xcba   :  { %4496 = vrcp.f32 %v3052_v58  ;;  %4286 = vrot.lane.b32.xlu2 %v6135_v48, %s4569_s5  ;;  %3081 = vst [vmem:[#allocation2 + $0x168] sm:$0xff] %v3073_v36 }
 0xcbc   :  { %v2742_v17 = vpop.f32.mrf.mxu2 }
 0xcbd   :  { %3881 = vmatmul.msk.f32.gmra.mxu0 %vm716_vm2, %v2742_v17 }
 0xcc0   :  { %v4497_v53 = vpop.eup %4496 }
 0xcc1   :  { %v3058_v7 = vpop.xlane.xlu2 %3057  ;;  %v3071_v47 = vmul.f32 %v4497_v53, %v6704_v49 }
 0xcc2   :  { %4498 = vrcp.f32 %v3058_v7 }
 0xcc3   :  { %3079 = vst [vmem:[#allocation2 + $0x158] sm:$0xff] %v3071_v47  ;;  %3152 = vmatmul.f32.gmra.mxu2 %v3071_v47 }
 0xcc8   :  { %v4499_v5 = vpop.eup %4498  ;;  %v4267_v54 = vpop.permute.xlu1 %4266 }
 0xcc9   :  { %v4268_v29 = vunpack.i.l.bf16 %v4267_v54  ;;  %v3074_v39 = vmul.f32 %v4499_v5, %v6709_v14  ;;  %v4269_v48 = vunpack.i.h.bf16 %v4267_v54 }
 0xccb   :  { %3155 = vmatmul.f32.gmra.mxu2 %v3072_v9  ;;  %3082 = vst [vmem:[#allocation2 + $0x170] sm:$0xff] %v3074_v39 }
 0xccc   :  { %3501 = vmatpush.msrb.mxu2 %v4268_v29 }
 0xcce   :  { %3502 = vmatpush.msrb.mxu2 %v4269_v48 }
 0xcd0   :  { %3503 = vmatpush.msrb.mxu2 %v4273_v42 }
 0xcd2   :  { %3504 = vmatpush.msrb.mxu2 %v4274_v13 }
 0xcd3   :  { %3158 = vmatmul.f32.gmra.mxu2 %v3073_v36 }
 0xcd4   :  { %v3060_v49 = vpop.xlane.xlu2 %3059 }
 0xcd5   :  { %4500 = vrcp.f32 %v3060_v49 }
 0xcda   :  { %v2745_v10 = vpop.f32.mrf.mxu2 }
 0xcdb   :  { %v4501_v61 = vpop.eup %4500  ;;  %3882 = vmatmul.msk.f32.gmra.mxu0 %vm716_vm2, %v2745_v10  ;;  %3161 = vmatmul.f32.gmra.mxu2 %v3074_v39 }
 0xcdc   :  { %v4277_v14 = vpop.permute.xlu2 %4276  ;;  %v3075_v1 = vmul.f32 %v4501_v61, %v6723_v3 }
 0xcdd   :  { %v4278_v20 = vunpack.i.l.bf16 %v4277_v14  ;;  %v4279_v8 = vunpack.i.h.bf16 %v4277_v14 }
 0xcde   :  { %3083 = vst [vmem:[#allocation2 + $0x178] sm:$0xff] %v3075_v1 }
 0xcdf   :  { %3505 = vmatpush.msrb.mxu2 %v4278_v20 }
 0xce1   :  { %v3062_v62 = vpop.xlane.xlu0 %3061  ;;  %3506 = vmatpush.msrb.mxu2 %v4279_v8 }
 0xce2   :  { %4502 = vrcp.f32 %v3062_v62 }
 0xce3   :  { %3394 = vmax.xlane.f32.xlu2 %v6778_v46  ;;  %3164 = vmatmul.f32.gmra.mxu2 %v3075_v1 }
 0xce4   :  { %3507 = vmatpush.msrb.mxu2 %v4283_v34 }
 0xce6   :  { %3508 = vmatpush.msrb.mxu2 %v4284_v45 }
 0xce8   :  { %v4503_v18 = vpop.eup %4502 }
 0xce9   :  { %v3383_v3 = vpop.xlane.xlu0 %3382  ;;  %v3076_v27 = vmul.f32 %v4503_v18, %v6729_v35 }
 0xcea   :  { %v3396_v21 = vsub.f32 %v6734_v23, %v3383_v3 }
 0xceb   :  { %3084 = vst [vmem:[#allocation2 + $0x180] sm:$0xff] %v3076_v27  ;;  %3167 = vmatmul.f32.gmra.mxu2 %v3076_v27 }
 0xcec   :  { %v3403_v56 = vmul.f32 1.442695, %v3396_v21 }
 0xcee   :  { %4504 = vpow2.f32 %v3403_v56 }
 0xcf1   :  { %v3385_v32 = vpop.xlane.xlu0 %3384 }
 0xcf2   :  { %v3397_v28 = vsub.f32 %v6740_v0, %v3385_v32 }
 0xcf3   :  { %v3387_v6 = vpop.xlane.xlu1 %3386 }
 0xcf4   :  { %v6784_v33 = vpop.eup %4504  ;;  %v3405_v63 = vmul.f32 1.442695, %v3397_v28  ;;  %v3398_v50 = vsub.f32 %v6743_v31, %v3387_v6 }
 0xcf5   :  { %3417 = vadd.xlane.f32.xlu0 %v6784_v33 }
 0xcf6   :  { %4506 = vpow2.f32 %v3405_v63  ;;  %v3407_v38 = vmul.f32 1.442695, %v3398_v50 }
 0xcf8   :  { %4508 = vpow2.f32 %v3407_v38 }
 0xcfb   :  { %v3389_v35 = vpop.xlane.xlu1 %3388 }
 0xcfc   :  { %v6788_v23 = vpop.eup %4506  ;;  %v3399_v22 = vsub.f32 %v6749_v43, %v3389_v35 }
 0xcfd   :  { %3419 = vadd.xlane.f32.xlu2 %v6788_v23 }
 0xcfe   :  { %v6792_v11 = vpop.eup %4508  ;;  %v3409_v0 = vmul.f32 1.442695, %v3399_v22 }
 0xcff   :  { %3421 = vadd.xlane.f32.xlu1 %v6792_v11 }
 0xd00   :  { %4510 = vpow2.f32 %v3409_v0 }
 0xd05   :  { %v2748_v51 = vpop.f32.mrf.mxu2 }
 0xd06   :  { %v6795_v31 = vpop.eup %4510  ;;  %3883 = vmatmul.msk.f32.gmra.mxu0 %vm716_vm2, %v2748_v51 }
 0xd07   :  { %3423 = vadd.xlane.f32.xlu2 %v6795_v31 }
 0xd09   :  { %4296 = vrot.lane.b32.xlu0 %v6158_v24, %s4569_s5 }
 0xd0b   :  { %v3393_v41 = vpop.xlane.xlu1 %3392 }
 0xd0c   :  { %v3401_v43 = vsub.f32 %v6753_v4, %v3393_v41 }
 0xd0e   :  { %v3413_v12 = vmul.f32 1.442695, %v3401_v43 }
 0xd10   :  { %4512 = vpow2.f32 %v3413_v12  ;;  %v2790_v12 = vpop.f32.mrf.mxu0 }
 0xd15   :  { %v3391_v9 = vpop.xlane.xlu2 %3390 }
 0xd16   :  { %v6805_v2 = vpop.eup %4512  ;;  %v3400_v4 = vsub.f32 %v6758_v60, %v3391_v9 }
 0xd17   :  { %3427 = vadd.xlane.f32.xlu2 %v6805_v2 }
 0xd18   :  { %v3411_v7 = vmul.f32 1.442695, %v3400_v4 }
 0xd1a   :  { %4514 = vpow2.f32 %v3411_v7  ;;  %v2793_v9 = vpop.f32.mrf.mxu0 }
 0xd1d   :  { %v4287_v59 = vpop.permute.xlu2 %4286 }
 0xd1e   :  { %v4288_v36 = vunpack.i.l.bf16 %v4287_v59  ;;  %v4289_v58 = vunpack.i.h.bf16 %v4287_v59 }
 0xd20   :  { %3509 = vmatpush.msrb.mxu2 %v4288_v36  ;;  %v4515_v5 = vpop.eup %4514 }
 0xd22   :  { %3510 = vmatpush.msrb.mxu2 %v4289_v58 }
 0xd23   :  { %v4292_v24 = vpop.permute.xlu1 %4291 }
 0xd24   :  { %v4293_v17 = vunpack.i.l.bf16 %v4292_v24  ;;  %v4294_v53 = vunpack.i.h.bf16 %v4292_v24 }
 0xd26   :  { %3511 = vmatpush.msrb.mxu2 %v4293_v17 }
 0xd28   :  { %3512 = vmatpush.msrb.mxu2 %v4294_v53  ;;  %v2850_v53 = vadd.f32 %v6687_v55, %v2790_v12 }
 0xd2b   :  { %v4302_v15 = vpop.permute.xlu1 %4301 }
 0xd2c   :  { %v4303_v27 = vunpack.i.l.bf16 %v4302_v15  ;;  %v4304_v56 = vunpack.i.h.bf16 %v4302_v15 }
 0xd2d   :  { %v3150_v47 = vpop.f32.mrf.mxu2 }
 0xd2e   :  { %3914 = vmatmul.msk.f32.vlgmr.msrb.gmra.mxu0 %vm716_vm2, %v3150_v47  ;;  %v4307_v47 = vld [vmem:[%s6877_s4] ss:$0 sm:$0xff] }
 0xd33   :  { %3425 = vadd.xlane.f32.xlu0 %v4515_v5 }
 0xd46   :  { %v3153_v54 = vpop.f32.mrf.mxu2 }
 0xd47   :  { %3915 = vmatmul.msk.f32.gmra.mxu0 %vm716_vm2, %v3153_v54 }
 0xd4e   :  { %v3156_v29 = vpop.f32.mrf.mxu2 }
 0xd4f   :  { %3916 = vmatmul.msk.f32.gmra.mxu0 %vm716_vm2, %v3156_v29 }
 0xd56   :  { %v3395_v39 = vpop.xlane.xlu2 %3394  ;;  %v3159_v26 = vpop.f32.mrf.mxu2 }
 0xd57   :  { %v3402_v60 = vsub.f32 %v6778_v46, %v3395_v39  ;;  %3917 = vmatmul.msk.f32.gmra.mxu0 %vm716_vm2, %v3159_v26  ;;  %v2853_v26 = vadd.f32 %v6695_v16, %v2793_v9 }
 0xd59   :  { %v3415_v48 = vmul.f32 1.442695, %v3402_v60 }
 0xd5b   :  { %4516 = vpow2.f32 %v3415_v48 }
 0xd5e   :  { %v3162_v42 = vpop.f32.mrf.mxu2 }
 0xd5f   :  { %3918 = vmatmul.msk.f32.gmra.mxu0 %vm716_vm2, %v3162_v42 }
 0xd61   :  { %v4517_v13 = vpop.eup %4516 }
 0xd62   :  { %3429 = vadd.xlane.f32.xlu2 %v4517_v13 }
 0xd66   :  { %v3165_v49 = vpop.f32.mrf.mxu2 }
 0xd67   :  { %3919 = vmatmul.msk.f32.gmra.mxu0 %vm716_vm2, %v3165_v49 }
 0xd68   :  { %v3418_v57 = vpop.xlane.xlu0 %3417 }
 0xd69   :  { %4518 = vrcp.f32 %v3418_v57 }
 0xd6e   :  { %v3168_v10 = vpop.f32.mrf.mxu2 }
 0xd6f   :  { %v4519_v61 = vpop.eup %4518  ;;  %3920 = vmatmul.msk.f32.gmra.mxu0 %vm716_vm2, %v3168_v10 }
 0xd70   :  { %v3438_v14 = vmul.f32 %v4519_v61, %v6784_v33  ;;  %v3420_v1 = vpop.xlane.xlu2 %3419 }
 0xd71   :  { %4520 = vrcp.f32 %v3420_v1 }
 0xd72   :  { %3446 = vst [vmem:[#allocation2 + $0x188] sm:$0xff] %v3438_v14  ;;  %v3422_v19 = vpop.xlane.xlu1 %3421 }
 0xd73   :  { %4522 = vrcp.f32 %v3422_v19 }
 0xd77   :  { %v4521_v20 = vpop.eup %4520 }
 0xd78   :  { %v3439_v8 = vmul.f32 %v4521_v20, %v6788_v23 }
 0xd79   :  { %v4523_v46 = vpop.eup %4522 }
 0xd7a   :  { %v3424_v62 = vpop.xlane.xlu2 %3423  ;;  %3447 = vst [vmem:[#allocation2 + $0x190] sm:$0xff] %v3439_v8  ;;  %v3440_v34 = vmul.f32 %v4523_v46, %v6792_v11  ;;  %v3539_v11 = vld [vmem:[%s6876_s3 + $0x18] sm:$0xff]  ;;  %s4570_s3 = smov [#allocation2]  }
 0xd7b   :  { %4524 = vrcp.f32 %v3424_v62  ;;  %v4297_v45 = vpop.permute.xlu0 %4296  ;;  %3576 = vmatpush.msra.mxu1 %v3539_v11  ;;  %s3631_s5 = sshll.u32 %s4570_s3, 4  ;;  %s3632_s5 = int_to_ptr.vmem [resolvable:$true] %s3631_s5 }
 0xd7c   :  { %v4298_v18 = vunpack.i.l.bf16 %v4297_v45  ;;  %3448 = vst [vmem:[#allocation2 + $0x198] sm:$0xff] %v3440_v34  ;;  %v4299_v3 = vunpack.i.h.bf16 %v4297_v45 }
 0xd7e   :  { %3513 = vmatpush.msrb.mxu2 %v4298_v18 }
 0xd80   :  { %3514 = vmatpush.msrb.mxu2 %v4299_v3 }
 0xd81   :  { %v4525_v21 = vpop.eup %4524 }
 0xd82   :  { %3515 = vmatpush.msrb.mxu2 %v4303_v27  ;;  %v3441_v32 = vmul.f32 %v4525_v21, %v6795_v31 }
 0xd84   :  { %3516 = vmatpush.msrb.mxu2 %v4304_v56  ;;  %3449 = vst [vmem:[#allocation2 + $0x1a0] sm:$0xff] %v3441_v32 }
 0xd85   :  { %3517 = vmatmul.f32.vlgmr.msrb.gmra.mxu2 %v3438_v14 }
 0xd8a   :  { %v3428_v28 = vpop.xlane.xlu2 %3427 }
 0xd8b   :  { %4526 = vrcp.f32 %v3428_v28 }
 0xd8d   :  { %3520 = vmatmul.f32.gmra.mxu2 %v3439_v8 }
 0xd91   :  { %v4527_v6 = vpop.eup %4526 }
 0xd92   :  { %v3443_v33 = vmul.f32 %v4527_v6, %v6805_v2  ;;  %v2796_v2 = vpop.f32.mrf.mxu0 }
 0xd93   :  { %v2856_v49 = vadd.f32 %v6702_v52, %v2796_v2 }
 0xd94   :  { %3451 = vst [vmem:[#allocation2 + $0x1b0] sm:$0xff] %v3443_v33 }
 0xd95   :  { %3523 = vmatmul.f32.gmra.mxu2 %v3440_v34 }
 0xd9a   :  { %v2799_v59 = vpop.f32.mrf.mxu0 }
 0xd9b   :  { %v2859_v14 = vadd.f32 %v6707_v44, %v2799_v59 }
 0xd9d   :  { %3526 = vmatmul.f32.gmra.mxu2 %v3441_v32 }
 0xda2   :  { %v2802_v58 = vpop.f32.mrf.mxu0 }
 0xda3   :  { %v2862_v46 = vadd.f32 %v6715_v30, %v2802_v58 }
 0xda6   :  { %v3426_v63 = vpop.xlane.xlu0 %3425 }
 0xda7   :  { %4528 = vrcp.f32 %v3426_v63 }
 0xdaa   :  { %v2805_v24 = vpop.f32.mrf.mxu0 }
 0xdab   :  { %v2865_v3 = vadd.f32 %v6721_v40, %v2805_v24 }
 0xdad   :  { %v4529_v50 = vpop.eup %4528 }
 0xdae   :  { %v3442_v38 = vmul.f32 %v4529_v50, %v4515_v5 }
 0xdb0   :  { %3450 = vst [vmem:[#allocation2 + $0x1a8] sm:$0xff] %v3442_v38  ;;  %3529 = vmatmul.f32.gmra.mxu2 %v3442_v38 }
 0xdb2   :  { %v2808_v4 = vpop.f32.mrf.mxu0 }
 0xdb3   :  { %v2868_v28 = vadd.f32 %v6727_v37, %v2808_v4 }
 0xdb8   :  { %3532 = vmatmul.f32.gmra.mxu2 %v3443_v33 }
 0xdba   :  { %v3210_v17 = vpop.f32.mrf.mxu0 }
 0xdbb   :  { %v3231_v7 = vadd.f32 %v3210_v17, %v2850_v53 }
 0xdc4   :  { %v3213_v5 = vpop.f32.mrf.mxu0 }
 0xdc5   :  { %v3232_v60 = vadd.f32 %v3213_v5, %v2853_v26 }
 0xdcc   :  { %v3216_v55 = vpop.f32.mrf.mxu0 }
 0xdcd   :  { %v3233_v57 = vadd.f32 %v3216_v55, %v2856_v49 }
 0xdd4   :  { %v3219_v61 = vpop.f32.mrf.mxu0 }
 0xdd5   :  { %v3430_v35 = vpop.xlane.xlu2 %3429  ;;  %v3234_v1 = vadd.f32 %v3219_v61, %v2859_v14 }
 0xdd6   :  { %4530 = vrcp.f32 %v3430_v35 }
 0xddc   :  { %v4531_v23 = vpop.eup %4530  ;;  %v3222_v8 = vpop.f32.mrf.mxu0 }
 0xddd   :  { %v3444_v22 = vmul.f32 %v4531_v23, %v4517_v13  ;;  %v3235_v62 = vadd.f32 %v3222_v8, %v2862_v46 }
 0xddf   :  { %3452 = vst [vmem:[#allocation2 + $0x1b8] sm:$0xff] %v3444_v22  ;;  %3535 = vmatmul.f32.gmra.mxu2 %v3444_v22 }
 0xde0   :  { %3639 = dma.vmem_to_hbm [thread:$0]  %s3632_s5, 7168, %s3634_s0, [#allocation3], %s4571_s22, %s4571_s22, %s4572_s10  }
 0xde4   :  { %v3225_v18 = vpop.f32.mrf.mxu0 }
 0xde5   :  { %v3236_v27 = vadd.f32 %v3225_v18, %v2865_v3 }
 0xdec   :  { %v3228_v30 = vpop.f32.mrf.mxu0 }
 0xded   :  { %v3237_v6 = vadd.f32 %v3228_v30, %v2868_v28 }
 0xe08   :  { %v3518_v0 = vpop.f32.mrf.mxu2 }
 0xe09   :  { %3944 = vmatmul.msk.f32.vlgmr.msra.gmra.mxu1 %vm716_vm2, %v3518_v0 }
 0xe10   :  { %v3521_v51 = vpop.f32.mrf.mxu2 }
 0xe11   :  { %3945 = vmatmul.msk.f32.gmra.mxu1 %vm716_vm2, %v3521_v51 }
 0xe18   :  { %v3524_v31 = vpop.f32.mrf.mxu2 }
 0xe19   :  { %3946 = vmatmul.msk.f32.gmra.mxu1 %vm716_vm2, %v3524_v31 }
 0xe20   :  { %v3527_v41 = vpop.f32.mrf.mxu2 }
 0xe21   :  { %3947 = vmatmul.msk.f32.gmra.mxu1 %vm716_vm2, %v3527_v41 }
 0xe33   :  { %v3530_v43 = vpop.f32.mrf.mxu2 }
 0xe34   :  { %3948 = vmatmul.msk.f32.gmra.mxu1 %vm716_vm2, %v3530_v43 }
 0xe3b   :  { %v3533_v25 = vpop.f32.mrf.mxu2 }
 0xe3c   :  { %3949 = vmatmul.msk.f32.gmra.mxu1 %vm716_vm2, %v3533_v25 }
 0xe62   :  { %v3536_v36 = vpop.f32.mrf.mxu2 }
 0xe63   :  { %3950 = vmatmul.msk.f32.gmra.mxu1 %vm716_vm2, %v3536_v36 }
 0xe86   :  { %v3578_v54 = vpop.f32.mrf.mxu1 }
 0xe87   :  { %v3599_v29 = vadd.f32 %v3578_v54, %v3231_v7 }
 0xe89   :  { %v3610_v39 = vadd.f32 %v4307_v47, %v3599_v29 }
 0xe8b   :  { %3951 = vst.msk [vmem:[%s6881_s8 + $0x38] sm:$0xff] %vm72_vm0, %v3610_v39 }
 0xe8e   :  { %v3581_v48 = vpop.f32.mrf.mxu1 }
 0xe8f   :  { %v3600_v42 = vadd.f32 %v3581_v48, %v3232_v60 }
 0xe91   :  { %v3611_v13 = vadd.f32 %v4307_v47, %v3600_v42 }
 0xe93   :  { %3952 = vst.msk [vmem:[%s6881_s8 + $0x40] sm:$0xff] %vm72_vm0, %v3611_v13 }
 0xe96   :  { %v3584_v15 = vpop.f32.mrf.mxu1 }
 0xe97   :  { %v3601_v16 = vadd.f32 %v3584_v15, %v3233_v57 }
 0xe99   :  { %v3612_v10 = vadd.f32 %v4307_v47, %v3601_v16 }
 0xe9b   :  { %3953 = vst.msk [vmem:[%s6881_s8 + $0x48] sm:$0xff] %vm72_vm0, %v3612_v10 }
 0xe9e   :  { %v3587_v19 = vpop.f32.mrf.mxu1 }
 0xe9f   :  { %v3602_v52 = vadd.f32 %v3587_v19, %v3234_v1 }
 0xea1   :  { %v3613_v20 = vadd.f32 %v4307_v47, %v3602_v52 }
 0xea3   :  { %3954 = vst.msk [vmem:[%s6881_s8 + $0x50] sm:$0xff] %vm72_vm0, %v3613_v20 }
 0xeb1   :  { %v3590_v34 = vpop.f32.mrf.mxu1 }
 0xeb2   :  { %v3603_v44 = vadd.f32 %v3590_v34, %v3235_v62 }
 0xeb4   :  { %v3614_v45 = vadd.f32 %v4307_v47, %v3603_v44 }
 0xeb6   :  { %3955 = vst.msk [vmem:[%s6881_s8 + $0x58] sm:$0xff] %vm72_vm0, %v3614_v45 }
 0xeb9   :  { %v3593_v21 = vpop.f32.mrf.mxu1 }
 0xeba   :  { %v3604_v56 = vadd.f32 %v3593_v21, %v3236_v27 }
 0xebc   :  { %v3615_v32 = vadd.f32 %v4307_v47, %v3604_v56 }
 0xebe   :  { %3956 = vst.msk [vmem:[%s6881_s8 + $0x60] sm:$0xff] %vm72_vm0, %v3615_v32 }
 0xee0   :  { %v3596_v33 = vpop.f32.mrf.mxu1 }
 0xee1   :  { %v3605_v40 = vadd.f32 %v3596_v33, %v3237_v6 }
 0xee3   :  { %v3616_v63 = vadd.f32 %v4307_v47, %v3605_v40 }
 0xee5   :  { %3957 = vst.msk [vmem:[%s6881_s8 + $0x68] sm:$0xff] %vm72_vm0, %v3616_v63 }
 0xee6   :  { %4556 = dma.done.wait [#allocation3], 7168  }
 0xee7   :  { %4557 = vsyncadd [#allocation3], 4294960128 }
 0xee8   :  { %3646 = vsyncpa [#allocation3], 1 }

</bundles_post_ra>
